<compile_context>
chip_gen: v6e
topology: v6e:2x2x1
jax: 0.10.0
libtpu: 0.0.40
codegen_flags: <defaults>
</compile_context>

<pallas_src>
import jax
import jax.numpy as jnp
from jax import lax
from jax.experimental import pallas as pl
from jax.experimental.pallas import tpu as pltpu

# ----------------------------- config (module defaults, small batch/seq) -----
INPUT_SIZE = 1
HIDDEN = 128          # nn.LSTM default hidden_size=128 in the module
NUM_LAYERS = 2
OUTPUT_SIZE = 1
BATCH = 2
SEQ = 8


# ----------------------------- Pallas kernel ---------------------------------
def lstm_gen_kernel(xproj_ref,   # (S, B, 4H) f32 : x @ W_ih0^T + (b_ih0 + b_hh0)
                    whh0_ref,    # (H, 4H)    bf16
                    w1_ref,      # (2H, 4H)   bf16 : [W_ih1^T ; W_hh1^T]
                    b1_ref,      # (B, 4H)    f32  : b_ih1 + b_hh1 (pre-broadcast)
                    wfc_ref,     # (1, H)     f32
                    bfc_ref,     # (1, 1)     f32
                    out_ref):    # (B, 1)     f32
    seq, B, G = xproj_ref.shape
    H = G // 4

    # Hoist weight/bias loads out of the (unrolled) time loop.
    whh0 = whh0_ref[...]
    w1 = w1_ref[...]
    b1 = b1_ref[...]

    def gates_to_hc(gates, c_prev):
        # Gate order is (i, f, o, g): one contiguous sigmoid slab + one tanh slab.
        sig = jax.nn.sigmoid(gates[:, :3 * H])
        g = jnp.tanh(gates[:, 3 * H:])
        i = sig[:, 0 * H:1 * H]
        f = sig[:, 1 * H:2 * H]
        o = sig[:, 2 * H:3 * H]
        c_new = f * c_prev + i * g
        h_new = o * jnp.tanh(c_new)
        return h_new, c_new

    def step(t, carry):
        h0, c0, h1, c1 = carry
        # Layer 0: input projection + bias precomputed on host; only the recurrent
        # K=H matmul remains on the critical path.
        g0 = xproj_ref[t] + jnp.dot(h0.astype(jnp.bfloat16), whh0,
                                    preferred_element_type=jnp.float32)
        h0, c0 = gates_to_hc(g0, c0)
        # Layer 1: single fused K=2H matmul over [h0_new, h1_prev].
        hcat = jnp.concatenate([h0, h1], axis=-1).astype(jnp.bfloat16)
        g1 = b1 + jnp.dot(hcat, w1, preferred_element_type=jnp.float32)
        h1, c1 = gates_to_hc(g1, c1)
        return (h0, c0, h1, c1)

    z = jnp.zeros((B, H), jnp.float32)
    _, _, h1, _ = lax.fori_loop(0, seq, step, (z, z, z, z), unroll=True)

    # fc1 with out_features=1: VPU multiply + lane reduction instead of an MXU pass.
    # (Valid only for OUTPUT_SIZE == 1; for larger O a matmul would be used.)
    out_ref[...] = (jnp.sum(h1 * wfc_ref[...], axis=-1, keepdims=True)
                    + bfc_ref[...]).astype(out_ref.dtype)


# ----------------------------- wrapper ----------------------------------------
def _reorder_gates(a):
    """PyTorch gate order (i, f, g, o) -> kernel order (i, f, o, g) along axis 0 (4H)."""
    i, f, g, o = jnp.split(a, 4, axis=0)
    return jnp.concatenate([i, f, o, g], axis=0)


@jax.jit
def lstm_generator_forward(t, params):
    """t: (batch, seq, input_size) float32 -> (batch, output_size) float32."""
    B, S, F = t.shape
    H = HIDDEN
    O = OUTPUT_SIZE

    # Host-side gate reordering (matching the in-kernel (i, f, o, g) slicing).
    w_ih0 = _reorder_gates(params["w_ih0"])                     # (4H, F)
    w_hh0 = _reorder_gates(params["w_hh0"])                     # (4H, H)
    b0 = _reorder_gates(params["b_ih0"] + params["b_hh0"])      # (4H,)
    w_ih1 = _reorder_gates(params["w_ih1"])                     # (4H, H)
    w_hh1 = _reorder_gates(params["w_hh1"])                     # (4H, H)
    b1 = _reorder_gates(params["b_ih1"] + params["b_hh1"])      # (4H,)

    # Hoisted layer-0 input projection (with fused bias), laid out (S, B, 4H).
    xproj = jnp.einsum("bsf,gf->bsg", t.astype(jnp.float32), w_ih0) + b0
    xproj = jnp.transpose(xproj, (1, 0, 2))                     # (S, B, 4H) f32

    # Kernel-side weights: transposed, bf16 for the MXU; biases f32, pre-broadcast.
    whh0 = w_hh0.T.astype(jnp.bfloat16)                                    # (H, 4H)
    w1 = jnp.concatenate([w_ih1.T, w_hh1.T], axis=0).astype(jnp.bfloat16)  # (2H, 4H)
    b1_b = jnp.broadcast_to(b1.reshape(1, 4 * H), (B, 4 * H)).astype(jnp.float32)

    wfc = params["w_fc"].reshape(O, H).astype(jnp.float32)      # (1, H)
    bfc = params["b_fc"].reshape(1, O).astype(jnp.float32)      # (1, 1)

    vmem = pl.BlockSpec(memory_space=pltpu.MemorySpace.VMEM)
    out = pl.pallas_call(
        lstm_gen_kernel,
        out_shape=jax.ShapeDtypeStruct((B, O), jnp.float32),
        in_specs=[vmem] * 6,
        out_specs=vmem,
    )(xproj, whh0, w1, b1_b, wfc, bfc)
    return out


# ----------------------------- deterministic parameter init -------------------
def init_params(key):
    H, F, O = HIDDEN, INPUT_SIZE, OUTPUT_SIZE
    bound = 1.0 / jnp.sqrt(H)
    ks = jax.random.split(key, 10)
    u = lambda k, shape: jax.random.uniform(k, shape, jnp.float32, -bound, bound)
    return {
        "w_ih0": u(ks[0], (4 * H, F)),
        "w_hh0": u(ks[1], (4 * H, H)),
        "b_ih0": u(ks[2], (4 * H,)),
        "b_hh0": u(ks[3], (4 * H,)),
        "w_ih1": u(ks[4], (4 * H, H)),
        "w_hh1": u(ks[5], (4 * H, H)),
        "b_ih1": u(ks[6], (4 * H,)),
        "b_hh1": u(ks[7], (4 * H,)),
        "w_fc": u(ks[8], (O, H)),
        "b_fc": u(ks[9], (O,)),
    }


# ----------------------------- pure-JAX reference (for verification) ----------
def reference_forward(t, p):
    B, S, F = t.shape
    H = HIDDEN

    def cell(x, h, c, w_ih, w_hh, b_ih, b_hh):
        g = x @ w_ih.T + b_ih + h @ w_hh.T + b_hh
        i = jax.nn.sigmoid(g[:, 0 * H:1 * H])
        f = jax.nn.sigmoid(g[:, 1 * H:2 * H])
        gg = jnp.tanh(g[:, 2 * H:3 * H])
        o = jax.nn.sigmoid(g[:, 3 * H:4 * H])
        c = f * c + i * gg
        h = o * jnp.tanh(c)
        return h, c

    def step(carry, x_t):
        h0, c0, h1, c1 = carry
        h0, c0 = cell(x_t, h0, c0, p["w_ih0"], p["w_hh0"], p["b_ih0"], p["b_hh0"])
        h1, c1 = cell(h0, h1, c1, p["w_ih1"], p["w_hh1"], p["b_ih1"], p["b_hh1"])
        return (h0, c0, h1, c1), None

    z = jnp.zeros((B, H), jnp.float32)
    (h0, c0, h1, c1), _ = lax.scan(step, (z, z, z, z), jnp.transpose(t, (1, 0, 2)))
    return h1 @ p["w_fc"].T + p["b_fc"]


# ----------------------------- main --------------------------------------------
if __name__ == "__main__":
    key = jax.random.PRNGKey(0)
    k_param, k_x = jax.random.split(key)
    params = init_params(k_param)
    x = jax.random.normal(k_x, (BATCH, SEQ, INPUT_SIZE), jnp.float32)

    out = lstm_generator_forward(x, params)
    out = jax.block_until_ready(out)

    ref = reference_forward(x, params)
    assert out.shape == (BATCH, OUTPUT_SIZE)
    # bf16 matmul operands (f32 accumulation/state) => relaxed tolerance vs f32 ref.
    assert jnp.allclose(out, ref, atol=5e-2, rtol=5e-2), (out, ref)

    print("KERNEL_OK")
</pallas_src>

<mosaic_0001>
module attributes {stable_mosaic.version = 11 : i64} {
  func.func @lstm_gen_kernel(%arg0: memref<8x2x512xf32, #tpu.memory_space<vmem>>, %arg1: memref<128x512xbf16, #tpu.memory_space<vmem>>, %arg2: memref<256x512xbf16, #tpu.memory_space<vmem>>, %arg3: memref<2x512xf32, #tpu.memory_space<vmem>>, %arg4: memref<1x128xf32, #tpu.memory_space<vmem>>, %arg5: memref<1x1xf32, #tpu.memory_space<vmem>>, %arg6: memref<2x1xf32, #tpu.memory_space<vmem>>) attributes {dimension_semantics = [], scalar_prefetch = 0 : i64, scratch_operands = 0 : i64, tpu.core_type = #tpu.core_type<tc>} {
    %c0 = arith.constant 0 : index
    %c0_0 = arith.constant 0 : index
    %0 = vector.load %arg1[%c0, %c0_0] : memref<128x512xbf16, #tpu.memory_space<vmem>>, vector<128x512xbf16>
    %c0_1 = arith.constant 0 : index
    %c0_2 = arith.constant 0 : index
    %1 = vector.load %arg2[%c0_1, %c0_2] : memref<256x512xbf16, #tpu.memory_space<vmem>>, vector<256x512xbf16>
    %c0_3 = arith.constant 0 : index
    %c0_4 = arith.constant 0 : index
    %2 = vector.load %arg3[%c0_3, %c0_4] : memref<2x512xf32, #tpu.memory_space<vmem>>, vector<2x512xf32>
    %cst = arith.constant 0.000000e+00 : f32
    %3 = vector.broadcast %cst : f32 to vector<2x128xf32>
    %c0_i32 = arith.constant 0 : i32
    %4 = arith.index_cast %c0_i32 : i32 to index
    %c0_5 = arith.constant 0 : index
    %c0_6 = arith.constant 0 : index
    %5 = vector.load %arg0[%4, %c0_5, %c0_6] : memref<8x2x512xf32, #tpu.memory_space<vmem>>, vector<1x2x512xf32>
    %6 = vector.shape_cast %5 : vector<1x2x512xf32> to vector<2x512xf32>
    %7 = arith.truncf %3 : vector<2x128xf32> to vector<2x128xbf16>
    %cst_7 = arith.constant dense<0.000000e+00> : vector<2x512xf32>
    %8 = tpu.matmul %7, %0, %cst_7 {dimension_numbers = #tpu.dot_dimension_numbers<[1], [0], [0], [1], [0, 0, 1, 1], [], []>} : vector<2x128xbf16>, vector<128x512xbf16>, vector<2x512xf32> -> vector<2x512xf32>
    %9 = arith.addf %6, %8 : vector<2x512xf32>
    %10 = vector.extract_strided_slice %9 {offsets = [0, 0], sizes = [2, 384], strides = [1, 1]} : vector<2x512xf32> to vector<2x384xf32>
    %11 = arith.negf %10 : vector<2x384xf32>
    %12 = math.exp %11 : vector<2x384xf32>
    %cst_8 = arith.constant 1.000000e+00 : f32
    %13 = vector.broadcast %cst_8 : f32 to vector<2x384xf32>
    %14 = arith.addf %13, %12 : vector<2x384xf32>
    %15 = arith.divf %13, %14 : vector<2x384xf32>
    %16 = vector.extract_strided_slice %9 {offsets = [0, 384], sizes = [2, 128], strides = [1, 1]} : vector<2x512xf32> to vector<2x128xf32>
    %17 = math.tanh %16 : vector<2x128xf32>
    %18 = vector.extract_strided_slice %15 {offsets = [0, 0], sizes = [2, 128], strides = [1, 1]} : vector<2x384xf32> to vector<2x128xf32>
    %19 = vector.extract_strided_slice %15 {offsets = [0, 128], sizes = [2, 128], strides = [1, 1]} : vector<2x384xf32> to vector<2x128xf32>
    %20 = vector.extract_strided_slice %15 {offsets = [0, 256], sizes = [2, 128], strides = [1, 1]} : vector<2x384xf32> to vector<2x128xf32>
    %21 = arith.mulf %19, %3 : vector<2x128xf32>
    %22 = arith.mulf %18, %17 : vector<2x128xf32>
    %23 = arith.addf %21, %22 : vector<2x128xf32>
    %24 = math.tanh %23 : vector<2x128xf32>
    %25 = arith.mulf %20, %24 : vector<2x128xf32>
    %26 = tpu.concatenate %25, %3 in 1 : vector<2x128xf32>, vector<2x128xf32> -> vector<2x256xf32>
    %27 = arith.truncf %26 : vector<2x256xf32> to vector<2x256xbf16>
    %cst_9 = arith.constant dense<0.000000e+00> : vector<2x512xf32>
    %28 = tpu.matmul %27, %1, %cst_9 {dimension_numbers = #tpu.dot_dimension_numbers<[1], [0], [0], [1], [0, 0, 1, 1], [], []>} : vector<2x256xbf16>, vector<256x512xbf16>, vector<2x512xf32> -> vector<2x512xf32>
    %29 = arith.addf %2, %28 : vector<2x512xf32>
    %30 = vector.extract_strided_slice %29 {offsets = [0, 0], sizes = [2, 384], strides = [1, 1]} : vector<2x512xf32> to vector<2x384xf32>
    %31 = arith.negf %30 : vector<2x384xf32>
    %32 = math.exp %31 : vector<2x384xf32>
    %cst_10 = arith.constant 1.000000e+00 : f32
    %33 = vector.broadcast %cst_10 : f32 to vector<2x384xf32>
    %34 = arith.addf %33, %32 : vector<2x384xf32>
    %35 = arith.divf %33, %34 : vector<2x384xf32>
    %36 = vector.extract_strided_slice %29 {offsets = [0, 384], sizes = [2, 128], strides = [1, 1]} : vector<2x512xf32> to vector<2x128xf32>
    %37 = math.tanh %36 : vector<2x128xf32>
    %38 = vector.extract_strided_slice %35 {offsets = [0, 0], sizes = [2, 128], strides = [1, 1]} : vector<2x384xf32> to vector<2x128xf32>
    %39 = vector.extract_strided_slice %35 {offsets = [0, 128], sizes = [2, 128], strides = [1, 1]} : vector<2x384xf32> to vector<2x128xf32>
    %40 = vector.extract_strided_slice %35 {offsets = [0, 256], sizes = [2, 128], strides = [1, 1]} : vector<2x384xf32> to vector<2x128xf32>
    %41 = arith.mulf %39, %3 : vector<2x128xf32>
    %42 = arith.mulf %38, %37 : vector<2x128xf32>
    %43 = arith.addf %41, %42 : vector<2x128xf32>
    %44 = math.tanh %43 : vector<2x128xf32>
    %45 = arith.mulf %40, %44 : vector<2x128xf32>
    %c1_i32 = arith.constant 1 : i32
    %46 = arith.index_cast %c1_i32 : i32 to index
    %c0_11 = arith.constant 0 : index
    %c0_12 = arith.constant 0 : index
    %47 = vector.load %arg0[%46, %c0_11, %c0_12] : memref<8x2x512xf32, #tpu.memory_space<vmem>>, vector<1x2x512xf32>
    %48 = vector.shape_cast %47 : vector<1x2x512xf32> to vector<2x512xf32>
    %49 = arith.truncf %25 : vector<2x128xf32> to vector<2x128xbf16>
    %cst_13 = arith.constant dense<0.000000e+00> : vector<2x512xf32>
    %50 = tpu.matmul %49, %0, %cst_13 {dimension_numbers = #tpu.dot_dimension_numbers<[1], [0], [0], [1], [0, 0, 1, 1], [], []>} : vector<2x128xbf16>, vector<128x512xbf16>, vector<2x512xf32> -> vector<2x512xf32>
    %51 = arith.addf %48, %50 : vector<2x512xf32>
    %52 = vector.extract_strided_slice %51 {offsets = [0, 0], sizes = [2, 384], strides = [1, 1]} : vector<2x512xf32> to vector<2x384xf32>
    %53 = arith.negf %52 : vector<2x384xf32>
    %54 = math.exp %53 : vector<2x384xf32>
    %cst_14 = arith.constant 1.000000e+00 : f32
    %55 = vector.broadcast %cst_14 : f32 to vector<2x384xf32>
    %56 = arith.addf %55, %54 : vector<2x384xf32>
    %57 = arith.divf %55, %56 : vector<2x384xf32>
    %58 = vector.extract_strided_slice %51 {offsets = [0, 384], sizes = [2, 128], strides = [1, 1]} : vector<2x512xf32> to vector<2x128xf32>
    %59 = math.tanh %58 : vector<2x128xf32>
    %60 = vector.extract_strided_slice %57 {offsets = [0, 0], sizes = [2, 128], strides = [1, 1]} : vector<2x384xf32> to vector<2x128xf32>
    %61 = vector.extract_strided_slice %57 {offsets = [0, 128], sizes = [2, 128], strides = [1, 1]} : vector<2x384xf32> to vector<2x128xf32>
    %62 = vector.extract_strided_slice %57 {offsets = [0, 256], sizes = [2, 128], strides = [1, 1]} : vector<2x384xf32> to vector<2x128xf32>
    %63 = arith.mulf %61, %23 : vector<2x128xf32>
    %64 = arith.mulf %60, %59 : vector<2x128xf32>
    %65 = arith.addf %63, %64 : vector<2x128xf32>
    %66 = math.tanh %65 : vector<2x128xf32>
    %67 = arith.mulf %62, %66 : vector<2x128xf32>
    %68 = tpu.concatenate %67, %45 in 1 : vector<2x128xf32>, vector<2x128xf32> -> vector<2x256xf32>
    %69 = arith.truncf %68 : vector<2x256xf32> to vector<2x256xbf16>
    %cst_15 = arith.constant dense<0.000000e+00> : vector<2x512xf32>
    %70 = tpu.matmul %69, %1, %cst_15 {dimension_numbers = #tpu.dot_dimension_numbers<[1], [0], [0], [1], [0, 0, 1, 1], [], []>} : vector<2x256xbf16>, vector<256x512xbf16>, vector<2x512xf32> -> vector<2x512xf32>
    %71 = arith.addf %2, %70 : vector<2x512xf32>
    %72 = vector.extract_strided_slice %71 {offsets = [0, 0], sizes = [2, 384], strides = [1, 1]} : vector<2x512xf32> to vector<2x384xf32>
    %73 = arith.negf %72 : vector<2x384xf32>
    %74 = math.exp %73 : vector<2x384xf32>
    %cst_16 = arith.constant 1.000000e+00 : f32
    %75 = vector.broadcast %cst_16 : f32 to vector<2x384xf32>
    %76 = arith.addf %75, %74 : vector<2x384xf32>
    %77 = arith.divf %75, %76 : vector<2x384xf32>
    %78 = vector.extract_strided_slice %71 {offsets = [0, 384], sizes = [2, 128], strides = [1, 1]} : vector<2x512xf32> to vector<2x128xf32>
    %79 = math.tanh %78 : vector<2x128xf32>
    %80 = vector.extract_strided_slice %77 {offsets = [0, 0], sizes = [2, 128], strides = [1, 1]} : vector<2x384xf32> to vector<2x128xf32>
    %81 = vector.extract_strided_slice %77 {offsets = [0, 128], sizes = [2, 128], strides = [1, 1]} : vector<2x384xf32> to vector<2x128xf32>
    %82 = vector.extract_strided_slice %77 {offsets = [0, 256], sizes = [2, 128], strides = [1, 1]} : vector<2x384xf32> to vector<2x128xf32>
    %83 = arith.mulf %81, %43 : vector<2x128xf32>
    %84 = arith.mulf %80, %79 : vector<2x128xf32>
    %85 = arith.addf %83, %84 : vector<2x128xf32>
    %86 = math.tanh %85 : vector<2x128xf32>
    %87 = arith.mulf %82, %86 : vector<2x128xf32>
    %c2_i32 = arith.constant 2 : i32
    %88 = arith.index_cast %c2_i32 : i32 to index
    %c0_17 = arith.constant 0 : index
    %c0_18 = arith.constant 0 : index
    %89 = vector.load %arg0[%88, %c0_17, %c0_18] : memref<8x2x512xf32, #tpu.memory_space<vmem>>, vector<1x2x512xf32>
    %90 = vector.shape_cast %89 : vector<1x2x512xf32> to vector<2x512xf32>
    %91 = arith.truncf %67 : vector<2x128xf32> to vector<2x128xbf16>
    %cst_19 = arith.constant dense<0.000000e+00> : vector<2x512xf32>
    %92 = tpu.matmul %91, %0, %cst_19 {dimension_numbers = #tpu.dot_dimension_numbers<[1], [0], [0], [1], [0, 0, 1, 1], [], []>} : vector<2x128xbf16>, vector<128x512xbf16>, vector<2x512xf32> -> vector<2x512xf32>
    %93 = arith.addf %90, %92 : vector<2x512xf32>
    %94 = vector.extract_strided_slice %93 {offsets = [0, 0], sizes = [2, 384], strides = [1, 1]} : vector<2x512xf32> to vector<2x384xf32>
    %95 = arith.negf %94 : vector<2x384xf32>
    %96 = math.exp %95 : vector<2x384xf32>
    %cst_20 = arith.constant 1.000000e+00 : f32
    %97 = vector.broadcast %cst_20 : f32 to vector<2x384xf32>
    %98 = arith.addf %97, %96 : vector<2x384xf32>
    %99 = arith.divf %97, %98 : vector<2x384xf32>
    %100 = vector.extract_strided_slice %93 {offsets = [0, 384], sizes = [2, 128], strides = [1, 1]} : vector<2x512xf32> to vector<2x128xf32>
    %101 = math.tanh %100 : vector<2x128xf32>
    %102 = vector.extract_strided_slice %99 {offsets = [0, 0], sizes = [2, 128], strides = [1, 1]} : vector<2x384xf32> to vector<2x128xf32>
    %103 = vector.extract_strided_slice %99 {offsets = [0, 128], sizes = [2, 128], strides = [1, 1]} : vector<2x384xf32> to vector<2x128xf32>
    %104 = vector.extract_strided_slice %99 {offsets = [0, 256], sizes = [2, 128], strides = [1, 1]} : vector<2x384xf32> to vector<2x128xf32>
    %105 = arith.mulf %103, %65 : vector<2x128xf32>
    %106 = arith.mulf %102, %101 : vector<2x128xf32>
    %107 = arith.addf %105, %106 : vector<2x128xf32>
    %108 = math.tanh %107 : vector<2x128xf32>
    %109 = arith.mulf %104, %108 : vector<2x128xf32>
    %110 = tpu.concatenate %109, %87 in 1 : vector<2x128xf32>, vector<2x128xf32> -> vector<2x256xf32>
    %111 = arith.truncf %110 : vector<2x256xf32> to vector<2x256xbf16>
    %cst_21 = arith.constant dense<0.000000e+00> : vector<2x512xf32>
    %112 = tpu.matmul %111, %1, %cst_21 {dimension_numbers = #tpu.dot_dimension_numbers<[1], [0], [0], [1], [0, 0, 1, 1], [], []>} : vector<2x256xbf16>, vector<256x512xbf16>, vector<2x512xf32> -> vector<2x512xf32>
    %113 = arith.addf %2, %112 : vector<2x512xf32>
    %114 = vector.extract_strided_slice %113 {offsets = [0, 0], sizes = [2, 384], strides = [1, 1]} : vector<2x512xf32> to vector<2x384xf32>
    %115 = arith.negf %114 : vector<2x384xf32>
    %116 = math.exp %115 : vector<2x384xf32>
    %cst_22 = arith.constant 1.000000e+00 : f32
    %117 = vector.broadcast %cst_22 : f32 to vector<2x384xf32>
    %118 = arith.addf %117, %116 : vector<2x384xf32>
    %119 = arith.divf %117, %118 : vector<2x384xf32>
    %120 = vector.extract_strided_slice %113 {offsets = [0, 384], sizes = [2, 128], strides = [1, 1]} : vector<2x512xf32> to vector<2x128xf32>
    %121 = math.tanh %120 : vector<2x128xf32>
    %122 = vector.extract_strided_slice %119 {offsets = [0, 0], sizes = [2, 128], strides = [1, 1]} : vector<2x384xf32> to vector<2x128xf32>
    %123 = vector.extract_strided_slice %119 {offsets = [0, 128], sizes = [2, 128], strides = [1, 1]} : vector<2x384xf32> to vector<2x128xf32>
    %124 = vector.extract_strided_slice %119 {offsets = [0, 256], sizes = [2, 128], strides = [1, 1]} : vector<2x384xf32> to vector<2x128xf32>
    %125 = arith.mulf %123, %85 : vector<2x128xf32>
    %126 = arith.mulf %122, %121 : vector<2x128xf32>
    %127 = arith.addf %125, %126 : vector<2x128xf32>
    %128 = math.tanh %127 : vector<2x128xf32>
    %129 = arith.mulf %124, %128 : vector<2x128xf32>
    %c3_i32 = arith.constant 3 : i32
    %130 = arith.index_cast %c3_i32 : i32 to index
    %c0_23 = arith.constant 0 : index
    %c0_24 = arith.constant 0 : index
    %131 = vector.load %arg0[%130, %c0_23, %c0_24] : memref<8x2x512xf32, #tpu.memory_space<vmem>>, vector<1x2x512xf32>
    %132 = vector.shape_cast %131 : vector<1x2x512xf32> to vector<2x512xf32>
    %133 = arith.truncf %109 : vector<2x128xf32> to vector<2x128xbf16>
    %cst_25 = arith.constant dense<0.000000e+00> : vector<2x512xf32>
    %134 = tpu.matmul %133, %0, %cst_25 {dimension_numbers = #tpu.dot_dimension_numbers<[1], [0], [0], [1], [0, 0, 1, 1], [], []>} : vector<2x128xbf16>, vector<128x512xbf16>, vector<2x512xf32> -> vector<2x512xf32>
    %135 = arith.addf %132, %134 : vector<2x512xf32>
    %136 = vector.extract_strided_slice %135 {offsets = [0, 0], sizes = [2, 384], strides = [1, 1]} : vector<2x512xf32> to vector<2x384xf32>
    %137 = arith.negf %136 : vector<2x384xf32>
    %138 = math.exp %137 : vector<2x384xf32>
    %cst_26 = arith.constant 1.000000e+00 : f32
    %139 = vector.broadcast %cst_26 : f32 to vector<2x384xf32>
    %140 = arith.addf %139, %138 : vector<2x384xf32>
    %141 = arith.divf %139, %140 : vector<2x384xf32>
    %142 = vector.extract_strided_slice %135 {offsets = [0, 384], sizes = [2, 128], strides = [1, 1]} : vector<2x512xf32> to vector<2x128xf32>
    %143 = math.tanh %142 : vector<2x128xf32>
    %144 = vector.extract_strided_slice %141 {offsets = [0, 0], sizes = [2, 128], strides = [1, 1]} : vector<2x384xf32> to vector<2x128xf32>
    %145 = vector.extract_strided_slice %141 {offsets = [0, 128], sizes = [2, 128], strides = [1, 1]} : vector<2x384xf32> to vector<2x128xf32>
    %146 = vector.extract_strided_slice %141 {offsets = [0, 256], sizes = [2, 128], strides = [1, 1]} : vector<2x384xf32> to vector<2x128xf32>
    %147 = arith.mulf %145, %107 : vector<2x128xf32>
    %148 = arith.mulf %144, %143 : vector<2x128xf32>
    %149 = arith.addf %147, %148 : vector<2x128xf32>
    %150 = math.tanh %149 : vector<2x128xf32>
    %151 = arith.mulf %146, %150 : vector<2x128xf32>
    %152 = tpu.concatenate %151, %129 in 1 : vector<2x128xf32>, vector<2x128xf32> -> vector<2x256xf32>
    %153 = arith.truncf %152 : vector<2x256xf32> to vector<2x256xbf16>
    %cst_27 = arith.constant dense<0.000000e+00> : vector<2x512xf32>
    %154 = tpu.matmul %153, %1, %cst_27 {dimension_numbers = #tpu.dot_dimension_numbers<[1], [0], [0], [1], [0, 0, 1, 1], [], []>} : vector<2x256xbf16>, vector<256x512xbf16>, vector<2x512xf32> -> vector<2x512xf32>
    %155 = arith.addf %2, %154 : vector<2x512xf32>
    %156 = vector.extract_strided_slice %155 {offsets = [0, 0], sizes = [2, 384], strides = [1, 1]} : vector<2x512xf32> to vector<2x384xf32>
    %157 = arith.negf %156 : vector<2x384xf32>
    %158 = math.exp %157 : vector<2x384xf32>
    %cst_28 = arith.constant 1.000000e+00 : f32
    %159 = vector.broadcast %cst_28 : f32 to vector<2x384xf32>
    %160 = arith.addf %159, %158 : vector<2x384xf32>
    %161 = arith.divf %159, %160 : vector<2x384xf32>
    %162 = vector.extract_strided_slice %155 {offsets = [0, 384], sizes = [2, 128], strides = [1, 1]} : vector<2x512xf32> to vector<2x128xf32>
    %163 = math.tanh %162 : vector<2x128xf32>
    %164 = vector.extract_strided_slice %161 {offsets = [0, 0], sizes = [2, 128], strides = [1, 1]} : vector<2x384xf32> to vector<2x128xf32>
    %165 = vector.extract_strided_slice %161 {offsets = [0, 128], sizes = [2, 128], strides = [1, 1]} : vector<2x384xf32> to vector<2x128xf32>
    %166 = vector.extract_strided_slice %161 {offsets = [0, 256], sizes = [2, 128], strides = [1, 1]} : vector<2x384xf32> to vector<2x128xf32>
    %167 = arith.mulf %165, %127 : vector<2x128xf32>
    %168 = arith.mulf %164, %163 : vector<2x128xf32>
    %169 = arith.addf %167, %168 : vector<2x128xf32>
    %170 = math.tanh %169 : vector<2x128xf32>
    %171 = arith.mulf %166, %170 : vector<2x128xf32>
    %c4_i32 = arith.constant 4 : i32
    %172 = arith.index_cast %c4_i32 : i32 to index
    %c0_29 = arith.constant 0 : index
    %c0_30 = arith.constant 0 : index
    %173 = vector.load %arg0[%172, %c0_29, %c0_30] : memref<8x2x512xf32, #tpu.memory_space<vmem>>, vector<1x2x512xf32>
    %174 = vector.shape_cast %173 : vector<1x2x512xf32> to vector<2x512xf32>
    %175 = arith.truncf %151 : vector<2x128xf32> to vector<2x128xbf16>
    %cst_31 = arith.constant dense<0.000000e+00> : vector<2x512xf32>
    %176 = tpu.matmul %175, %0, %cst_31 {dimension_numbers = #tpu.dot_dimension_numbers<[1], [0], [0], [1], [0, 0, 1, 1], [], []>} : vector<2x128xbf16>, vector<128x512xbf16>, vector<2x512xf32> -> vector<2x512xf32>
    %177 = arith.addf %174, %176 : vector<2x512xf32>
    %178 = vector.extract_strided_slice %177 {offsets = [0, 0], sizes = [2, 384], strides = [1, 1]} : vector<2x512xf32> to vector<2x384xf32>
    %179 = arith.negf %178 : vector<2x384xf32>
    %180 = math.exp %179 : vector<2x384xf32>
    %cst_32 = arith.constant 1.000000e+00 : f32
    %181 = vector.broadcast %cst_32 : f32 to vector<2x384xf32>
    %182 = arith.addf %181, %180 : vector<2x384xf32>
    %183 = arith.divf %181, %182 : vector<2x384xf32>
    %184 = vector.extract_strided_slice %177 {offsets = [0, 384], sizes = [2, 128], strides = [1, 1]} : vector<2x512xf32> to vector<2x128xf32>
    %185 = math.tanh %184 : vector<2x128xf32>
    %186 = vector.extract_strided_slice %183 {offsets = [0, 0], sizes = [2, 128], strides = [1, 1]} : vector<2x384xf32> to vector<2x128xf32>
    %187 = vector.extract_strided_slice %183 {offsets = [0, 128], sizes = [2, 128], strides = [1, 1]} : vector<2x384xf32> to vector<2x128xf32>
    %188 = vector.extract_strided_slice %183 {offsets = [0, 256], sizes = [2, 128], strides = [1, 1]} : vector<2x384xf32> to vector<2x128xf32>
    %189 = arith.mulf %187, %149 : vector<2x128xf32>
    %190 = arith.mulf %186, %185 : vector<2x128xf32>
    %191 = arith.addf %189, %190 : vector<2x128xf32>
    %192 = math.tanh %191 : vector<2x128xf32>
    %193 = arith.mulf %188, %192 : vector<2x128xf32>
    %194 = tpu.concatenate %193, %171 in 1 : vector<2x128xf32>, vector<2x128xf32> -> vector<2x256xf32>
    %195 = arith.truncf %194 : vector<2x256xf32> to vector<2x256xbf16>
    %cst_33 = arith.constant dense<0.000000e+00> : vector<2x512xf32>
    %196 = tpu.matmul %195, %1, %cst_33 {dimension_numbers = #tpu.dot_dimension_numbers<[1], [0], [0], [1], [0, 0, 1, 1], [], []>} : vector<2x256xbf16>, vector<256x512xbf16>, vector<2x512xf32> -> vector<2x512xf32>
    %197 = arith.addf %2, %196 : vector<2x512xf32>
    %198 = vector.extract_strided_slice %197 {offsets = [0, 0], sizes = [2, 384], strides = [1, 1]} : vector<2x512xf32> to vector<2x384xf32>
    %199 = arith.negf %198 : vector<2x384xf32>
    %200 = math.exp %199 : vector<2x384xf32>
    %cst_34 = arith.constant 1.000000e+00 : f32
    %201 = vector.broadcast %cst_34 : f32 to vector<2x384xf32>
    %202 = arith.addf %201, %200 : vector<2x384xf32>
    %203 = arith.divf %201, %202 : vector<2x384xf32>
    %204 = vector.extract_strided_slice %197 {offsets = [0, 384], sizes = [2, 128], strides = [1, 1]} : vector<2x512xf32> to vector<2x128xf32>
    %205 = math.tanh %204 : vector<2x128xf32>
    %206 = vector.extract_strided_slice %203 {offsets = [0, 0], sizes = [2, 128], strides = [1, 1]} : vector<2x384xf32> to vector<2x128xf32>
    %207 = vector.extract_strided_slice %203 {offsets = [0, 128], sizes = [2, 128], strides = [1, 1]} : vector<2x384xf32> to vector<2x128xf32>
    %208 = vector.extract_strided_slice %203 {offsets = [0, 256], sizes = [2, 128], strides = [1, 1]} : vector<2x384xf32> to vector<2x128xf32>
    %209 = arith.mulf %207, %169 : vector<2x128xf32>
    %210 = arith.mulf %206, %205 : vector<2x128xf32>
    %211 = arith.addf %209, %210 : vector<2x128xf32>
    %212 = math.tanh %211 : vector<2x128xf32>
    %213 = arith.mulf %208, %212 : vector<2x128xf32>
    %c5_i32 = arith.constant 5 : i32
    %214 = arith.index_cast %c5_i32 : i32 to index
    %c0_35 = arith.constant 0 : index
    %c0_36 = arith.constant 0 : index
    %215 = vector.load %arg0[%214, %c0_35, %c0_36] : memref<8x2x512xf32, #tpu.memory_space<vmem>>, vector<1x2x512xf32>
    %216 = vector.shape_cast %215 : vector<1x2x512xf32> to vector<2x512xf32>
    %217 = arith.truncf %193 : vector<2x128xf32> to vector<2x128xbf16>
    %cst_37 = arith.constant dense<0.000000e+00> : vector<2x512xf32>
    %218 = tpu.matmul %217, %0, %cst_37 {dimension_numbers = #tpu.dot_dimension_numbers<[1], [0], [0], [1], [0, 0, 1, 1], [], []>} : vector<2x128xbf16>, vector<128x512xbf16>, vector<2x512xf32> -> vector<2x512xf32>
    %219 = arith.addf %216, %218 : vector<2x512xf32>
    %220 = vector.extract_strided_slice %219 {offsets = [0, 0], sizes = [2, 384], strides = [1, 1]} : vector<2x512xf32> to vector<2x384xf32>
    %221 = arith.negf %220 : vector<2x384xf32>
    %222 = math.exp %221 : vector<2x384xf32>
    %cst_38 = arith.constant 1.000000e+00 : f32
    %223 = vector.broadcast %cst_38 : f32 to vector<2x384xf32>
    %224 = arith.addf %223, %222 : vector<2x384xf32>
    %225 = arith.divf %223, %224 : vector<2x384xf32>
    %226 = vector.extract_strided_slice %219 {offsets = [0, 384], sizes = [2, 128], strides = [1, 1]} : vector<2x512xf32> to vector<2x128xf32>
    %227 = math.tanh %226 : vector<2x128xf32>
    %228 = vector.extract_strided_slice %225 {offsets = [0, 0], sizes = [2, 128], strides = [1, 1]} : vector<2x384xf32> to vector<2x128xf32>
    %229 = vector.extract_strided_slice %225 {offsets = [0, 128], sizes = [2, 128], strides = [1, 1]} : vector<2x384xf32> to vector<2x128xf32>
    %230 = vector.extract_strided_slice %225 {offsets = [0, 256], sizes = [2, 128], strides = [1, 1]} : vector<2x384xf32> to vector<2x128xf32>
    %231 = arith.mulf %229, %191 : vector<2x128xf32>
    %232 = arith.mulf %228, %227 : vector<2x128xf32>
    %233 = arith.addf %231, %232 : vector<2x128xf32>
    %234 = math.tanh %233 : vector<2x128xf32>
    %235 = arith.mulf %230, %234 : vector<2x128xf32>
    %236 = tpu.concatenate %235, %213 in 1 : vector<2x128xf32>, vector<2x128xf32> -> vector<2x256xf32>
    %237 = arith.truncf %236 : vector<2x256xf32> to vector<2x256xbf16>
    %cst_39 = arith.constant dense<0.000000e+00> : vector<2x512xf32>
    %238 = tpu.matmul %237, %1, %cst_39 {dimension_numbers = #tpu.dot_dimension_numbers<[1], [0], [0], [1], [0, 0, 1, 1], [], []>} : vector<2x256xbf16>, vector<256x512xbf16>, vector<2x512xf32> -> vector<2x512xf32>
    %239 = arith.addf %2, %238 : vector<2x512xf32>
    %240 = vector.extract_strided_slice %239 {offsets = [0, 0], sizes = [2, 384], strides = [1, 1]} : vector<2x512xf32> to vector<2x384xf32>
    %241 = arith.negf %240 : vector<2x384xf32>
    %242 = math.exp %241 : vector<2x384xf32>
    %cst_40 = arith.constant 1.000000e+00 : f32
    %243 = vector.broadcast %cst_40 : f32 to vector<2x384xf32>
    %244 = arith.addf %243, %242 : vector<2x384xf32>
    %245 = arith.divf %243, %244 : vector<2x384xf32>
    %246 = vector.extract_strided_slice %239 {offsets = [0, 384], sizes = [2, 128], strides = [1, 1]} : vector<2x512xf32> to vector<2x128xf32>
    %247 = math.tanh %246 : vector<2x128xf32>
    %248 = vector.extract_strided_slice %245 {offsets = [0, 0], sizes = [2, 128], strides = [1, 1]} : vector<2x384xf32> to vector<2x128xf32>
    %249 = vector.extract_strided_slice %245 {offsets = [0, 128], sizes = [2, 128], strides = [1, 1]} : vector<2x384xf32> to vector<2x128xf32>
    %250 = vector.extract_strided_slice %245 {offsets = [0, 256], sizes = [2, 128], strides = [1, 1]} : vector<2x384xf32> to vector<2x128xf32>
    %251 = arith.mulf %249, %211 : vector<2x128xf32>
    %252 = arith.mulf %248, %247 : vector<2x128xf32>
    %253 = arith.addf %251, %252 : vector<2x128xf32>
    %254 = math.tanh %253 : vector<2x128xf32>
    %255 = arith.mulf %250, %254 : vector<2x128xf32>
    %c6_i32 = arith.constant 6 : i32
    %256 = arith.index_cast %c6_i32 : i32 to index
    %c0_41 = arith.constant 0 : index
    %c0_42 = arith.constant 0 : index
    %257 = vector.load %arg0[%256, %c0_41, %c0_42] : memref<8x2x512xf32, #tpu.memory_space<vmem>>, vector<1x2x512xf32>
    %258 = vector.shape_cast %257 : vector<1x2x512xf32> to vector<2x512xf32>
    %259 = arith.truncf %235 : vector<2x128xf32> to vector<2x128xbf16>
    %cst_43 = arith.constant dense<0.000000e+00> : vector<2x512xf32>
    %260 = tpu.matmul %259, %0, %cst_43 {dimension_numbers = #tpu.dot_dimension_numbers<[1], [0], [0], [1], [0, 0, 1, 1], [], []>} : vector<2x128xbf16>, vector<128x512xbf16>, vector<2x512xf32> -> vector<2x512xf32>
    %261 = arith.addf %258, %260 : vector<2x512xf32>
    %262 = vector.extract_strided_slice %261 {offsets = [0, 0], sizes = [2, 384], strides = [1, 1]} : vector<2x512xf32> to vector<2x384xf32>
    %263 = arith.negf %262 : vector<2x384xf32>
    %264 = math.exp %263 : vector<2x384xf32>
    %cst_44 = arith.constant 1.000000e+00 : f32
    %265 = vector.broadcast %cst_44 : f32 to vector<2x384xf32>
    %266 = arith.addf %265, %264 : vector<2x384xf32>
    %267 = arith.divf %265, %266 : vector<2x384xf32>
    %268 = vector.extract_strided_slice %261 {offsets = [0, 384], sizes = [2, 128], strides = [1, 1]} : vector<2x512xf32> to vector<2x128xf32>
    %269 = math.tanh %268 : vector<2x128xf32>
    %270 = vector.extract_strided_slice %267 {offsets = [0, 0], sizes = [2, 128], strides = [1, 1]} : vector<2x384xf32> to vector<2x128xf32>
    %271 = vector.extract_strided_slice %267 {offsets = [0, 128], sizes = [2, 128], strides = [1, 1]} : vector<2x384xf32> to vector<2x128xf32>
    %272 = vector.extract_strided_slice %267 {offsets = [0, 256], sizes = [2, 128], strides = [1, 1]} : vector<2x384xf32> to vector<2x128xf32>
    %273 = arith.mulf %271, %233 : vector<2x128xf32>
    %274 = arith.mulf %270, %269 : vector<2x128xf32>
    %275 = arith.addf %273, %274 : vector<2x128xf32>
    %276 = math.tanh %275 : vector<2x128xf32>
    %277 = arith.mulf %272, %276 : vector<2x128xf32>
    %278 = tpu.concatenate %277, %255 in 1 : vector<2x128xf32>, vector<2x128xf32> -> vector<2x256xf32>
    %279 = arith.truncf %278 : vector<2x256xf32> to vector<2x256xbf16>
    %cst_45 = arith.constant dense<0.000000e+00> : vector<2x512xf32>
    %280 = tpu.matmul %279, %1, %cst_45 {dimension_numbers = #tpu.dot_dimension_numbers<[1], [0], [0], [1], [0, 0, 1, 1], [], []>} : vector<2x256xbf16>, vector<256x512xbf16>, vector<2x512xf32> -> vector<2x512xf32>
    %281 = arith.addf %2, %280 : vector<2x512xf32>
    %282 = vector.extract_strided_slice %281 {offsets = [0, 0], sizes = [2, 384], strides = [1, 1]} : vector<2x512xf32> to vector<2x384xf32>
    %283 = arith.negf %282 : vector<2x384xf32>
    %284 = math.exp %283 : vector<2x384xf32>
    %cst_46 = arith.constant 1.000000e+00 : f32
    %285 = vector.broadcast %cst_46 : f32 to vector<2x384xf32>
    %286 = arith.addf %285, %284 : vector<2x384xf32>
    %287 = arith.divf %285, %286 : vector<2x384xf32>
    %288 = vector.extract_strided_slice %281 {offsets = [0, 384], sizes = [2, 128], strides = [1, 1]} : vector<2x512xf32> to vector<2x128xf32>
    %289 = math.tanh %288 : vector<2x128xf32>
    %290 = vector.extract_strided_slice %287 {offsets = [0, 0], sizes = [2, 128], strides = [1, 1]} : vector<2x384xf32> to vector<2x128xf32>
    %291 = vector.extract_strided_slice %287 {offsets = [0, 128], sizes = [2, 128], strides = [1, 1]} : vector<2x384xf32> to vector<2x128xf32>
    %292 = vector.extract_strided_slice %287 {offsets = [0, 256], sizes = [2, 128], strides = [1, 1]} : vector<2x384xf32> to vector<2x128xf32>
    %293 = arith.mulf %291, %253 : vector<2x128xf32>
    %294 = arith.mulf %290, %289 : vector<2x128xf32>
    %295 = arith.addf %293, %294 : vector<2x128xf32>
    %296 = math.tanh %295 : vector<2x128xf32>
    %297 = arith.mulf %292, %296 : vector<2x128xf32>
    %c7_i32 = arith.constant 7 : i32
    %298 = arith.index_cast %c7_i32 : i32 to index
    %c0_47 = arith.constant 0 : index
    %c0_48 = arith.constant 0 : index
    %299 = vector.load %arg0[%298, %c0_47, %c0_48] : memref<8x2x512xf32, #tpu.memory_space<vmem>>, vector<1x2x512xf32>
    %300 = vector.shape_cast %299 : vector<1x2x512xf32> to vector<2x512xf32>
    %301 = arith.truncf %277 : vector<2x128xf32> to vector<2x128xbf16>
    %cst_49 = arith.constant dense<0.000000e+00> : vector<2x512xf32>
    %302 = tpu.matmul %301, %0, %cst_49 {dimension_numbers = #tpu.dot_dimension_numbers<[1], [0], [0], [1], [0, 0, 1, 1], [], []>} : vector<2x128xbf16>, vector<128x512xbf16>, vector<2x512xf32> -> vector<2x512xf32>
    %303 = arith.addf %300, %302 : vector<2x512xf32>
    %304 = vector.extract_strided_slice %303 {offsets = [0, 0], sizes = [2, 384], strides = [1, 1]} : vector<2x512xf32> to vector<2x384xf32>
    %305 = arith.negf %304 : vector<2x384xf32>
    %306 = math.exp %305 : vector<2x384xf32>
    %cst_50 = arith.constant 1.000000e+00 : f32
    %307 = vector.broadcast %cst_50 : f32 to vector<2x384xf32>
    %308 = arith.addf %307, %306 : vector<2x384xf32>
    %309 = arith.divf %307, %308 : vector<2x384xf32>
    %310 = vector.extract_strided_slice %303 {offsets = [0, 384], sizes = [2, 128], strides = [1, 1]} : vector<2x512xf32> to vector<2x128xf32>
    %311 = math.tanh %310 : vector<2x128xf32>
    %312 = vector.extract_strided_slice %309 {offsets = [0, 0], sizes = [2, 128], strides = [1, 1]} : vector<2x384xf32> to vector<2x128xf32>
    %313 = vector.extract_strided_slice %309 {offsets = [0, 128], sizes = [2, 128], strides = [1, 1]} : vector<2x384xf32> to vector<2x128xf32>
    %314 = vector.extract_strided_slice %309 {offsets = [0, 256], sizes = [2, 128], strides = [1, 1]} : vector<2x384xf32> to vector<2x128xf32>
    %315 = arith.mulf %313, %275 : vector<2x128xf32>
    %316 = arith.mulf %312, %311 : vector<2x128xf32>
    %317 = arith.addf %315, %316 : vector<2x128xf32>
    %318 = math.tanh %317 : vector<2x128xf32>
    %319 = arith.mulf %314, %318 : vector<2x128xf32>
    %320 = tpu.concatenate %319, %297 in 1 : vector<2x128xf32>, vector<2x128xf32> -> vector<2x256xf32>
    %321 = arith.truncf %320 : vector<2x256xf32> to vector<2x256xbf16>
    %cst_51 = arith.constant dense<0.000000e+00> : vector<2x512xf32>
    %322 = tpu.matmul %321, %1, %cst_51 {dimension_numbers = #tpu.dot_dimension_numbers<[1], [0], [0], [1], [0, 0, 1, 1], [], []>} : vector<2x256xbf16>, vector<256x512xbf16>, vector<2x512xf32> -> vector<2x512xf32>
    %323 = arith.addf %2, %322 : vector<2x512xf32>
    %324 = vector.extract_strided_slice %323 {offsets = [0, 0], sizes = [2, 384], strides = [1, 1]} : vector<2x512xf32> to vector<2x384xf32>
    %325 = arith.negf %324 : vector<2x384xf32>
    %326 = math.exp %325 : vector<2x384xf32>
    %cst_52 = arith.constant 1.000000e+00 : f32
    %327 = vector.broadcast %cst_52 : f32 to vector<2x384xf32>
    %328 = arith.addf %327, %326 : vector<2x384xf32>
    %329 = arith.divf %327, %328 : vector<2x384xf32>
    %330 = vector.extract_strided_slice %323 {offsets = [0, 384], sizes = [2, 128], strides = [1, 1]} : vector<2x512xf32> to vector<2x128xf32>
    %331 = math.tanh %330 : vector<2x128xf32>
    %332 = vector.extract_strided_slice %329 {offsets = [0, 0], sizes = [2, 128], strides = [1, 1]} : vector<2x384xf32> to vector<2x128xf32>
    %333 = vector.extract_strided_slice %329 {offsets = [0, 128], sizes = [2, 128], strides = [1, 1]} : vector<2x384xf32> to vector<2x128xf32>
    %334 = vector.extract_strided_slice %329 {offsets = [0, 256], sizes = [2, 128], strides = [1, 1]} : vector<2x384xf32> to vector<2x128xf32>
    %335 = arith.mulf %333, %295 : vector<2x128xf32>
    %336 = arith.mulf %332, %331 : vector<2x128xf32>
    %337 = arith.addf %335, %336 : vector<2x128xf32>
    %338 = math.tanh %337 : vector<2x128xf32>
    %339 = arith.mulf %334, %338 : vector<2x128xf32>
    %c8_i32 = arith.constant 8 : i32
    %c0_53 = arith.constant 0 : index
    %c0_54 = arith.constant 0 : index
    %340 = vector.load %arg4[%c0_53, %c0_54] : memref<1x128xf32, #tpu.memory_space<vmem>>, vector<1x128xf32>
    %341 = vector.broadcast %340 : vector<1x128xf32> to vector<2x128xf32>
    %342 = arith.mulf %339, %341 : vector<2x128xf32>
    %cst_55 = arith.constant dense<0.000000e+00> : vector<2xf32>
    %343 = vector.multi_reduction <add>, %342, %cst_55 [1] : vector<2x128xf32> to vector<2xf32>
    %344 = vector.shape_cast %343 : vector<2xf32> to vector<2x1xf32>
    %c0_56 = arith.constant 0 : index
    %c0_57 = arith.constant 0 : index
    %345 = vector.load %arg5[%c0_56, %c0_57] : memref<1x1xf32, #tpu.memory_space<vmem>>, vector<1x1xf32>
    %346 = vector.broadcast %345 : vector<1x1xf32> to vector<2x1xf32>
    %347 = arith.addf %344, %346 : vector<2x1xf32>
    %c0_58 = arith.constant 0 : index
    %c0_59 = arith.constant 0 : index
    %348 = vector.load %arg6[%c0_58, %c0_59] : memref<2x1xf32, #tpu.memory_space<vmem>>, vector<2x1xf32>
    tpu.vector_store %arg6[%c0_58, %c0_59], %347 {strides = array<i32>} : memref<2x1xf32, #tpu.memory_space<vmem>>, vector<2x1xf32>,
    return
  }
}

</mosaic_0001>

<bundles_post_ra>
// kernel: lstm_generator_forward.1
= control target key start
LH: loop header
LB: loop body
LE: loop exit
PB: predicated region body
PF: predicated region fallthrough
CT: control target
= control target key end

     0   :  { %v5309_v1 = vmov 0   ;;  %vm2642_vm0 = vcmask 1041408   ;;  %vm2654_vm1 = vcmask 1024   ;;  %s5302_s1 = inlined_call_operand.vmem [shape: bf16[128,512], index: 1, kind: input, shape index: {}]   ;;  %s5303_s2 = inlined_call_operand.vmem [shape: bf16[256,512], index: 2, kind: input, shape index: {}]   ;;  %s5304_s0 = inlined_call_operand.vmem [shape: f32[8,2,512], index: 0, kind: input, shape index: {}]   ;;  %s5305_s3 = inlined_call_operand.vmem [shape: f32[2,512], index: 3, kind: input, shape index: {}]   ;;  %s5306_s5 = inlined_call_operand.<no memory space> [shape: f32[1,1], index: 5, kind: input, shape index: {}]   ;;  %s5307_s4 = inlined_call_operand.vmem [shape: f32[1,128], index: 4, kind: input, shape index: {}]   ;;  %s5308_s6 = inlined_call_operand.vmem [shape: f32[2,1], index: 6, kind: output, shape index: {}]  }
   0x1   :  { %v3266_v0 = vld [vmem:[%s5302_s1 + $0xe4] ss:$16 sps:$4 sm:$0xff]   ;;  %316 = vmatprep.mubr.bf16.mxu0 %v5309_v1  ;;  %357 = vmatprep.mubr.bf16.mxu1 %v5309_v1  ;;  %v3273_v2 = vld [vmem:[%s5302_s1 + $0xec] ss:$16 sps:$4 sm:$0xff]   ;;  %v3279_v3 = vld [vmem:[%s5302_s1 + $0xe0] ss:$16 sps:$4 sm:$0xff]  }
   0x2   :  { %5550 = vst [vmem:[#allocation3_spill] sm:$0xff] %v3266_v0  ;;  %5551 = vst [vmem:[#allocation4_spill] sm:$0xff] %v3273_v2  ;;  %284 = vmatprep.subr.bf16.mxu0 %v3266_v0  ;;  %v3284_v4 = vld [vmem:[%s5302_s1 + $0xe8] ss:$16 sps:$4 sm:$0xff]   ;;  %325 = vmatprep.subr.bf16.mxu1 %v3273_v2  ;;  %v3290_v5 = vld [vmem:[%s5302_s1 + $0xc4] ss:$16 sps:$4 sm:$0xff]  }
   0x3   :  { %285 = vmatpush1.bf16.msra.mxu0 %v3279_v3  ;;  %326 = vmatpush1.bf16.msra.mxu1 %v3284_v4  ;;  %v3297_v6 = vld [vmem:[%s5302_s1 + $0xcc] ss:$16 sps:$4 sm:$0xff]   ;;  %v3302_v7 = vld [vmem:[%s5302_s1 + $0xc0] ss:$16 sps:$4 sm:$0xff]   ;;  %v3308_v8 = vld [vmem:[%s5302_s1 + $0xc8] ss:$16 sps:$4 sm:$0xff]  }
   0x4   :  { %286 = vmatprep.subr.bf16.mxu0 %v3290_v5  ;;  %327 = vmatprep.subr.bf16.mxu1 %v3297_v6  ;;  %v3314_v9 = vld [vmem:[%s5302_s1 + $0xa4] ss:$16 sps:$4 sm:$0xff]   ;;  %v3319_v10 = vld [vmem:[%s5302_s1 + $0xac] ss:$16 sps:$4 sm:$0xff]   ;;  %v3324_v11 = vld [vmem:[%s5302_s1 + $0xa0] ss:$16 sps:$4 sm:$0xff]  }
   0x5   :  { %v3329_v12 = vld [vmem:[%s5302_s1 + $0xa8] ss:$16 sps:$4 sm:$0xff]   ;;  %v3336_v13 = vld [vmem:[%s5302_s1 + $0x84] ss:$16 sps:$4 sm:$0xff]   ;;  %v3343_v14 = vld [vmem:[%s5302_s1 + $0x8c] ss:$16 sps:$4 sm:$0xff]  }
   0x6   :  { %v3348_v15 = vld [vmem:[%s5302_s1 + $0x80] ss:$16 sps:$4 sm:$0xff]   ;;  %v3355_v16 = vld [vmem:[%s5302_s1 + $0x88] ss:$16 sps:$4 sm:$0xff]   ;;  %v3360_v17 = vld [vmem:[%s5302_s1 + $0x64] ss:$16 sps:$4 sm:$0xff]  }
   0x7   :  { %287 = vmatpush1.bf16.msra.mxu0 %v3302_v7  ;;  %328 = vmatpush1.bf16.msra.mxu1 %v3308_v8  ;;  %v3367_v18 = vld [vmem:[%s5302_s1 + $0x6c] ss:$16 sps:$4 sm:$0xff]   ;;  %v3372_v19 = vld [vmem:[%s5302_s1 + $0x60] ss:$16 sps:$4 sm:$0xff]   ;;  %v3377_v20 = vld [vmem:[%s5302_s1 + $0x68] ss:$16 sps:$4 sm:$0xff]  }
   0x8   :  { %288 = vmatprep.subr.bf16.mxu0 %v3314_v9  ;;  %329 = vmatprep.subr.bf16.mxu1 %v3319_v10  ;;  %v3384_v21 = vld [vmem:[%s5302_s1 + $0x44] ss:$16 sps:$4 sm:$0xff]   ;;  %v3391_v22 = vld [vmem:[%s5302_s1 + $0x4c] ss:$16 sps:$4 sm:$0xff]   ;;  %v3398_v23 = vld [vmem:[%s5302_s1 + $0x40] ss:$16 sps:$4 sm:$0xff]  }
   0x9   :  { %v3403_v24 = vld [vmem:[%s5302_s1 + $0x48] ss:$16 sps:$4 sm:$0xff]   ;;  %v3410_v25 = vld [vmem:[%s5302_s1 + $0x24] ss:$16 sps:$4 sm:$0xff]   ;;  %v3415_v26 = vld [vmem:[%s5302_s1 + $0x2c] ss:$16 sps:$4 sm:$0xff]  }
   0xa   :  { %v3422_v27 = vld [vmem:[%s5302_s1 + $0x20] ss:$16 sps:$4 sm:$0xff]   ;;  %v3427_v28 = vld [vmem:[%s5302_s1 + $0x28] ss:$16 sps:$4 sm:$0xff]   ;;  %v3434_v29 = vld [vmem:[%s5302_s1 + $0x4] ss:$16 sps:$4 sm:$0xff]  }
   0xb   :  { %289 = vmatpush1.bf16.msra.mxu0 %v3324_v11  ;;  %330 = vmatpush1.bf16.msra.mxu1 %v3329_v12  ;;  %v3439_v30 = vld [vmem:[%s5302_s1 + $0xc] ss:$16 sps:$4 sm:$0xff]   ;;  %v3446_v31 = vld [vmem:[%s5302_s1] ss:$16 sps:$4 sm:$0xff]   ;;  %v3451_v32 = vld [vmem:[%s5302_s1 + $0x8] ss:$16 sps:$4 sm:$0xff]  }
   0xc   :  { %290 = vmatprep.subr.bf16.mxu0 %v3336_v13  ;;  %331 = vmatprep.subr.bf16.mxu1 %v3343_v14  ;;  %v3462_v33 = vld [vmem:[%s5303_s2 + $0xe4] ss:$16 sps:$4 sm:$0xff]   ;;  %v3467_v34 = vld [vmem:[%s5303_s2 + $0xec] ss:$16 sps:$4 sm:$0xff]   ;;  %v3473_v35 = vld [vmem:[%s5303_s2 + $0xe0] ss:$16 sps:$4 sm:$0xff]  }
   0xd   :  { %v3478_v36 = vld [vmem:[%s5303_s2 + $0xe8] ss:$16 sps:$4 sm:$0xff]   ;;  %v3486_v37 = vld [vmem:[%s5303_s2 + $0xc4] ss:$16 sps:$4 sm:$0xff]   ;;  %v3491_v38 = vld [vmem:[%s5303_s2 + $0xcc] ss:$16 sps:$4 sm:$0xff]  }
   0xe   :  { %v3496_v39 = vld [vmem:[%s5303_s2 + $0xc0] ss:$16 sps:$4 sm:$0xff]   ;;  %v3501_v40 = vld [vmem:[%s5303_s2 + $0xc8] ss:$16 sps:$4 sm:$0xff]   ;;  %v3510_v41 = vld [vmem:[%s5303_s2 + $0xa4] ss:$16 sps:$4 sm:$0xff]  }
   0xf   :  { %291 = vmatpush1.bf16.msra.mxu0 %v3348_v15  ;;  %332 = vmatpush1.bf16.msra.mxu1 %v3355_v16  ;;  %v3515_v42 = vld [vmem:[%s5303_s2 + $0xac] ss:$16 sps:$4 sm:$0xff]   ;;  %v3520_v43 = vld [vmem:[%s5303_s2 + $0xa0] ss:$16 sps:$4 sm:$0xff]   ;;  %v3525_v44 = vld [vmem:[%s5303_s2 + $0xa8] ss:$16 sps:$4 sm:$0xff]  }
  0x10   :  { %292 = vmatprep.subr.bf16.mxu0 %v3360_v17  ;;  %333 = vmatprep.subr.bf16.mxu1 %v3367_v18  ;;  %v3534_v45 = vld [vmem:[%s5303_s2 + $0x84] ss:$16 sps:$4 sm:$0xff]   ;;  %v3539_v46 = vld [vmem:[%s5303_s2 + $0x8c] ss:$16 sps:$4 sm:$0xff]   ;;  %v3544_v47 = vld [vmem:[%s5303_s2 + $0x80] ss:$16 sps:$4 sm:$0xff]  }
  0x11   :  { %5552 = vst [vmem:[#allocation5_spill] sm:$0xff] %v3534_v45  ;;  %5553 = vst [vmem:[#allocation6_spill] sm:$0xff] %v3539_v46  ;;  %v3549_v48 = vld [vmem:[%s5303_s2 + $0x88] ss:$16 sps:$4 sm:$0xff]   ;;  %v3558_v49 = vld [vmem:[%s5303_s2 + $0x64] ss:$16 sps:$4 sm:$0xff]  }
  0x12   :  { %5554 = vst [vmem:[#allocation7_spill] sm:$0xff] %v3544_v47  ;;  %5555 = vst [vmem:[#allocation8_spill] sm:$0xff] %v3549_v48  ;;  %v3563_v50 = vld [vmem:[%s5303_s2 + $0x6c] ss:$16 sps:$4 sm:$0xff]   ;;  %v3568_v51 = vld [vmem:[%s5303_s2 + $0x60] ss:$16 sps:$4 sm:$0xff]  }
  0x13   :  { %293 = vmatpush1.bf16.msra.mxu0 %v3372_v19  ;;  %334 = vmatpush1.bf16.msra.mxu1 %v3377_v20  ;;  %5556 = vst [vmem:[#allocation9_spill] sm:$0xff] %v3558_v49  ;;  %5557 = vst [vmem:[#allocation10_spill] sm:$0xff] %v3563_v50  ;;  %v3573_v52 = vld [vmem:[%s5303_s2 + $0x68] ss:$16 sps:$4 sm:$0xff]   ;;  %v3582_v53 = vld [vmem:[%s5303_s2 + $0x44] ss:$16 sps:$4 sm:$0xff]  }
  0x14   :  { %294 = vmatprep.subr.bf16.mxu0 %v3384_v21  ;;  %335 = vmatprep.subr.bf16.mxu1 %v3391_v22  ;;  %5558 = vst [vmem:[#allocation11_spill] sm:$0xff] %v3568_v51  ;;  %5559 = vst [vmem:[#allocation12_spill] sm:$0xff] %v3573_v52  ;;  %v3587_v54 = vld [vmem:[%s5303_s2 + $0x4c] ss:$16 sps:$4 sm:$0xff]   ;;  %v3592_v55 = vld [vmem:[%s5303_s2 + $0x40] ss:$16 sps:$4 sm:$0xff]  }
  0x15   :  { %5560 = vst [vmem:[#allocation13_spill] sm:$0xff] %v3582_v53  ;;  %5561 = vst [vmem:[#allocation14_spill] sm:$0xff] %v3587_v54  ;;  %v3597_v56 = vld [vmem:[%s5303_s2 + $0x48] ss:$16 sps:$4 sm:$0xff]   ;;  %v3606_v57 = vld [vmem:[%s5303_s2 + $0x24] ss:$16 sps:$4 sm:$0xff]  }
  0x16   :  { %5562 = vst [vmem:[#allocation15_spill] sm:$0xff] %v3592_v55  ;;  %5563 = vst [vmem:[#allocation16_spill] sm:$0xff] %v3597_v56  ;;  %v3611_v58 = vld [vmem:[%s5303_s2 + $0x2c] ss:$16 sps:$4 sm:$0xff]   ;;  %v3616_v59 = vld [vmem:[%s5303_s2 + $0x20] ss:$16 sps:$4 sm:$0xff]  }
  0x17   :  { %295 = vmatpush1.bf16.msra.mxu0 %v3398_v23  ;;  %336 = vmatpush1.bf16.msra.mxu1 %v3403_v24  ;;  %5564 = vst [vmem:[#allocation17_spill] sm:$0xff] %v3606_v57  ;;  %5565 = vst [vmem:[#allocation18_spill] sm:$0xff] %v3611_v58  ;;  %v3621_v60 = vld [vmem:[%s5303_s2 + $0x28] ss:$16 sps:$4 sm:$0xff]   ;;  %v3630_v61 = vld [vmem:[%s5303_s2 + $0x4] ss:$16 sps:$4 sm:$0xff]  }
  0x18   :  { %296 = vmatprep.subr.bf16.mxu0 %v3410_v25  ;;  %337 = vmatprep.subr.bf16.mxu1 %v3415_v26  ;;  %5566 = vst [vmem:[#allocation19_spill] sm:$0xff] %v3616_v59  ;;  %5567 = vst [vmem:[#allocation20_spill] sm:$0xff] %v3621_v60  ;;  %v3635_v62 = vld [vmem:[%s5303_s2 + $0xc] ss:$16 sps:$4 sm:$0xff]   ;;  %v3640_v63 = vld [vmem:[%s5303_s2] ss:$16 sps:$4 sm:$0xff]  }
  0x19   :  { %5568 = vst [vmem:[#allocation21_spill] sm:$0xff] %v3630_v61  ;;  %5569 = vst [vmem:[#allocation22_spill] sm:$0xff] %v3635_v62 }
  0x1a   :  { %5570 = vst [vmem:[#allocation23_spill] sm:$0xff] %v3640_v63 }
  0x1b   :  { %297 = vmatpush1.bf16.msra.mxu0 %v3422_v27  ;;  %338 = vmatpush1.bf16.msra.mxu1 %v3427_v28 }
  0x1c   :  { %298 = vmatprep.subr.bf16.mxu0 %v3434_v29  ;;  %339 = vmatprep.subr.bf16.mxu1 %v3439_v30 }
  0x1f   :  { %299 = vmatpush1.bf16.msra.mxu0 %v3446_v31  ;;  %340 = vmatpush1.bf16.msra.mxu1 %v3451_v32 }
  0x20   :  { %731 = vmatprep.subr.bf16.mxu0 %v3462_v33  ;;  %772 = vmatprep.subr.bf16.mxu1 %v3467_v34 }
  0x22   :  { %317 = vmatmul.mubr.bf16.vlgmr.msra.gmra.mxu0 %v5309_v1  ;;  %358 = vmatmul.mubr.bf16.vlgmr.msra.gmra.mxu1 %v5309_v1  ;;  %v3645_v1 = vld [vmem:[%s5303_s2 + $0x8] ss:$16 sps:$4 sm:$0xff]  }
  0x23   :  { %732 = vmatpush1.bf16.msra.mxu0 %v3473_v35  ;;  %773 = vmatpush1.bf16.msra.mxu1 %v3478_v36  ;;  %5571 = vst [vmem:[#allocation24_spill] sm:$0xff] %v3645_v1 }
  0x24   :  { %733 = vmatprep.subr.bf16.mxu0 %v3486_v37  ;;  %774 = vmatprep.subr.bf16.mxu1 %v3491_v38 }
  0x27   :  { %734 = vmatpush1.bf16.msra.mxu0 %v3496_v39  ;;  %775 = vmatpush1.bf16.msra.mxu1 %v3501_v40 }
  0x28   :  { %735 = vmatprep.subr.bf16.mxu0 %v3510_v41  ;;  %776 = vmatprep.subr.bf16.mxu1 %v3515_v42 }
  0x2b   :  { %736 = vmatpush1.bf16.msra.mxu0 %v3520_v43  ;;  %777 = vmatpush1.bf16.msra.mxu1 %v3525_v44 }
  0x2c   :  { %737 = vmatprep.subr.bf16.mxu0 %v3534_v45  ;;  %778 = vmatprep.subr.bf16.mxu1 %v3539_v46 }
  0x2f   :  { %738 = vmatpush1.bf16.msra.mxu0 %v3544_v47  ;;  %779 = vmatpush1.bf16.msra.mxu1 %v3549_v48 }
  0x30   :  { %739 = vmatprep.subr.bf16.mxu0 %v3558_v49  ;;  %780 = vmatprep.subr.bf16.mxu1 %v3563_v50 }
  0x33   :  { %740 = vmatpush1.bf16.msra.mxu0 %v3568_v51  ;;  %781 = vmatpush1.bf16.msra.mxu1 %v3573_v52 }
  0x34   :  { %741 = vmatprep.subr.bf16.mxu0 %v3582_v53  ;;  %782 = vmatprep.subr.bf16.mxu1 %v3587_v54 }
  0x37   :  { %742 = vmatpush1.bf16.msra.mxu0 %v3592_v55  ;;  %783 = vmatpush1.bf16.msra.mxu1 %v3597_v56 }
  0x38   :  { %743 = vmatprep.subr.bf16.mxu0 %v3606_v57  ;;  %784 = vmatprep.subr.bf16.mxu1 %v3611_v58  ;;  %v3226_v58 = vmov 0.0|0.0  }
  0x39   :  { %763 = vmatprep.mubr.bf16.mxu0 %v3226_v58  ;;  %804 = vmatprep.mubr.bf16.mxu1 %v3226_v58  ;;  %v3796_v58 = vld [vmem:[%s5303_s2 + $0x124] ss:$16 sps:$4 sm:$0xff]  }
  0x3a   :  { %5596 = vst [vmem:[#allocation49_spill] sm:$0xff] %v3796_v58 }
  0x3b   :  { %744 = vmatpush1.bf16.msra.mxu0 %v3616_v59  ;;  %785 = vmatpush1.bf16.msra.mxu1 %v3621_v60  ;;  %v3654_v60 = vld [vmem:[%s5303_s2 + $0x1e4] ss:$16 sps:$4 sm:$0xff]   ;;  %v3659_v59 = vld [vmem:[%s5303_s2 + $0x1ec] ss:$16 sps:$4 sm:$0xff]  }
  0x3c   :  { %745 = vmatprep.subr.bf16.mxu0 %v3630_v61  ;;  %786 = vmatprep.subr.bf16.mxu1 %v3635_v62  ;;  %5572 = vst [vmem:[#allocation25_spill] sm:$0xff] %v3654_v60  ;;  %5573 = vst [vmem:[#allocation26_spill] sm:$0xff] %v3659_v59  ;;  %v3664_v61 = vld [vmem:[%s5303_s2 + $0x1e0] ss:$16 sps:$4 sm:$0xff]   ;;  %v3683_v62 = vld [vmem:[%s5303_s2 + $0x1cc] ss:$16 sps:$4 sm:$0xff]  }
  0x3d   :  { %5574 = vst [vmem:[#allocation27_spill] sm:$0xff] %v3664_v61  ;;  %5577 = vst [vmem:[#allocation30_spill] sm:$0xff] %v3683_v62 }
  0x3f   :  { %746 = vmatpush1.bf16.msra.mxu0 %v3640_v63  ;;  %787 = vmatpush1.bf16.msra.mxu1 %v3645_v1  ;;  %v3669_v63 = vld [vmem:[%s5303_s2 + $0x1e8] ss:$16 sps:$4 sm:$0xff]   ;;  %v3678_v1 = vld [vmem:[%s5303_s2 + $0x1c4] ss:$16 sps:$4 sm:$0xff]  }
  0x40   :  { %5575 = vst [vmem:[#allocation28_spill] sm:$0xff] %v3669_v63  ;;  %747 = vmatprep.subr.bf16.mxu0 %v3654_v60  ;;  %788 = vmatprep.subr.bf16.mxu1 %v3659_v59  ;;  %5576 = vst [vmem:[#allocation29_spill] sm:$0xff] %v3678_v1  ;;  %v3688_v60 = vld [vmem:[%s5303_s2 + $0x1c0] ss:$16 sps:$4 sm:$0xff]   ;;  %v3707_v59 = vld [vmem:[%s5303_s2 + $0x1ac] ss:$16 sps:$4 sm:$0xff]  }
  0x41   :  { %5578 = vst [vmem:[#allocation31_spill] sm:$0xff] %v3688_v60  ;;  %5581 = vst [vmem:[#allocation34_spill] sm:$0xff] %v3707_v59 }
  0x43   :  { %748 = vmatpush2.bf16.msra.mxu0 %v3664_v61  ;;  %789 = vmatpush2.bf16.msra.mxu1 %v3669_v63  ;;  %v3693_v61 = vld [vmem:[%s5303_s2 + $0x1c8] ss:$16 sps:$4 sm:$0xff]   ;;  %v3702_v63 = vld [vmem:[%s5303_s2 + $0x1a4] ss:$16 sps:$4 sm:$0xff]  }
  0x44   :  { %5579 = vst [vmem:[#allocation32_spill] sm:$0xff] %v3693_v61  ;;  %749 = vmatprep.subr.bf16.mxu0 %v3678_v1  ;;  %790 = vmatprep.subr.bf16.mxu1 %v3683_v62  ;;  %5580 = vst [vmem:[#allocation33_spill] sm:$0xff] %v3702_v63  ;;  %v3712_v1 = vld [vmem:[%s5303_s2 + $0x1a0] ss:$16 sps:$4 sm:$0xff]   ;;  %v3729_v62 = vld [vmem:[%s5303_s2 + $0x18c] ss:$16 sps:$4 sm:$0xff]  }
  0x45   :  { %5582 = vst [vmem:[#allocation35_spill] sm:$0xff] %v3712_v1  ;;  %5585 = vst [vmem:[#allocation38_spill] sm:$0xff] %v3729_v62 }
  0x47   :  { %750 = vmatpush2.bf16.msra.mxu0 %v3688_v60  ;;  %791 = vmatpush2.bf16.msra.mxu1 %v3693_v61  ;;  %v3717_v60 = vld [vmem:[%s5303_s2 + $0x1a8] ss:$16 sps:$4 sm:$0xff]   ;;  %v3724_v61 = vld [vmem:[%s5303_s2 + $0x184] ss:$16 sps:$4 sm:$0xff]  }
  0x48   :  { %5583 = vst [vmem:[#allocation36_spill] sm:$0xff] %v3717_v60  ;;  %751 = vmatprep.subr.bf16.mxu0 %v3702_v63  ;;  %792 = vmatprep.subr.bf16.mxu1 %v3707_v59  ;;  %5584 = vst [vmem:[#allocation37_spill] sm:$0xff] %v3724_v61  ;;  %v3736_v63 = vld [vmem:[%s5303_s2 + $0x180] ss:$16 sps:$4 sm:$0xff]   ;;  %v3741_v59 = vld [vmem:[%s5303_s2 + $0x188] ss:$16 sps:$4 sm:$0xff]  }
  0x49   :  { %5586 = vst [vmem:[#allocation39_spill] sm:$0xff] %v3736_v63  ;;  %5587 = vst [vmem:[#allocation40_spill] sm:$0xff] %v3741_v59 }
  0x4b   :  { %752 = vmatpush2.bf16.msra.mxu0 %v3712_v1  ;;  %793 = vmatpush2.bf16.msra.mxu1 %v3717_v60  ;;  %v3748_v1 = vld [vmem:[%s5303_s2 + $0x164] ss:$16 sps:$4 sm:$0xff]   ;;  %v3753_v60 = vld [vmem:[%s5303_s2 + $0x16c] ss:$16 sps:$4 sm:$0xff]  }
  0x4c   :  { %753 = vmatprep.subr.bf16.mxu0 %v3724_v61  ;;  %794 = vmatprep.subr.bf16.mxu1 %v3729_v62  ;;  %5588 = vst [vmem:[#allocation41_spill] sm:$0xff] %v3748_v1  ;;  %5589 = vst [vmem:[#allocation42_spill] sm:$0xff] %v3753_v60  ;;  %v3760_v61 = vld [vmem:[%s5303_s2 + $0x160] ss:$16 sps:$4 sm:$0xff]   ;;  %v3765_v62 = vld [vmem:[%s5303_s2 + $0x168] ss:$16 sps:$4 sm:$0xff]  }
  0x4d   :  { %5590 = vst [vmem:[#allocation43_spill] sm:$0xff] %v3760_v61  ;;  %5591 = vst [vmem:[#allocation44_spill] sm:$0xff] %v3765_v62 }
  0x4f   :  { %754 = vmatpush2.bf16.msra.mxu0 %v3736_v63  ;;  %795 = vmatpush2.bf16.msra.mxu1 %v3741_v59  ;;  %v3772_v63 = vld [vmem:[%s5303_s2 + $0x144] ss:$16 sps:$4 sm:$0xff]   ;;  %v3777_v59 = vld [vmem:[%s5303_s2 + $0x14c] ss:$16 sps:$4 sm:$0xff]  }
  0x50   :  { %755 = vmatprep.subr.bf16.mxu0 %v3748_v1  ;;  %796 = vmatprep.subr.bf16.mxu1 %v3753_v60  ;;  %5592 = vst [vmem:[#allocation45_spill] sm:$0xff] %v3772_v63  ;;  %5593 = vst [vmem:[#allocation46_spill] sm:$0xff] %v3777_v59  ;;  %v3784_v60 = vld [vmem:[%s5303_s2 + $0x140] ss:$16 sps:$4 sm:$0xff]   ;;  %v3789_v1 = vld [vmem:[%s5303_s2 + $0x148] ss:$16 sps:$4 sm:$0xff]  }
  0x51   :  { %5594 = vst [vmem:[#allocation47_spill] sm:$0xff] %v3784_v60  ;;  %5595 = vst [vmem:[#allocation48_spill] sm:$0xff] %v3789_v1 }
  0x53   :  { %756 = vmatpush2.bf16.msra.mxu0 %v3760_v61  ;;  %797 = vmatpush2.bf16.msra.mxu1 %v3765_v62  ;;  %v3801_v62 = vld [vmem:[%s5303_s2 + $0x12c] ss:$16 sps:$4 sm:$0xff]   ;;  %v375_v61 = vlaneseq }
  0x54   :  { %757 = vmatprep.subr.bf16.mxu0 %v3772_v63  ;;  %798 = vmatprep.subr.bf16.mxu1 %v3777_v59  ;;  %5597 = vst [vmem:[#allocation50_spill] sm:$0xff] %v3801_v62  ;;  %v3808_v63 = vld [vmem:[%s5303_s2 + $0x120] ss:$16 sps:$4 sm:$0xff]   ;;  %v3813_v59 = vld [vmem:[%s5303_s2 + $0x128] ss:$16 sps:$4 sm:$0xff]  }
  0x55   :  { %5598 = vst [vmem:[#allocation51_spill] sm:$0xff] %v3808_v63  ;;  %5599 = vst [vmem:[#allocation52_spill] sm:$0xff] %v3813_v59  ;;  %v376_v56 = vshrl.u32 %v375_v61, 7 }
  0x57   :  { %758 = vmatpush2.bf16.msra.mxu0 %v3784_v60  ;;  %799 = vmatpush2.bf16.msra.mxu1 %v3789_v1  ;;  %v3820_v60 = vld [vmem:[%s5303_s2 + $0x104] ss:$16 sps:$4 sm:$0xff]   ;;  %v3825_v1 = vld [vmem:[%s5303_s2 + $0x10c] ss:$16 sps:$4 sm:$0xff]  }
  0x58   :  { %759 = vmatprep.subr.bf16.mxu0 %v3796_v58  ;;  %800 = vmatprep.subr.bf16.mxu1 %v3801_v62  ;;  %5600 = vst [vmem:[#allocation53_spill] sm:$0xff] %v3820_v60  ;;  %5601 = vst [vmem:[#allocation54_spill] sm:$0xff] %v3825_v1  ;;  %v3832_v58 = vld [vmem:[%s5303_s2 + $0x100] ss:$16 sps:$4 sm:$0xff]   ;;  %v3837_v62 = vld [vmem:[%s5303_s2 + $0x108] ss:$16 sps:$4 sm:$0xff]  }
  0x59   :  { %5602 = vst [vmem:[#allocation55_spill] sm:$0xff] %v3832_v58  ;;  %5603 = vst [vmem:[#allocation56_spill] sm:$0xff] %v3837_v62 }
  0x5b   :  { %760 = vmatpush2.bf16.msra.mxu0 %v3808_v63  ;;  %801 = vmatpush2.bf16.msra.mxu1 %v3813_v59  ;;  %v3227_v59 = vmov 1983009808  }
  0x5c   :  { %761 = vmatprep.subr.bf16.mxu0 %v3820_v60  ;;  %802 = vmatprep.subr.bf16.mxu1 %v3825_v1  ;;  %v373_v63 = vunpack.c.l.s4 %v3227_v59  ;;  %v123_v59 = vld [vmem:[%s5304_s0] sm:$0xff] }
  0x5e   :  { %v374_v57 = vunpack.c.0.s8 %v373_v63 }
  0x5f   :  { %762 = vmatpush2.bf16.msra.mxu0 %v3832_v58  ;;  %803 = vmatpush2.bf16.msra.mxu1 %v3837_v62 }
  0x60   :  { %858 = vmatprep.subr.bf16.mxu0 %v3266_v0  ;;  %899 = vmatprep.subr.bf16.mxu1 %v3273_v2  ;;  %v3845_v53 = vsub.s32 %v374_v57, %v376_v56 }
  0xe2   :  { %v318_v55 = vpop.f32.mrf.mxu0  ;;  %v359_v54 = vpop.f32.mrf.mxu1 }
  0xe4   :  { %v320_v60 = vpop.f32.mrf.mxu0  ;;  %v361_v52 = vpop.f32.mrf.mxu1 }
  0xe5   :  { %v370_v1 = vcombine.low %v318_v55, %v320_v60  ;;  %v371_v51 = vcombine.low %v359_v54, %v361_v52 }
  0xe6   :  { %v322_v58 = vpop.f32.mrf.mxu0  ;;  %v363_v50 = vpop.f32.mrf.mxu1 }
  0xe7   :  { %v378_v62 = vrot.slane %v370_v1, %v3845_v53  ;;  %v385_v0 = vrot.slane %v371_v51, %v3845_v53 }
  0xe8   :  { %v323_v63 = vpop.f32.mrf.mxu0  ;;  %v364_v61 = vpop.f32.mrf.mxu1 }
  0xe9   :  { %v386_v2 = vcombine.low %v378_v62, %v385_v0  ;;  %v5606_v62 = vld [vmem:[#allocation9_spill] sm:$0xff]  ;;  %v5608_v61 = vld [vmem:[#allocation11_spill] sm:$0xff] }
  0xeb   :  { %v388_v49 = vadd.f32 %v386_v2, %v123_v59  ;;  %v5607_v59 = vld [vmem:[#allocation10_spill] sm:$0xff] }
  0xed   :  { %v2692_v56 = vmul.f32 -1.442695, %v388_v49  ;;  %v396_v55 = vrot.slane %v388_v49, 6  ;;  %v5605_v49 = vld [vmem:[#allocation8_spill] sm:$0xff] }
  0xef   :  { %2928 = vpow2.f32 %v2692_v56  ;;  %v5609_v56 = vld [vmem:[#allocation12_spill] sm:$0xff] }
  0xfc   :  { %v2929_v57 = vpop.eup %2928 }
  0xfd   :  { %v392_v48 = vadd.f32 1.0, %v2929_v57  ;;  %v5610_v57 = vld [vmem:[#allocation13_spill] sm:$0xff] }
  0xff   :  { %2930 = vrcp.f32 %v392_v48  ;;  %v5604_v48 = vmov 0  }
 0x100   :  { %2932 = vtanh.f32 %v396_v55  ;;  %v5611_v55 = vld [vmem:[#allocation14_spill] sm:$0xff] }
 0x10c   :  { %v2931_v50 = vpop.eup %2930 }
 0x10d   :  { %v400_v52 = vrot.slane %v2931_v50, 2  ;;  %v2933_v1 = vpop.eup %2932  ;;  %v406_v58 = vrot.slane %v2931_v50, 4 }
 0x10e   :  { %v403_v54 = vmul.f32 %v2933_v1, %v2931_v50  ;;  %v5612_v50 = vld [vmem:[#allocation15_spill] sm:$0xff]  ;;  %v5614_v1 = vld [vmem:[#allocation17_spill] sm:$0xff] }
 0x10f   :  { %v402_v51 = vmul.f32 0.0, %v400_v52  ;;  %v5613_v52 = vld [vmem:[#allocation16_spill] sm:$0xff] }
 0x111   :  { %v3852_v60 = vadd.f32 %v403_v54, %v402_v51  ;;  %v5615_v54 = vld [vmem:[#allocation18_spill] sm:$0xff]  ;;  %v5616_v51 = vld [vmem:[#allocation19_spill] sm:$0xff] }
 0x113   :  { %2934 = vtanh.f32 %v3852_v60 }
 0x120   :  { %v2935_v63 = vpop.eup %2934 }
 0x121   :  { %v408_v0 = vmul.f32 %v2935_v63, %v406_v58  ;;  %v5617_v58 = vld [vmem:[#allocation20_spill] sm:$0xff]  ;;  %v5618_v63 = vld [vmem:[#allocation21_spill] sm:$0xff] }
 0x123   :  { %v409_v2 = vpack.c.bf16 %v408_v0, %v408_v0  ;;  %v5619_v0 = vld [vmem:[#allocation22_spill] sm:$0xff] }
 0x125   :  { %764 = vmatmul.mubr.bf16.vlgmr.msra.gmra.mxu0 %v409_v2  ;;  %805 = vmatmul.mubr.bf16.vlgmr.msra.gmra.mxu1 %v409_v2 }
 0x126   :  { %859 = vmatpush1.bf16.msra.mxu0 %v3279_v3  ;;  %900 = vmatpush1.bf16.msra.mxu1 %v3284_v4 }
 0x127   :  { %860 = vmatprep.subr.bf16.mxu0 %v3290_v5  ;;  %901 = vmatprep.subr.bf16.mxu1 %v3297_v6 }
 0x128   :  { %890 = vmatprep.mubr.bf16.mxu0 %v5604_v48  ;;  %931 = vmatprep.mubr.bf16.mxu1 %v5604_v48 }
 0x12a   :  { %861 = vmatpush1.bf16.msra.mxu0 %v3302_v7  ;;  %902 = vmatpush1.bf16.msra.mxu1 %v3308_v8 }
 0x12b   :  { %862 = vmatprep.subr.bf16.mxu0 %v3314_v9  ;;  %903 = vmatprep.subr.bf16.mxu1 %v3319_v10 }
 0x12e   :  { %863 = vmatpush1.bf16.msra.mxu0 %v3324_v11  ;;  %904 = vmatpush1.bf16.msra.mxu1 %v3329_v12 }
 0x12f   :  { %864 = vmatprep.subr.bf16.mxu0 %v3336_v13  ;;  %905 = vmatprep.subr.bf16.mxu1 %v3343_v14 }
 0x132   :  { %865 = vmatpush1.bf16.msra.mxu0 %v3348_v15  ;;  %906 = vmatpush1.bf16.msra.mxu1 %v3355_v16 }
 0x133   :  { %866 = vmatprep.subr.bf16.mxu0 %v3360_v17  ;;  %907 = vmatprep.subr.bf16.mxu1 %v3367_v18 }
 0x136   :  { %867 = vmatpush1.bf16.msra.mxu0 %v3372_v19  ;;  %908 = vmatpush1.bf16.msra.mxu1 %v3377_v20 }
 0x137   :  { %868 = vmatprep.subr.bf16.mxu0 %v3384_v21  ;;  %909 = vmatprep.subr.bf16.mxu1 %v3391_v22 }
 0x13a   :  { %869 = vmatpush1.bf16.msra.mxu0 %v3398_v23  ;;  %910 = vmatpush1.bf16.msra.mxu1 %v3403_v24 }
 0x13b   :  { %870 = vmatprep.subr.bf16.mxu0 %v3410_v25  ;;  %911 = vmatprep.subr.bf16.mxu1 %v3415_v26 }
 0x13e   :  { %871 = vmatpush1.bf16.msra.mxu0 %v3422_v27  ;;  %912 = vmatpush1.bf16.msra.mxu1 %v3427_v28 }
 0x13f   :  { %872 = vmatprep.subr.bf16.mxu0 %v3434_v29  ;;  %913 = vmatprep.subr.bf16.mxu1 %v3439_v30 }
 0x142   :  { %873 = vmatpush1.bf16.msra.mxu0 %v3446_v31  ;;  %914 = vmatpush1.bf16.msra.mxu1 %v3451_v32 }
 0x143   :  { %985 = vmatprep.subr.bf16.mxu0 %v3462_v33  ;;  %1026 = vmatprep.subr.bf16.mxu1 %v3467_v34 }
 0x145   :  { %891 = vmatmul.mubr.bf16.vlgmr.msra.gmra.mxu0 %v409_v2  ;;  %932 = vmatmul.mubr.bf16.vlgmr.msra.gmra.mxu1 %v409_v2  ;;  %v5620_v2 = vld [vmem:[#allocation23_spill] sm:$0xff] }
 0x146   :  { %986 = vmatpush1.bf16.msra.mxu0 %v3473_v35  ;;  %1027 = vmatpush1.bf16.msra.mxu1 %v3478_v36 }
 0x147   :  { %987 = vmatprep.subr.bf16.mxu0 %v3486_v37  ;;  %1028 = vmatprep.subr.bf16.mxu1 %v3491_v38 }
 0x14a   :  { %988 = vmatpush1.bf16.msra.mxu0 %v3496_v39  ;;  %1029 = vmatpush1.bf16.msra.mxu1 %v3501_v40 }
 0x14b   :  { %989 = vmatprep.subr.bf16.mxu0 %v3510_v41  ;;  %1030 = vmatprep.subr.bf16.mxu1 %v3515_v42 }
 0x14e   :  { %990 = vmatpush1.bf16.msra.mxu0 %v3520_v43  ;;  %1031 = vmatpush1.bf16.msra.mxu1 %v3525_v44 }
 0x14f   :  { %991 = vmatprep.subr.bf16.mxu0 %v3534_v45  ;;  %1032 = vmatprep.subr.bf16.mxu1 %v3539_v46 }
 0x152   :  { %992 = vmatpush1.bf16.msra.mxu0 %v3544_v47  ;;  %1033 = vmatpush1.bf16.msra.mxu1 %v5605_v49 }
 0x153   :  { %993 = vmatprep.subr.bf16.mxu0 %v5606_v62  ;;  %1034 = vmatprep.subr.bf16.mxu1 %v5607_v59 }
 0x156   :  { %994 = vmatpush1.bf16.msra.mxu0 %v5608_v61  ;;  %1035 = vmatpush1.bf16.msra.mxu1 %v5609_v56 }
 0x157   :  { %995 = vmatprep.subr.bf16.mxu0 %v5610_v57  ;;  %1036 = vmatprep.subr.bf16.mxu1 %v5611_v55  ;;  %v5621_v57 = vld [vmem:[#allocation24_spill] sm:$0xff]  ;;  %v5622_v55 = vld [vmem:[#allocation25_spill] sm:$0xff] }
 0x15a   :  { %996 = vmatpush1.bf16.msra.mxu0 %v5612_v50  ;;  %1037 = vmatpush1.bf16.msra.mxu1 %v5613_v52  ;;  %v5623_v50 = vld [vmem:[#allocation26_spill] sm:$0xff]  ;;  %v5624_v52 = vld [vmem:[#allocation27_spill] sm:$0xff] }
 0x15b   :  { %997 = vmatprep.subr.bf16.mxu0 %v5614_v1  ;;  %1038 = vmatprep.subr.bf16.mxu1 %v5615_v54  ;;  %v5625_v1 = vld [vmem:[#allocation28_spill] sm:$0xff]  ;;  %v5626_v54 = vld [vmem:[#allocation29_spill] sm:$0xff] }
 0x15e   :  { %998 = vmatpush1.bf16.msra.mxu0 %v5616_v51  ;;  %1039 = vmatpush1.bf16.msra.mxu1 %v5617_v58  ;;  %v5627_v51 = vld [vmem:[#allocation30_spill] sm:$0xff]  ;;  %v5628_v58 = vld [vmem:[#allocation31_spill] sm:$0xff] }
 0x15f   :  { %999 = vmatprep.subr.bf16.mxu0 %v5618_v63  ;;  %1040 = vmatprep.subr.bf16.mxu1 %v5619_v0  ;;  %v5629_v63 = vld [vmem:[#allocation32_spill] sm:$0xff]  ;;  %v5630_v0 = vld [vmem:[#allocation33_spill] sm:$0xff] }
 0x162   :  { %1000 = vmatpush1.bf16.msra.mxu0 %v5620_v2  ;;  %1041 = vmatpush1.bf16.msra.mxu1 %v5621_v57  ;;  %v5631_v2 = vld [vmem:[#allocation34_spill] sm:$0xff]  ;;  %v5632_v57 = vld [vmem:[#allocation35_spill] sm:$0xff] }
 0x163   :  { %1001 = vmatprep.subr.bf16.mxu0 %v5622_v55  ;;  %1042 = vmatprep.subr.bf16.mxu1 %v5623_v50  ;;  %v5633_v55 = vld [vmem:[#allocation36_spill] sm:$0xff]  ;;  %v5634_v50 = vld [vmem:[#allocation37_spill] sm:$0xff] }
 0x166   :  { %1002 = vmatpush2.bf16.msra.mxu0 %v5624_v52  ;;  %1043 = vmatpush2.bf16.msra.mxu1 %v5625_v1  ;;  %v5635_v52 = vld [vmem:[#allocation38_spill] sm:$0xff]  ;;  %v5636_v1 = vld [vmem:[#allocation39_spill] sm:$0xff] }
 0x167   :  { %1003 = vmatprep.subr.bf16.mxu0 %v5626_v54  ;;  %1044 = vmatprep.subr.bf16.mxu1 %v5627_v51  ;;  %v5637_v54 = vld [vmem:[#allocation40_spill] sm:$0xff]  ;;  %v5638_v51 = vld [vmem:[#allocation41_spill] sm:$0xff] }
 0x16a   :  { %1004 = vmatpush2.bf16.msra.mxu0 %v5628_v58  ;;  %1045 = vmatpush2.bf16.msra.mxu1 %v5629_v63  ;;  %v5639_v58 = vld [vmem:[#allocation42_spill] sm:$0xff]  ;;  %v5640_v63 = vld [vmem:[#allocation43_spill] sm:$0xff] }
 0x16b   :  { %1005 = vmatprep.subr.bf16.mxu0 %v5630_v0  ;;  %1046 = vmatprep.subr.bf16.mxu1 %v5631_v2  ;;  %v5641_v0 = vld [vmem:[#allocation44_spill] sm:$0xff]  ;;  %v5642_v2 = vld [vmem:[#allocation45_spill] sm:$0xff] }
 0x16e   :  { %1006 = vmatpush2.bf16.msra.mxu0 %v5632_v57  ;;  %1047 = vmatpush2.bf16.msra.mxu1 %v5633_v55  ;;  %v5643_v57 = vld [vmem:[#allocation46_spill] sm:$0xff]  ;;  %v5644_v55 = vld [vmem:[#allocation47_spill] sm:$0xff] }
 0x16f   :  { %1007 = vmatprep.subr.bf16.mxu0 %v5634_v50  ;;  %1048 = vmatprep.subr.bf16.mxu1 %v5635_v52  ;;  %v5645_v50 = vld [vmem:[#allocation48_spill] sm:$0xff]  ;;  %v5646_v52 = vld [vmem:[#allocation49_spill] sm:$0xff] }
 0x172   :  { %1008 = vmatpush2.bf16.msra.mxu0 %v5636_v1  ;;  %1049 = vmatpush2.bf16.msra.mxu1 %v5637_v54  ;;  %v5647_v1 = vld [vmem:[#allocation50_spill] sm:$0xff]  ;;  %v5648_v54 = vld [vmem:[#allocation51_spill] sm:$0xff] }
 0x173   :  { %1009 = vmatprep.subr.bf16.mxu0 %v5638_v51  ;;  %1050 = vmatprep.subr.bf16.mxu1 %v5639_v58  ;;  %v5649_v51 = vld [vmem:[#allocation52_spill] sm:$0xff]  ;;  %v5650_v58 = vld [vmem:[#allocation53_spill] sm:$0xff] }
 0x176   :  { %1010 = vmatpush2.bf16.msra.mxu0 %v5640_v63  ;;  %1051 = vmatpush2.bf16.msra.mxu1 %v5641_v0  ;;  %v5651_v63 = vld [vmem:[#allocation54_spill] sm:$0xff]  ;;  %v5652_v0 = vld [vmem:[#allocation55_spill] sm:$0xff] }
 0x177   :  { %1011 = vmatprep.subr.bf16.mxu0 %v5642_v2  ;;  %1052 = vmatprep.subr.bf16.mxu1 %v5643_v57  ;;  %v5653_v2 = vld [vmem:[#allocation56_spill] sm:$0xff]  ;;  %v5654_v57 = vld [vmem:[#allocation3_spill] sm:$0xff] }
 0x17a   :  { %1012 = vmatpush2.bf16.msra.mxu0 %v5644_v55  ;;  %1053 = vmatpush2.bf16.msra.mxu1 %v5645_v50  ;;  %v5655_v55 = vld [vmem:[#allocation4_spill] sm:$0xff] }
 0x17b   :  { %1013 = vmatprep.subr.bf16.mxu0 %v5646_v52  ;;  %1054 = vmatprep.subr.bf16.mxu1 %v5647_v1 }
 0x17e   :  { %1014 = vmatpush2.bf16.msra.mxu0 %v5648_v54  ;;  %1055 = vmatpush2.bf16.msra.mxu1 %v5649_v51 }
 0x17f   :  { %1015 = vmatprep.subr.bf16.mxu0 %v5650_v58  ;;  %1056 = vmatprep.subr.bf16.mxu1 %v5651_v63 }
 0x182   :  { %1016 = vmatpush2.bf16.msra.mxu0 %v5652_v0  ;;  %1057 = vmatpush2.bf16.msra.mxu1 %v5653_v2  ;;  %v3958_v2 = vld [vmem:[%s5305_s3] sm:$0xff] }
 0x183   :  { %1112 = vmatprep.subr.bf16.mxu0 %v5654_v57  ;;  %1153 = vmatprep.subr.bf16.mxu1 %v5655_v55  ;;  %5656 = vst [vmem:[#allocation3_spill] sm:$0xff] %v3958_v2 }
 0x1e5   :  { %v765_v50 = vpop.f32.mrf.mxu0  ;;  %v806_v52 = vpop.f32.mrf.mxu1 }
 0x1e7   :  { %v767_v56 = vpop.f32.mrf.mxu0  ;;  %v808_v1 = vpop.f32.mrf.mxu1 }
 0x1e8   :  { %v817_v61 = vcombine.low %v765_v50, %v767_v56  ;;  %v818_v54 = vcombine.low %v806_v52, %v808_v1 }
 0x1e9   :  { %v769_v59 = vpop.f32.mrf.mxu0  ;;  %v810_v51 = vpop.f32.mrf.mxu1 }
 0x1ea   :  { %v825_v58 = vrot.slane %v817_v61, %v3845_v53  ;;  %v832_v63 = vrot.slane %v818_v54, %v3845_v53 }
 0x1eb   :  { %v770_v57 = vpop.f32.mrf.mxu0  ;;  %v811_v0 = vpop.f32.mrf.mxu1 }
 0x1ec   :  { %v833_v55 = vcombine.low %v825_v58, %v832_v63 }
 0x1ee   :  { %v835_v62 = vadd.f32 %v833_v55, %v3958_v2 }
 0x1f0   :  { %v2757_v49 = vmul.f32 -1.442695, %v835_v62  ;;  %v843_v59 = vrot.slane %v835_v62, 6 }
 0x1f2   :  { %2936 = vpow2.f32 %v2757_v49  ;;  %v2758_v49 = vld [vmem:[%s5304_s0 + $0x8] sm:$0xff] }
 0x1ff   :  { %v2937_v56 = vpop.eup %2936 }
 0x200   :  { %v839_v50 = vadd.f32 1.0, %v2937_v56 }
 0x202   :  { %2938 = vrcp.f32 %v839_v50 }
 0x203   :  { %2940 = vtanh.f32 %v843_v59 }
 0x205   :  { %v892_v61 = vpop.f32.mrf.mxu0  ;;  %v933_v52 = vpop.f32.mrf.mxu1 }
 0x207   :  { %v894_v1 = vpop.f32.mrf.mxu0  ;;  %v935_v54 = vpop.f32.mrf.mxu1 }
 0x208   :  { %v944_v51 = vcombine.low %v892_v61, %v894_v1  ;;  %v945_v47 = vcombine.low %v933_v52, %v935_v54 }
 0x209   :  { %v896_v46 = vpop.f32.mrf.mxu0  ;;  %v937_v45 = vpop.f32.mrf.mxu1 }
 0x20a   :  { %v952_v0 = vrot.slane %v944_v51, %v3845_v53  ;;  %v959_v58 = vrot.slane %v945_v47, %v3845_v53 }
 0x20b   :  { %v897_v63 = vpop.f32.mrf.mxu0  ;;  %v938_v62 = vpop.f32.mrf.mxu1 }
 0x20c   :  { %v960_v57 = vcombine.low %v952_v0, %v959_v58 }
 0x20e   :  { %v962_v55 = vadd.f32 %v2758_v49, %v960_v57 }
 0x20f   :  { %v2939_v56 = vpop.eup %2938 }
 0x210   :  { %v2759_v50 = vmul.f32 -1.442695, %v962_v55  ;;  %v847_v59 = vrot.slane %v2939_v56, 2  ;;  %v2941_v2 = vpop.eup %2940  ;;  %v970_v1 = vrot.slane %v962_v55, 6  ;;  %v853_v54 = vrot.slane %v2939_v56, 4 }
 0x211   :  { %v850_v46 = vmul.f32 %v2941_v2, %v2939_v56 }
 0x212   :  { %2942 = vpow2.f32 %v2759_v50  ;;  %v849_v61 = vmul.f32 0.0, %v847_v59 }
 0x214   :  { %v3966_v45 = vadd.f32 %v850_v46, %v849_v61  ;;  %v5700_v46 = vld [vmem:[#allocation48_spill] sm:$0xff] }
 0x216   :  { %2944 = vtanh.f32 %v3966_v45 }
 0x21f   :  { %v2943_v47 = vpop.eup %2942 }
 0x220   :  { %v966_v52 = vadd.f32 1.0, %v2943_v47  ;;  %v5701_v47 = vld [vmem:[#allocation49_spill] sm:$0xff] }
 0x222   :  { %2946 = vrcp.f32 %v966_v52  ;;  %v5702_v52 = vld [vmem:[#allocation50_spill] sm:$0xff] }
 0x223   :  { %v2945_v51 = vpop.eup %2944  ;;  %2948 = vtanh.f32 %v970_v1  ;;  %v5703_v1 = vld [vmem:[#allocation51_spill] sm:$0xff] }
 0x224   :  { %v855_v0 = vmul.f32 %v2945_v51, %v853_v54  ;;  %v5704_v54 = vld [vmem:[#allocation52_spill] sm:$0xff]  ;;  %v5705_v51 = vld [vmem:[#allocation53_spill] sm:$0xff] }
 0x226   :  { %v984_v58 = vpack.c.bf16 %v855_v0, %v855_v0  ;;  %v5706_v0 = vld [vmem:[#allocation54_spill] sm:$0xff] }
 0x228   :  { %1017 = vmatprep.mubr.bf16.mxu0 %v984_v58  ;;  %1058 = vmatprep.mubr.bf16.mxu1 %v984_v58  ;;  %v5707_v58 = vld [vmem:[#allocation55_spill] sm:$0xff] }
 0x22f   :  { %v2947_v49 = vpop.eup %2946 }
 0x230   :  { %v974_v63 = vrot.slane %v2947_v49, 2  ;;  %v2949_v62 = vpop.eup %2948  ;;  %v980_v59 = vrot.slane %v2947_v49, 4 }
 0x231   :  { %v977_v57 = vmul.f32 %v2949_v62, %v2947_v49  ;;  %v5708_v49 = vld [vmem:[#allocation56_spill] sm:$0xff] }
 0x232   :  { %v976_v2 = vmul.f32 %v974_v63, %v3852_v60  ;;  %v5699_v60 = vld [vmem:[#allocation47_spill] sm:$0xff]  ;;  %v4078_v62 = vld [vmem:[%s5302_s1 + $0xec] ss:$16 sps:$4 sm:$0xff]  }
 0x233   :  { %v4072_v63 = vld [vmem:[%s5302_s1 + $0xe4] ss:$16 sps:$4 sm:$0xff]  }
 0x234   :  { %v3970_v50 = vadd.f32 %v977_v57, %v976_v2  ;;  %5709 = vst [vmem:[#allocation4_spill] sm:$0xff] %v4072_v63 }
 0x236   :  { %2950 = vtanh.f32 %v3970_v50 }
 0x243   :  { %v2951_v55 = vpop.eup %2950 }
 0x244   :  { %v982_v61 = vmul.f32 %v2951_v55, %v980_v59 }
 0x246   :  { %v983_v56 = vpack.c.bf16 %v982_v61, %v982_v61 }
 0x248   :  { %1018 = vmatmul.mubr.bf16.vlgmr.msra.gmra.mxu0 %v983_v56  ;;  %1059 = vmatmul.mubr.bf16.vlgmr.msra.gmra.mxu1 %v983_v56 }
 0x249   :  { %1113 = vmatpush1.bf16.msra.mxu0 %v3279_v3  ;;  %1154 = vmatpush1.bf16.msra.mxu1 %v3284_v4  ;;  %v5657_v3 = vld [vmem:[#allocation5_spill] sm:$0xff]  ;;  %v5658_v4 = vld [vmem:[#allocation6_spill] sm:$0xff] }
 0x24a   :  { %1114 = vmatprep.subr.bf16.mxu0 %v3290_v5  ;;  %1155 = vmatprep.subr.bf16.mxu1 %v3297_v6  ;;  %v5659_v5 = vld [vmem:[#allocation7_spill] sm:$0xff]  ;;  %v5660_v6 = vld [vmem:[#allocation8_spill] sm:$0xff]  ;;  %5710 = vst [vmem:[#allocation5_spill] sm:$0xff] %v4078_v62 }
 0x24b   :  { %1144 = vmatprep.mubr.bf16.mxu0 %v5604_v48  ;;  %1185 = vmatprep.mubr.bf16.mxu1 %v5604_v48 }
 0x24d   :  { %1115 = vmatpush1.bf16.msra.mxu0 %v3302_v7  ;;  %1156 = vmatpush1.bf16.msra.mxu1 %v3308_v8  ;;  %v5661_v7 = vld [vmem:[#allocation9_spill] sm:$0xff]  ;;  %v5662_v8 = vld [vmem:[#allocation10_spill] sm:$0xff] }
 0x24e   :  { %1116 = vmatprep.subr.bf16.mxu0 %v3314_v9  ;;  %1157 = vmatprep.subr.bf16.mxu1 %v3319_v10  ;;  %v5663_v9 = vld [vmem:[#allocation11_spill] sm:$0xff]  ;;  %v5664_v10 = vld [vmem:[#allocation12_spill] sm:$0xff] }
 0x251   :  { %1117 = vmatpush1.bf16.msra.mxu0 %v3324_v11  ;;  %1158 = vmatpush1.bf16.msra.mxu1 %v3329_v12  ;;  %v5665_v11 = vld [vmem:[#allocation13_spill] sm:$0xff]  ;;  %v5666_v12 = vld [vmem:[#allocation14_spill] sm:$0xff] }
 0x252   :  { %1118 = vmatprep.subr.bf16.mxu0 %v3336_v13  ;;  %1159 = vmatprep.subr.bf16.mxu1 %v3343_v14  ;;  %v5667_v13 = vld [vmem:[#allocation15_spill] sm:$0xff]  ;;  %v5668_v14 = vld [vmem:[#allocation16_spill] sm:$0xff] }
 0x255   :  { %1119 = vmatpush1.bf16.msra.mxu0 %v3348_v15  ;;  %1160 = vmatpush1.bf16.msra.mxu1 %v3355_v16  ;;  %v5669_v15 = vld [vmem:[#allocation17_spill] sm:$0xff]  ;;  %v5670_v16 = vld [vmem:[#allocation18_spill] sm:$0xff] }
 0x256   :  { %1120 = vmatprep.subr.bf16.mxu0 %v3360_v17  ;;  %1161 = vmatprep.subr.bf16.mxu1 %v3367_v18  ;;  %v5671_v17 = vld [vmem:[#allocation19_spill] sm:$0xff]  ;;  %v5672_v18 = vld [vmem:[#allocation20_spill] sm:$0xff] }
 0x259   :  { %1121 = vmatpush1.bf16.msra.mxu0 %v3372_v19  ;;  %1162 = vmatpush1.bf16.msra.mxu1 %v3377_v20  ;;  %v5673_v19 = vld [vmem:[#allocation21_spill] sm:$0xff]  ;;  %v5674_v20 = vld [vmem:[#allocation22_spill] sm:$0xff] }
 0x25a   :  { %1122 = vmatprep.subr.bf16.mxu0 %v3384_v21  ;;  %1163 = vmatprep.subr.bf16.mxu1 %v3391_v22  ;;  %v5675_v21 = vld [vmem:[#allocation23_spill] sm:$0xff]  ;;  %v5676_v22 = vld [vmem:[#allocation24_spill] sm:$0xff] }
 0x25d   :  { %1123 = vmatpush1.bf16.msra.mxu0 %v3398_v23  ;;  %1164 = vmatpush1.bf16.msra.mxu1 %v3403_v24  ;;  %v5677_v23 = vld [vmem:[#allocation25_spill] sm:$0xff]  ;;  %v5678_v24 = vld [vmem:[#allocation26_spill] sm:$0xff] }
 0x25e   :  { %1124 = vmatprep.subr.bf16.mxu0 %v3410_v25  ;;  %1165 = vmatprep.subr.bf16.mxu1 %v3415_v26  ;;  %v5679_v25 = vld [vmem:[#allocation27_spill] sm:$0xff]  ;;  %v5680_v26 = vld [vmem:[#allocation28_spill] sm:$0xff] }
 0x261   :  { %1125 = vmatpush1.bf16.msra.mxu0 %v3422_v27  ;;  %1166 = vmatpush1.bf16.msra.mxu1 %v3427_v28  ;;  %v5681_v27 = vld [vmem:[#allocation29_spill] sm:$0xff]  ;;  %v5682_v28 = vld [vmem:[#allocation30_spill] sm:$0xff] }
 0x262   :  { %1126 = vmatprep.subr.bf16.mxu0 %v3434_v29  ;;  %1167 = vmatprep.subr.bf16.mxu1 %v3439_v30  ;;  %v5683_v29 = vld [vmem:[#allocation31_spill] sm:$0xff]  ;;  %v5684_v30 = vld [vmem:[#allocation32_spill] sm:$0xff] }
 0x265   :  { %1127 = vmatpush1.bf16.msra.mxu0 %v3446_v31  ;;  %1168 = vmatpush1.bf16.msra.mxu1 %v3451_v32  ;;  %v5685_v31 = vld [vmem:[#allocation33_spill] sm:$0xff]  ;;  %v5686_v32 = vld [vmem:[#allocation34_spill] sm:$0xff] }
 0x266   :  { %1239 = vmatprep.subr.bf16.mxu0 %v3462_v33  ;;  %1280 = vmatprep.subr.bf16.mxu1 %v3467_v34  ;;  %v5687_v33 = vld [vmem:[#allocation35_spill] sm:$0xff]  ;;  %v5688_v34 = vld [vmem:[#allocation36_spill] sm:$0xff] }
 0x268   :  { %1145 = vmatmul.mubr.bf16.vlgmr.msra.gmra.mxu0 %v983_v56  ;;  %1186 = vmatmul.mubr.bf16.vlgmr.msra.gmra.mxu1 %v983_v56 }
 0x269   :  { %1240 = vmatpush1.bf16.msra.mxu0 %v3473_v35  ;;  %1281 = vmatpush1.bf16.msra.mxu1 %v3478_v36  ;;  %v5689_v35 = vld [vmem:[#allocation37_spill] sm:$0xff]  ;;  %v5690_v36 = vld [vmem:[#allocation38_spill] sm:$0xff] }
 0x26a   :  { %1241 = vmatprep.subr.bf16.mxu0 %v3486_v37  ;;  %1282 = vmatprep.subr.bf16.mxu1 %v3491_v38  ;;  %v5691_v37 = vld [vmem:[#allocation39_spill] sm:$0xff]  ;;  %v5692_v38 = vld [vmem:[#allocation40_spill] sm:$0xff] }
 0x26d   :  { %1242 = vmatpush1.bf16.msra.mxu0 %v3496_v39  ;;  %1283 = vmatpush1.bf16.msra.mxu1 %v3501_v40  ;;  %v5693_v39 = vld [vmem:[#allocation41_spill] sm:$0xff]  ;;  %v5694_v40 = vld [vmem:[#allocation42_spill] sm:$0xff] }
 0x26e   :  { %1243 = vmatprep.subr.bf16.mxu0 %v3510_v41  ;;  %1284 = vmatprep.subr.bf16.mxu1 %v3515_v42  ;;  %v5695_v41 = vld [vmem:[#allocation43_spill] sm:$0xff]  ;;  %v5696_v42 = vld [vmem:[#allocation44_spill] sm:$0xff] }
 0x271   :  { %1244 = vmatpush1.bf16.msra.mxu0 %v3520_v43  ;;  %1285 = vmatpush1.bf16.msra.mxu1 %v3525_v44  ;;  %v5697_v43 = vld [vmem:[#allocation45_spill] sm:$0xff]  ;;  %v5698_v44 = vld [vmem:[#allocation46_spill] sm:$0xff] }
 0x272   :  { %1245 = vmatprep.subr.bf16.mxu0 %v5657_v3  ;;  %1286 = vmatprep.subr.bf16.mxu1 %v5658_v4 }
 0x275   :  { %1246 = vmatpush1.bf16.msra.mxu0 %v5659_v5  ;;  %1287 = vmatpush1.bf16.msra.mxu1 %v5660_v6 }
 0x276   :  { %1247 = vmatprep.subr.bf16.mxu0 %v5661_v7  ;;  %1288 = vmatprep.subr.bf16.mxu1 %v5662_v8 }
 0x279   :  { %1248 = vmatpush1.bf16.msra.mxu0 %v5663_v9  ;;  %1289 = vmatpush1.bf16.msra.mxu1 %v5664_v10  ;;  %v5711_v10 = vld [vmem:[#allocation3_spill] sm:$0xff] }
 0x27a   :  { %1249 = vmatprep.subr.bf16.mxu0 %v5665_v11  ;;  %1290 = vmatprep.subr.bf16.mxu1 %v5666_v12 }
 0x27d   :  { %1250 = vmatpush1.bf16.msra.mxu0 %v5667_v13  ;;  %1291 = vmatpush1.bf16.msra.mxu1 %v5668_v14 }
 0x27e   :  { %1251 = vmatprep.subr.bf16.mxu0 %v5669_v15  ;;  %1292 = vmatprep.subr.bf16.mxu1 %v5670_v16 }
 0x281   :  { %1252 = vmatpush1.bf16.msra.mxu0 %v5671_v17  ;;  %1293 = vmatpush1.bf16.msra.mxu1 %v5672_v18 }
 0x282   :  { %1253 = vmatprep.subr.bf16.mxu0 %v5673_v19  ;;  %1294 = vmatprep.subr.bf16.mxu1 %v5674_v20 }
 0x285   :  { %1254 = vmatpush1.bf16.msra.mxu0 %v5675_v21  ;;  %1295 = vmatpush1.bf16.msra.mxu1 %v5676_v22 }
 0x286   :  { %1255 = vmatprep.subr.bf16.mxu0 %v5677_v23  ;;  %1296 = vmatprep.subr.bf16.mxu1 %v5678_v24 }
 0x289   :  { %1256 = vmatpush2.bf16.msra.mxu0 %v5679_v25  ;;  %1297 = vmatpush2.bf16.msra.mxu1 %v5680_v26  ;;  %v2761_v26 = vld [vmem:[%s5304_s0 + $0x10] sm:$0xff] }
 0x28a   :  { %1257 = vmatprep.subr.bf16.mxu0 %v5681_v27  ;;  %1298 = vmatprep.subr.bf16.mxu1 %v5682_v28 }
 0x28d   :  { %1258 = vmatpush2.bf16.msra.mxu0 %v5683_v29  ;;  %1299 = vmatpush2.bf16.msra.mxu1 %v5684_v30 }
 0x28e   :  { %1259 = vmatprep.subr.bf16.mxu0 %v5685_v31  ;;  %1300 = vmatprep.subr.bf16.mxu1 %v5686_v32 }
 0x291   :  { %1260 = vmatpush2.bf16.msra.mxu0 %v5687_v33  ;;  %1301 = vmatpush2.bf16.msra.mxu1 %v5688_v34 }
 0x292   :  { %1261 = vmatprep.subr.bf16.mxu0 %v5689_v35  ;;  %1302 = vmatprep.subr.bf16.mxu1 %v5690_v36 }
 0x295   :  { %1262 = vmatpush2.bf16.msra.mxu0 %v5691_v37  ;;  %1303 = vmatpush2.bf16.msra.mxu1 %v5692_v38 }
 0x296   :  { %1263 = vmatprep.subr.bf16.mxu0 %v5693_v39  ;;  %1304 = vmatprep.subr.bf16.mxu1 %v5694_v40 }
 0x299   :  { %1264 = vmatpush2.bf16.msra.mxu0 %v5695_v41  ;;  %1305 = vmatpush2.bf16.msra.mxu1 %v5696_v42 }
 0x29a   :  { %1265 = vmatprep.subr.bf16.mxu0 %v5697_v43  ;;  %1306 = vmatprep.subr.bf16.mxu1 %v5698_v44 }
 0x29d   :  { %1266 = vmatpush2.bf16.msra.mxu0 %v5699_v60  ;;  %1307 = vmatpush2.bf16.msra.mxu1 %v5700_v46 }
 0x29e   :  { %1267 = vmatprep.subr.bf16.mxu0 %v5701_v47  ;;  %1308 = vmatprep.subr.bf16.mxu1 %v5702_v52 }
 0x2a1   :  { %1268 = vmatpush2.bf16.msra.mxu0 %v5703_v1  ;;  %1309 = vmatpush2.bf16.msra.mxu1 %v5704_v54 }
 0x2a2   :  { %1269 = vmatprep.subr.bf16.mxu0 %v5705_v51  ;;  %1310 = vmatprep.subr.bf16.mxu1 %v5706_v0 }
 0x2a5   :  { %1270 = vmatpush2.bf16.msra.mxu0 %v5707_v58  ;;  %1311 = vmatpush2.bf16.msra.mxu1 %v5708_v49 }
 0x2a6   :  { %1366 = vmatprep.subr.bf16.mxu0 %v4072_v63  ;;  %1407 = vmatprep.subr.bf16.mxu1 %v4078_v62 }
 0x308   :  { %v1019_v57 = vpop.f32.mrf.mxu0  ;;  %v1060_v2 = vpop.f32.mrf.mxu1 }
 0x30a   :  { %v1021_v59 = vpop.f32.mrf.mxu0  ;;  %v1062_v55 = vpop.f32.mrf.mxu1 }
 0x30b   :  { %v1071_v61 = vcombine.low %v1019_v57, %v1021_v59  ;;  %v1072_v56 = vcombine.low %v1060_v2, %v1062_v55 }
 0x30c   :  { %v1023_v3 = vpop.f32.mrf.mxu0  ;;  %v1064_v4 = vpop.f32.mrf.mxu1 }
 0x30d   :  { %v1079_v5 = vrot.slane %v1071_v61, %v3845_v53  ;;  %v1086_v6 = vrot.slane %v1072_v56, %v3845_v53 }
 0x30e   :  { %v1024_v7 = vpop.f32.mrf.mxu0  ;;  %v1065_v8 = vpop.f32.mrf.mxu1 }
 0x30f   :  { %v1087_v9 = vcombine.low %v1079_v5, %v1086_v6 }
 0x311   :  { %v1089_v11 = vadd.f32 %v1087_v9, %v5711_v10 }
 0x313   :  { %v2760_v12 = vmul.f32 -1.442695, %v1089_v11  ;;  %v1097_v15 = vrot.slane %v1089_v11, 6 }
 0x315   :  { %2952 = vpow2.f32 %v2760_v12 }
 0x322   :  { %v2953_v13 = vpop.eup %2952 }
 0x323   :  { %v1093_v14 = vadd.f32 1.0, %v2953_v13 }
 0x325   :  { %2954 = vrcp.f32 %v1093_v14 }
 0x326   :  { %2956 = vtanh.f32 %v1097_v15 }
 0x328   :  { %v1146_v16 = vpop.f32.mrf.mxu0  ;;  %v1187_v17 = vpop.f32.mrf.mxu1 }
 0x32a   :  { %v1148_v18 = vpop.f32.mrf.mxu0  ;;  %v1189_v19 = vpop.f32.mrf.mxu1 }
 0x32b   :  { %v1198_v20 = vcombine.low %v1146_v16, %v1148_v18  ;;  %v1199_v21 = vcombine.low %v1187_v17, %v1189_v19 }
 0x32c   :  { %v1150_v22 = vpop.f32.mrf.mxu0  ;;  %v1191_v23 = vpop.f32.mrf.mxu1 }
 0x32d   :  { %v1206_v24 = vrot.slane %v1198_v20, %v3845_v53  ;;  %v1213_v25 = vrot.slane %v1199_v21, %v3845_v53  ;;  %v4104_v21 = vld [vmem:[%s5302_s1 + $0xe0] ss:$16 sps:$4 sm:$0xff]   ;;  %v4116_v22 = vld [vmem:[%s5302_s1 + $0xc4] ss:$16 sps:$4 sm:$0xff]   ;;  %v4122_v23 = vld [vmem:[%s5302_s1 + $0xcc] ss:$16 sps:$4 sm:$0xff]  }
 0x32e   :  { %v1151_v27 = vpop.f32.mrf.mxu0  ;;  %v1192_v28 = vpop.f32.mrf.mxu1 }
 0x32f   :  { %v1214_v29 = vcombine.low %v1206_v24, %v1213_v25  ;;  %v4130_v24 = vld [vmem:[%s5302_s1 + $0xc0] ss:$16 sps:$4 sm:$0xff]   ;;  %v4136_v25 = vld [vmem:[%s5302_s1 + $0xc8] ss:$16 sps:$4 sm:$0xff]   ;;  %v4148_v27 = vld [vmem:[%s5302_s1 + $0xac] ss:$16 sps:$4 sm:$0xff]  }
 0x330   :  { %v4154_v28 = vld [vmem:[%s5302_s1 + $0xa0] ss:$16 sps:$4 sm:$0xff]  }
 0x331   :  { %v1216_v30 = vadd.f32 %v2761_v26, %v1214_v29  ;;  %v4142_v26 = vld [vmem:[%s5302_s1 + $0xa4] ss:$16 sps:$4 sm:$0xff]   ;;  %v4160_v29 = vld [vmem:[%s5302_s1 + $0xa8] ss:$16 sps:$4 sm:$0xff]  }
 0x332   :  { %v2955_v57 = vpop.eup %2954 }
 0x333   :  { %v2762_v2 = vmul.f32 -1.442695, %v1216_v30  ;;  %v1101_v59 = vrot.slane %v2955_v57, 2  ;;  %v2957_v55 = vpop.eup %2956  ;;  %v1224_v6 = vrot.slane %v1216_v30, 6  ;;  %v1107_v7 = vrot.slane %v2955_v57, 4 }
 0x334   :  { %v1104_v56 = vmul.f32 %v2957_v55, %v2955_v57  ;;  %v4166_v30 = vld [vmem:[%s5302_s1 + $0x84] ss:$16 sps:$4 sm:$0xff]   ;;  %v4172_v57 = vld [vmem:[%s5302_s1 + $0x8c] ss:$16 sps:$4 sm:$0xff]  }
 0x335   :  { %2958 = vpow2.f32 %v2762_v2  ;;  %v1103_v61 = vmul.f32 %v1101_v59, %v3966_v45  ;;  %v4178_v2 = vld [vmem:[%s5302_s1 + $0x80] ss:$16 sps:$4 sm:$0xff]   ;;  %v4184_v59 = vld [vmem:[%s5302_s1 + $0x88] ss:$16 sps:$4 sm:$0xff]   ;;  %v4190_v55 = vld [vmem:[%s5302_s1 + $0x64] ss:$16 sps:$4 sm:$0xff]  }
 0x337   :  { %v4090_v3 = vadd.f32 %v1104_v56, %v1103_v61  ;;  %v4196_v61 = vld [vmem:[%s5302_s1 + $0x6c] ss:$16 sps:$4 sm:$0xff]   ;;  %v4202_v56 = vld [vmem:[%s5302_s1 + $0x60] ss:$16 sps:$4 sm:$0xff]  }
 0x339   :  { %2960 = vtanh.f32 %v4090_v3 }
 0x342   :  { %v2959_v4 = vpop.eup %2958 }
 0x343   :  { %v1220_v5 = vadd.f32 1.0, %v2959_v4  ;;  %v4208_v4 = vld [vmem:[%s5302_s1 + $0x68] ss:$16 sps:$4 sm:$0xff]  }
 0x345   :  { %2962 = vrcp.f32 %v1220_v5  ;;  %v4214_v5 = vld [vmem:[%s5302_s1 + $0x44] ss:$16 sps:$4 sm:$0xff]  }
 0x346   :  { %v2961_v8 = vpop.eup %2960  ;;  %2964 = vtanh.f32 %v1224_v6  ;;  %v4220_v6 = vld [vmem:[%s5302_s1 + $0x4c] ss:$16 sps:$4 sm:$0xff]  }
 0x347   :  { %v1109_v9 = vmul.f32 %v2961_v8, %v1107_v7  ;;  %v4226_v7 = vld [vmem:[%s5302_s1 + $0x40] ss:$16 sps:$4 sm:$0xff]   ;;  %v4232_v8 = vld [vmem:[%s5302_s1 + $0x48] ss:$16 sps:$4 sm:$0xff]  }
 0x349   :  { %v1238_v11 = vpack.c.bf16 %v1109_v9, %v1109_v9  ;;  %v4238_v9 = vld [vmem:[%s5302_s1 + $0x24] ss:$16 sps:$4 sm:$0xff]  }
 0x34b   :  { %1271 = vmatprep.mubr.bf16.mxu0 %v1238_v11  ;;  %1312 = vmatprep.mubr.bf16.mxu1 %v1238_v11  ;;  %v4244_v11 = vld [vmem:[%s5302_s1 + $0x2c] ss:$16 sps:$4 sm:$0xff]  }
 0x352   :  { %v2963_v12 = vpop.eup %2962 }
 0x353   :  { %v1228_v13 = vrot.slane %v2963_v12, 2  ;;  %v2965_v14 = vpop.eup %2964  ;;  %v1234_v17 = vrot.slane %v2963_v12, 4 }
 0x354   :  { %v1231_v45 = vmul.f32 %v2965_v14, %v2963_v12  ;;  %v4250_v12 = vld [vmem:[%s5302_s1 + $0x20] ss:$16 sps:$4 sm:$0xff]   ;;  %v4262_v14 = vld [vmem:[%s5302_s1 + $0x4] ss:$16 sps:$4 sm:$0xff]  }
 0x355   :  { %v1230_v15 = vmul.f32 %v1228_v13, %v3970_v50  ;;  %v4110_v50 = vld [vmem:[%s5302_s1 + $0xe8] ss:$16 sps:$4 sm:$0xff]  }
 0x356   :  { %v4256_v13 = vld [vmem:[%s5302_s1 + $0x28] ss:$16 sps:$4 sm:$0xff]  }
 0x357   :  { %v4094_v16 = vadd.f32 %v1231_v45, %v1230_v15  ;;  %v4268_v45 = vld [vmem:[%s5302_s1 + $0xc] ss:$16 sps:$4 sm:$0xff]   ;;  %v4274_v15 = vld [vmem:[%s5302_s1] ss:$16 sps:$4 sm:$0xff]  }
 0x359   :  { %2966 = vtanh.f32 %v4094_v16 }
 0x366   :  { %v2967_v18 = vpop.eup %2966 }
 0x367   :  { %v1236_v19 = vmul.f32 %v2967_v18, %v1234_v17  ;;  %v4280_v17 = vld [vmem:[%s5302_s1 + $0x8] ss:$16 sps:$4 sm:$0xff]   ;;  %v4286_v18 = vld [vmem:[%s5303_s2 + $0xe4] ss:$16 sps:$4 sm:$0xff]  }
 0x368   :  { %5712 = vst [vmem:[#allocation6_spill] sm:$0xff] %v4280_v17  ;;  %5713 = vst [vmem:[#allocation7_spill] sm:$0xff] %v4286_v18 }
 0x369   :  { %v4097_v20 = vpack.c.bf16 %v1236_v19, %v1236_v19  ;;  %v4292_v19 = vld [vmem:[%s5303_s2 + $0xec] ss:$16 sps:$4 sm:$0xff]  }
 0x36a   :  { %5714 = vst [vmem:[#allocation8_spill] sm:$0xff] %v4292_v19 }
 0x36b   :  { %1272 = vmatmul.mubr.bf16.vlgmr.msra.gmra.mxu0 %v4097_v20  ;;  %1313 = vmatmul.mubr.bf16.vlgmr.msra.gmra.mxu1 %v4097_v20 }
 0x36c   :  { %1367 = vmatpush1.bf16.msra.mxu0 %v4104_v21  ;;  %1408 = vmatpush1.bf16.msra.mxu1 %v4110_v50 }
 0x36d   :  { %1368 = vmatprep.subr.bf16.mxu0 %v4116_v22  ;;  %1409 = vmatprep.subr.bf16.mxu1 %v4122_v23 }
 0x36e   :  { %1398 = vmatprep.mubr.bf16.mxu0 %v5604_v48  ;;  %1439 = vmatprep.mubr.bf16.mxu1 %v5604_v48 }
 0x370   :  { %1369 = vmatpush1.bf16.msra.mxu0 %v4130_v24  ;;  %1410 = vmatpush1.bf16.msra.mxu1 %v4136_v25 }
 0x371   :  { %1370 = vmatprep.subr.bf16.mxu0 %v4142_v26  ;;  %1411 = vmatprep.subr.bf16.mxu1 %v4148_v27 }
 0x374   :  { %1371 = vmatpush1.bf16.msra.mxu0 %v4154_v28  ;;  %1412 = vmatpush1.bf16.msra.mxu1 %v4160_v29 }
 0x375   :  { %1372 = vmatprep.subr.bf16.mxu0 %v4166_v30  ;;  %1413 = vmatprep.subr.bf16.mxu1 %v4172_v57 }
 0x378   :  { %1373 = vmatpush1.bf16.msra.mxu0 %v4178_v2  ;;  %1414 = vmatpush1.bf16.msra.mxu1 %v4184_v59 }
 0x379   :  { %1374 = vmatprep.subr.bf16.mxu0 %v4190_v55  ;;  %1415 = vmatprep.subr.bf16.mxu1 %v4196_v61 }
 0x37c   :  { %1375 = vmatpush1.bf16.msra.mxu0 %v4202_v56  ;;  %1416 = vmatpush1.bf16.msra.mxu1 %v4208_v4 }
 0x37d   :  { %1376 = vmatprep.subr.bf16.mxu0 %v4214_v5  ;;  %1417 = vmatprep.subr.bf16.mxu1 %v4220_v6 }
 0x380   :  { %1377 = vmatpush1.bf16.msra.mxu0 %v4226_v7  ;;  %1418 = vmatpush1.bf16.msra.mxu1 %v4232_v8 }
 0x381   :  { %1378 = vmatprep.subr.bf16.mxu0 %v4238_v9  ;;  %1419 = vmatprep.subr.bf16.mxu1 %v4244_v11 }
 0x384   :  { %1379 = vmatpush1.bf16.msra.mxu0 %v4250_v12  ;;  %1420 = vmatpush1.bf16.msra.mxu1 %v4256_v13 }
 0x385   :  { %1380 = vmatprep.subr.bf16.mxu0 %v4262_v14  ;;  %1421 = vmatprep.subr.bf16.mxu1 %v4268_v45 }
 0x388   :  { %1381 = vmatpush1.bf16.msra.mxu0 %v4274_v15  ;;  %1422 = vmatpush1.bf16.msra.mxu1 %v4280_v17  ;;  %v4300_v17 = vld [vmem:[%s5303_s2 + $0xe0] ss:$16 sps:$4 sm:$0xff]  }
 0x389   :  { %1493 = vmatprep.subr.bf16.mxu0 %v4286_v18  ;;  %1534 = vmatprep.subr.bf16.mxu1 %v4292_v19  ;;  %5715 = vst [vmem:[#allocation9_spill] sm:$0xff] %v4300_v17  ;;  %v4306_v18 = vld [vmem:[%s5303_s2 + $0xe8] ss:$16 sps:$4 sm:$0xff]   ;;  %v4312_v19 = vld [vmem:[%s5303_s2 + $0xc4] ss:$16 sps:$4 sm:$0xff]  }
 0x38a   :  { %5716 = vst [vmem:[#allocation10_spill] sm:$0xff] %v4306_v18  ;;  %5717 = vst [vmem:[#allocation11_spill] sm:$0xff] %v4312_v19 }
 0x38b   :  { %1399 = vmatmul.mubr.bf16.vlgmr.msra.gmra.mxu0 %v4097_v20  ;;  %1440 = vmatmul.mubr.bf16.vlgmr.msra.gmra.mxu1 %v4097_v20  ;;  %v4318_v20 = vld [vmem:[%s5303_s2 + $0xcc] ss:$16 sps:$4 sm:$0xff]  }
 0x38c   :  { %1494 = vmatpush1.bf16.msra.mxu0 %v4300_v17  ;;  %1535 = vmatpush1.bf16.msra.mxu1 %v4306_v18  ;;  %5718 = vst [vmem:[#allocation12_spill] sm:$0xff] %v4318_v20  ;;  %v4324_v17 = vld [vmem:[%s5303_s2 + $0xc0] ss:$16 sps:$4 sm:$0xff]   ;;  %v4330_v18 = vld [vmem:[%s5303_s2 + $0xc8] ss:$16 sps:$4 sm:$0xff]  }
 0x38d   :  { %1495 = vmatprep.subr.bf16.mxu0 %v4312_v19  ;;  %1536 = vmatprep.subr.bf16.mxu1 %v4318_v20  ;;  %5719 = vst [vmem:[#allocation13_spill] sm:$0xff] %v4324_v17  ;;  %5720 = vst [vmem:[#allocation14_spill] sm:$0xff] %v4330_v18  ;;  %v4336_v19 = vld [vmem:[%s5303_s2 + $0xa4] ss:$16 sps:$4 sm:$0xff]   ;;  %v4342_v20 = vld [vmem:[%s5303_s2 + $0xac] ss:$16 sps:$4 sm:$0xff]  }
 0x38e   :  { %5721 = vst [vmem:[#allocation15_spill] sm:$0xff] %v4336_v19  ;;  %5722 = vst [vmem:[#allocation16_spill] sm:$0xff] %v4342_v20 }
 0x390   :  { %1496 = vmatpush1.bf16.msra.mxu0 %v4324_v17  ;;  %1537 = vmatpush1.bf16.msra.mxu1 %v4330_v18  ;;  %v4348_v17 = vld [vmem:[%s5303_s2 + $0xa0] ss:$16 sps:$4 sm:$0xff]   ;;  %v4354_v18 = vld [vmem:[%s5303_s2 + $0xa8] ss:$16 sps:$4 sm:$0xff]  }
 0x391   :  { %1497 = vmatprep.subr.bf16.mxu0 %v4336_v19  ;;  %1538 = vmatprep.subr.bf16.mxu1 %v4342_v20  ;;  %5723 = vst [vmem:[#allocation17_spill] sm:$0xff] %v4348_v17  ;;  %5724 = vst [vmem:[#allocation18_spill] sm:$0xff] %v4354_v18  ;;  %v4360_v19 = vld [vmem:[%s5303_s2 + $0x84] ss:$16 sps:$4 sm:$0xff]   ;;  %v4366_v20 = vld [vmem:[%s5303_s2 + $0x8c] ss:$16 sps:$4 sm:$0xff]  }
 0x392   :  { %5725 = vst [vmem:[#allocation19_spill] sm:$0xff] %v4360_v19  ;;  %5726 = vst [vmem:[#allocation20_spill] sm:$0xff] %v4366_v20 }
 0x394   :  { %1498 = vmatpush1.bf16.msra.mxu0 %v4348_v17  ;;  %1539 = vmatpush1.bf16.msra.mxu1 %v4354_v18  ;;  %v4372_v17 = vld [vmem:[%s5303_s2 + $0x80] ss:$16 sps:$4 sm:$0xff]   ;;  %v4378_v18 = vld [vmem:[%s5303_s2 + $0x88] ss:$16 sps:$4 sm:$0xff]  }
 0x395   :  { %1499 = vmatprep.subr.bf16.mxu0 %v4360_v19  ;;  %1540 = vmatprep.subr.bf16.mxu1 %v4366_v20  ;;  %5727 = vst [vmem:[#allocation21_spill] sm:$0xff] %v4372_v17  ;;  %5728 = vst [vmem:[#allocation22_spill] sm:$0xff] %v4378_v18  ;;  %v4384_v19 = vld [vmem:[%s5303_s2 + $0x64] ss:$16 sps:$4 sm:$0xff]   ;;  %v4390_v20 = vld [vmem:[%s5303_s2 + $0x6c] ss:$16 sps:$4 sm:$0xff]  }
 0x396   :  { %5729 = vst [vmem:[#allocation23_spill] sm:$0xff] %v4384_v19  ;;  %5730 = vst [vmem:[#allocation24_spill] sm:$0xff] %v4390_v20 }
 0x398   :  { %1500 = vmatpush1.bf16.msra.mxu0 %v4372_v17  ;;  %1541 = vmatpush1.bf16.msra.mxu1 %v4378_v18  ;;  %v4396_v17 = vld [vmem:[%s5303_s2 + $0x60] ss:$16 sps:$4 sm:$0xff]   ;;  %v4402_v18 = vld [vmem:[%s5303_s2 + $0x68] ss:$16 sps:$4 sm:$0xff]  }
 0x399   :  { %1501 = vmatprep.subr.bf16.mxu0 %v4384_v19  ;;  %1542 = vmatprep.subr.bf16.mxu1 %v4390_v20  ;;  %5731 = vst [vmem:[#allocation25_spill] sm:$0xff] %v4396_v17  ;;  %5732 = vst [vmem:[#allocation26_spill] sm:$0xff] %v4402_v18  ;;  %v4408_v19 = vld [vmem:[%s5303_s2 + $0x44] ss:$16 sps:$4 sm:$0xff]   ;;  %v4414_v20 = vld [vmem:[%s5303_s2 + $0x4c] ss:$16 sps:$4 sm:$0xff]  }
 0x39a   :  { %5733 = vst [vmem:[#allocation27_spill] sm:$0xff] %v4408_v19  ;;  %5734 = vst [vmem:[#allocation28_spill] sm:$0xff] %v4414_v20 }
 0x39c   :  { %1502 = vmatpush1.bf16.msra.mxu0 %v4396_v17  ;;  %1543 = vmatpush1.bf16.msra.mxu1 %v4402_v18  ;;  %v4420_v17 = vld [vmem:[%s5303_s2 + $0x40] ss:$16 sps:$4 sm:$0xff]   ;;  %v4426_v18 = vld [vmem:[%s5303_s2 + $0x48] ss:$16 sps:$4 sm:$0xff]  }
 0x39d   :  { %1503 = vmatprep.subr.bf16.mxu0 %v4408_v19  ;;  %1544 = vmatprep.subr.bf16.mxu1 %v4414_v20  ;;  %5735 = vst [vmem:[#allocation29_spill] sm:$0xff] %v4420_v17  ;;  %5736 = vst [vmem:[#allocation30_spill] sm:$0xff] %v4426_v18  ;;  %v4432_v19 = vld [vmem:[%s5303_s2 + $0x24] ss:$16 sps:$4 sm:$0xff]   ;;  %v4438_v20 = vld [vmem:[%s5303_s2 + $0x2c] ss:$16 sps:$4 sm:$0xff]  }
 0x39e   :  { %5737 = vst [vmem:[#allocation31_spill] sm:$0xff] %v4432_v19  ;;  %5738 = vst [vmem:[#allocation32_spill] sm:$0xff] %v4438_v20 }
 0x3a0   :  { %1504 = vmatpush1.bf16.msra.mxu0 %v4420_v17  ;;  %1545 = vmatpush1.bf16.msra.mxu1 %v4426_v18  ;;  %v4444_v17 = vld [vmem:[%s5303_s2 + $0x20] ss:$16 sps:$4 sm:$0xff]   ;;  %v4450_v18 = vld [vmem:[%s5303_s2 + $0x28] ss:$16 sps:$4 sm:$0xff]  }
 0x3a1   :  { %1505 = vmatprep.subr.bf16.mxu0 %v4432_v19  ;;  %1546 = vmatprep.subr.bf16.mxu1 %v4438_v20  ;;  %5739 = vst [vmem:[#allocation33_spill] sm:$0xff] %v4444_v17  ;;  %5740 = vst [vmem:[#allocation34_spill] sm:$0xff] %v4450_v18  ;;  %v4456_v19 = vld [vmem:[%s5303_s2 + $0x4] ss:$16 sps:$4 sm:$0xff]   ;;  %v4462_v20 = vld [vmem:[%s5303_s2 + $0xc] ss:$16 sps:$4 sm:$0xff]  }
 0x3a2   :  { %5741 = vst [vmem:[#allocation35_spill] sm:$0xff] %v4456_v19  ;;  %5742 = vst [vmem:[#allocation36_spill] sm:$0xff] %v4462_v20 }
 0x3a4   :  { %1506 = vmatpush1.bf16.msra.mxu0 %v4444_v17  ;;  %1547 = vmatpush1.bf16.msra.mxu1 %v4450_v18  ;;  %v4468_v17 = vld [vmem:[%s5303_s2] ss:$16 sps:$4 sm:$0xff]   ;;  %v4474_v18 = vld [vmem:[%s5303_s2 + $0x8] ss:$16 sps:$4 sm:$0xff]  }
 0x3a5   :  { %1507 = vmatprep.subr.bf16.mxu0 %v4456_v19  ;;  %1548 = vmatprep.subr.bf16.mxu1 %v4462_v20  ;;  %5743 = vst [vmem:[#allocation37_spill] sm:$0xff] %v4468_v17  ;;  %5744 = vst [vmem:[#allocation38_spill] sm:$0xff] %v4474_v18  ;;  %v4480_v19 = vld [vmem:[%s5303_s2 + $0x1e4] ss:$16 sps:$4 sm:$0xff]   ;;  %v4486_v20 = vld [vmem:[%s5303_s2 + $0x1ec] ss:$16 sps:$4 sm:$0xff]  }
 0x3a6   :  { %5745 = vst [vmem:[#allocation39_spill] sm:$0xff] %v4480_v19  ;;  %5746 = vst [vmem:[#allocation40_spill] sm:$0xff] %v4486_v20 }
 0x3a8   :  { %1508 = vmatpush1.bf16.msra.mxu0 %v4468_v17  ;;  %1549 = vmatpush1.bf16.msra.mxu1 %v4474_v18  ;;  %v4492_v17 = vld [vmem:[%s5303_s2 + $0x1e0] ss:$16 sps:$4 sm:$0xff]   ;;  %v4498_v18 = vld [vmem:[%s5303_s2 + $0x1e8] ss:$16 sps:$4 sm:$0xff]  }
 0x3a9   :  { %1509 = vmatprep.subr.bf16.mxu0 %v4480_v19  ;;  %1550 = vmatprep.subr.bf16.mxu1 %v4486_v20  ;;  %5747 = vst [vmem:[#allocation41_spill] sm:$0xff] %v4492_v17  ;;  %5748 = vst [vmem:[#allocation42_spill] sm:$0xff] %v4498_v18  ;;  %v4504_v19 = vld [vmem:[%s5303_s2 + $0x1c4] ss:$16 sps:$4 sm:$0xff]   ;;  %v4510_v20 = vld [vmem:[%s5303_s2 + $0x1cc] ss:$16 sps:$4 sm:$0xff]  }
 0x3aa   :  { %5749 = vst [vmem:[#allocation43_spill] sm:$0xff] %v4504_v19  ;;  %5750 = vst [vmem:[#allocation44_spill] sm:$0xff] %v4510_v20 }
 0x3ac   :  { %1510 = vmatpush2.bf16.msra.mxu0 %v4492_v17  ;;  %1551 = vmatpush2.bf16.msra.mxu1 %v4498_v18  ;;  %v4516_v17 = vld [vmem:[%s5303_s2 + $0x1c0] ss:$16 sps:$4 sm:$0xff]   ;;  %v4522_v18 = vld [vmem:[%s5303_s2 + $0x1c8] ss:$16 sps:$4 sm:$0xff]  }
 0x3ad   :  { %1511 = vmatprep.subr.bf16.mxu0 %v4504_v19  ;;  %1552 = vmatprep.subr.bf16.mxu1 %v4510_v20  ;;  %5751 = vst [vmem:[#allocation45_spill] sm:$0xff] %v4516_v17  ;;  %5752 = vst [vmem:[#allocation46_spill] sm:$0xff] %v4522_v18 }
 0x3b0   :  { %1512 = vmatpush2.bf16.msra.mxu0 %v4516_v17  ;;  %1553 = vmatpush2.bf16.msra.mxu1 %v4522_v18 }
 0x3b1   :  { %1513 = vmatprep.subr.bf16.mxu0 %v5685_v31  ;;  %1554 = vmatprep.subr.bf16.mxu1 %v5686_v32 }
 0x3b4   :  { %1514 = vmatpush2.bf16.msra.mxu0 %v5687_v33  ;;  %1555 = vmatpush2.bf16.msra.mxu1 %v5688_v34 }
 0x3b5   :  { %1515 = vmatprep.subr.bf16.mxu0 %v5689_v35  ;;  %1556 = vmatprep.subr.bf16.mxu1 %v5690_v36 }
 0x3b8   :  { %1516 = vmatpush2.bf16.msra.mxu0 %v5691_v37  ;;  %1557 = vmatpush2.bf16.msra.mxu1 %v5692_v38 }
 0x3b9   :  { %1517 = vmatprep.subr.bf16.mxu0 %v5693_v39  ;;  %1558 = vmatprep.subr.bf16.mxu1 %v5694_v40 }
 0x3bc   :  { %1518 = vmatpush2.bf16.msra.mxu0 %v5695_v41  ;;  %1559 = vmatpush2.bf16.msra.mxu1 %v5696_v42 }
 0x3bd   :  { %1519 = vmatprep.subr.bf16.mxu0 %v5697_v43  ;;  %1560 = vmatprep.subr.bf16.mxu1 %v5698_v44 }
 0x3c0   :  { %1520 = vmatpush2.bf16.msra.mxu0 %v5699_v60  ;;  %1561 = vmatpush2.bf16.msra.mxu1 %v5700_v46 }
 0x3c1   :  { %1521 = vmatprep.subr.bf16.mxu0 %v5701_v47  ;;  %1562 = vmatprep.subr.bf16.mxu1 %v5702_v52 }
 0x3c4   :  { %1522 = vmatpush2.bf16.msra.mxu0 %v5703_v1  ;;  %1563 = vmatpush2.bf16.msra.mxu1 %v5704_v54 }
 0x3c5   :  { %1523 = vmatprep.subr.bf16.mxu0 %v5705_v51  ;;  %1564 = vmatprep.subr.bf16.mxu1 %v5706_v0 }
 0x3c8   :  { %1524 = vmatpush2.bf16.msra.mxu0 %v5707_v58  ;;  %1565 = vmatpush2.bf16.msra.mxu1 %v5708_v49 }
 0x3c9   :  { %1620 = vmatprep.subr.bf16.mxu0 %v4072_v63  ;;  %1661 = vmatprep.subr.bf16.mxu1 %v4078_v62 }
 0x42b   :  { %v1273_v31 = vpop.f32.mrf.mxu0  ;;  %v1314_v32 = vpop.f32.mrf.mxu1 }
 0x42d   :  { %v1275_v33 = vpop.f32.mrf.mxu0  ;;  %v1316_v34 = vpop.f32.mrf.mxu1 }
 0x42e   :  { %v1325_v35 = vcombine.low %v1273_v31, %v1275_v33  ;;  %v1326_v36 = vcombine.low %v1314_v32, %v1316_v34 }
 0x42f   :  { %v1277_v37 = vpop.f32.mrf.mxu0  ;;  %v1318_v38 = vpop.f32.mrf.mxu1 }
 0x430   :  { %v1333_v39 = vrot.slane %v1325_v35, %v3845_v53  ;;  %v1340_v40 = vrot.slane %v1326_v36, %v3845_v53  ;;  %v2764_v35 = vld [vmem:[%s5304_s0 + $0x18] sm:$0xff] }
 0x431   :  { %v1278_v41 = vpop.f32.mrf.mxu0  ;;  %v1319_v42 = vpop.f32.mrf.mxu1 }
 0x432   :  { %v1341_v43 = vcombine.low %v1333_v39, %v1340_v40 }
 0x434   :  { %v1343_v44 = vadd.f32 %v1341_v43, %v5711_v10 }
 0x436   :  { %v2763_v60 = vmul.f32 -1.442695, %v1343_v44  ;;  %v1351_v52 = vrot.slane %v1343_v44, 6 }
 0x438   :  { %2968 = vpow2.f32 %v2763_v60 }
 0x445   :  { %v2969_v46 = vpop.eup %2968 }
 0x446   :  { %v1347_v47 = vadd.f32 1.0, %v2969_v46 }
 0x448   :  { %2970 = vrcp.f32 %v1347_v47 }
 0x449   :  { %2972 = vtanh.f32 %v1351_v52 }
 0x44b   :  { %v1400_v1 = vpop.f32.mrf.mxu0  ;;  %v1441_v54 = vpop.f32.mrf.mxu1 }
 0x44d   :  { %v1402_v51 = vpop.f32.mrf.mxu0  ;;  %v1443_v0 = vpop.f32.mrf.mxu1 }
 0x44e   :  { %v1452_v58 = vcombine.low %v1400_v1, %v1402_v51  ;;  %v1453_v49 = vcombine.low %v1441_v54, %v1443_v0 }
 0x44f   :  { %v1404_v31 = vpop.f32.mrf.mxu0  ;;  %v1445_v32 = vpop.f32.mrf.mxu1 }
 0x450   :  { %v1460_v33 = vrot.slane %v1452_v58, %v3845_v53  ;;  %v1467_v34 = vrot.slane %v1453_v49, %v3845_v53 }
 0x451   :  { %v1405_v36 = vpop.f32.mrf.mxu0  ;;  %v1446_v37 = vpop.f32.mrf.mxu1 }
 0x452   :  { %v1468_v38 = vcombine.low %v1460_v33, %v1467_v34 }
 0x454   :  { %v1470_v39 = vadd.f32 %v2764_v35, %v1468_v38 }
 0x455   :  { %v2971_v40 = vpop.eup %2970 }
 0x456   :  { %v2765_v41 = vmul.f32 -1.442695, %v1470_v39  ;;  %v1355_v42 = vrot.slane %v2971_v40, 2  ;;  %v2973_v43 = vpop.eup %2972  ;;  %v1478_v1 = vrot.slane %v1470_v39, 6  ;;  %v1361_v54 = vrot.slane %v2971_v40, 4  ;;  %v5754_v39 = vld [vmem:[#allocation7_spill] sm:$0xff] }
 0x457   :  { %v1358_v60 = vmul.f32 %v2973_v43, %v2971_v40  ;;  %v5755_v40 = vld [vmem:[#allocation8_spill] sm:$0xff]  ;;  %v5758_v43 = vld [vmem:[#allocation11_spill] sm:$0xff] }
 0x458   :  { %2974 = vpow2.f32 %v2765_v41  ;;  %v1357_v44 = vmul.f32 %v1355_v42, %v4090_v3  ;;  %v5756_v41 = vld [vmem:[#allocation9_spill] sm:$0xff]  ;;  %v5757_v42 = vld [vmem:[#allocation10_spill] sm:$0xff] }
 0x45a   :  { %v4560_v46 = vadd.f32 %v1358_v60, %v1357_v44  ;;  %v5759_v44 = vld [vmem:[#allocation12_spill] sm:$0xff]  ;;  %v5760_v60 = vld [vmem:[#allocation13_spill] sm:$0xff] }
 0x45c   :  { %2976 = vtanh.f32 %v4560_v46 }
 0x465   :  { %v2975_v47 = vpop.eup %2974 }
 0x466   :  { %v1474_v52 = vadd.f32 1.0, %v2975_v47  ;;  %v5761_v47 = vld [vmem:[#allocation14_spill] sm:$0xff] }
 0x468   :  { %2978 = vrcp.f32 %v1474_v52  ;;  %v5762_v52 = vld [vmem:[#allocation15_spill] sm:$0xff] }
 0x469   :  { %v2977_v51 = vpop.eup %2976  ;;  %2980 = vtanh.f32 %v1478_v1  ;;  %v5763_v1 = vld [vmem:[#allocation16_spill] sm:$0xff] }
 0x46a   :  { %v1363_v0 = vmul.f32 %v2977_v51, %v1361_v54  ;;  %v5764_v54 = vld [vmem:[#allocation17_spill] sm:$0xff]  ;;  %v5765_v51 = vld [vmem:[#allocation18_spill] sm:$0xff] }
 0x46c   :  { %v1492_v58 = vpack.c.bf16 %v1363_v0, %v1363_v0  ;;  %v5766_v0 = vld [vmem:[#allocation19_spill] sm:$0xff] }
 0x46e   :  { %1525 = vmatprep.mubr.bf16.mxu0 %v1492_v58  ;;  %1566 = vmatprep.mubr.bf16.mxu1 %v1492_v58  ;;  %v5767_v58 = vld [vmem:[#allocation20_spill] sm:$0xff] }
 0x475   :  { %v2979_v49 = vpop.eup %2978 }
 0x476   :  { %v1482_v31 = vrot.slane %v2979_v49, 2  ;;  %v2981_v32 = vpop.eup %2980  ;;  %v1488_v35 = vrot.slane %v2979_v49, 4 }
 0x477   :  { %v1485_v3 = vmul.f32 %v2981_v32, %v2979_v49  ;;  %v5768_v49 = vld [vmem:[#allocation21_spill] sm:$0xff]  ;;  %v5770_v32 = vld [vmem:[#allocation23_spill] sm:$0xff] }
 0x478   :  { %v1484_v33 = vmul.f32 %v1482_v31, %v4094_v16  ;;  %v5753_v16 = vld [vmem:[#allocation6_spill] sm:$0xff] }
 0x479   :  { %v5769_v31 = vld [vmem:[#allocation22_spill] sm:$0xff] }
 0x47a   :  { %v4564_v34 = vadd.f32 %v1485_v3, %v1484_v33  ;;  %v5771_v3 = vld [vmem:[#allocation24_spill] sm:$0xff]  ;;  %v5772_v33 = vld [vmem:[#allocation25_spill] sm:$0xff] }
 0x47c   :  { %2982 = vtanh.f32 %v4564_v34 }
 0x489   :  { %v2983_v36 = vpop.eup %2982 }
 0x48a   :  { %v1490_v37 = vmul.f32 %v2983_v36, %v1488_v35  ;;  %v5773_v35 = vld [vmem:[#allocation26_spill] sm:$0xff]  ;;  %v5774_v36 = vld [vmem:[#allocation27_spill] sm:$0xff] }
 0x48c   :  { %v1491_v38 = vpack.c.bf16 %v1490_v37, %v1490_v37  ;;  %v5775_v37 = vld [vmem:[#allocation28_spill] sm:$0xff] }
 0x48e   :  { %1526 = vmatmul.mubr.bf16.vlgmr.msra.gmra.mxu0 %v1491_v38  ;;  %1567 = vmatmul.mubr.bf16.vlgmr.msra.gmra.mxu1 %v1491_v38 }
 0x48f   :  { %1621 = vmatpush1.bf16.msra.mxu0 %v4104_v21  ;;  %1662 = vmatpush1.bf16.msra.mxu1 %v4110_v50 }
 0x490   :  { %1622 = vmatprep.subr.bf16.mxu0 %v4116_v22  ;;  %1663 = vmatprep.subr.bf16.mxu1 %v4122_v23 }
 0x491   :  { %1652 = vmatprep.mubr.bf16.mxu0 %v5604_v48  ;;  %1693 = vmatprep.mubr.bf16.mxu1 %v5604_v48 }
 0x493   :  { %1623 = vmatpush1.bf16.msra.mxu0 %v4130_v24  ;;  %1664 = vmatpush1.bf16.msra.mxu1 %v4136_v25 }
 0x494   :  { %1624 = vmatprep.subr.bf16.mxu0 %v4142_v26  ;;  %1665 = vmatprep.subr.bf16.mxu1 %v4148_v27 }
 0x497   :  { %1625 = vmatpush1.bf16.msra.mxu0 %v4154_v28  ;;  %1666 = vmatpush1.bf16.msra.mxu1 %v4160_v29 }
 0x498   :  { %1626 = vmatprep.subr.bf16.mxu0 %v4166_v30  ;;  %1667 = vmatprep.subr.bf16.mxu1 %v4172_v57 }
 0x49b   :  { %1627 = vmatpush1.bf16.msra.mxu0 %v4178_v2  ;;  %1668 = vmatpush1.bf16.msra.mxu1 %v4184_v59 }
 0x49c   :  { %1628 = vmatprep.subr.bf16.mxu0 %v4190_v55  ;;  %1669 = vmatprep.subr.bf16.mxu1 %v4196_v61 }
 0x49f   :  { %1629 = vmatpush1.bf16.msra.mxu0 %v4202_v56  ;;  %1670 = vmatpush1.bf16.msra.mxu1 %v4208_v4 }
 0x4a0   :  { %1630 = vmatprep.subr.bf16.mxu0 %v4214_v5  ;;  %1671 = vmatprep.subr.bf16.mxu1 %v4220_v6 }
 0x4a3   :  { %1631 = vmatpush1.bf16.msra.mxu0 %v4226_v7  ;;  %1672 = vmatpush1.bf16.msra.mxu1 %v4232_v8 }
 0x4a4   :  { %1632 = vmatprep.subr.bf16.mxu0 %v4238_v9  ;;  %1673 = vmatprep.subr.bf16.mxu1 %v4244_v11 }
 0x4a7   :  { %1633 = vmatpush1.bf16.msra.mxu0 %v4250_v12  ;;  %1674 = vmatpush1.bf16.msra.mxu1 %v4256_v13 }
 0x4a8   :  { %1634 = vmatprep.subr.bf16.mxu0 %v4262_v14  ;;  %1675 = vmatprep.subr.bf16.mxu1 %v4268_v45 }
 0x4ab   :  { %1635 = vmatpush1.bf16.msra.mxu0 %v4274_v15  ;;  %1676 = vmatpush1.bf16.msra.mxu1 %v5753_v16 }
 0x4ac   :  { %1747 = vmatprep.subr.bf16.mxu0 %v5754_v39  ;;  %1788 = vmatprep.subr.bf16.mxu1 %v5755_v40 }
 0x4ae   :  { %1653 = vmatmul.mubr.bf16.vlgmr.msra.gmra.mxu0 %v1491_v38  ;;  %1694 = vmatmul.mubr.bf16.vlgmr.msra.gmra.mxu1 %v1491_v38  ;;  %v5776_v38 = vld [vmem:[#allocation29_spill] sm:$0xff] }
 0x4af   :  { %1748 = vmatpush1.bf16.msra.mxu0 %v5756_v41  ;;  %1789 = vmatpush1.bf16.msra.mxu1 %v5757_v42 }
 0x4b0   :  { %1749 = vmatprep.subr.bf16.mxu0 %v5758_v43  ;;  %1790 = vmatprep.subr.bf16.mxu1 %v5759_v44 }
 0x4b3   :  { %1750 = vmatpush1.bf16.msra.mxu0 %v5760_v60  ;;  %1791 = vmatpush1.bf16.msra.mxu1 %v5761_v47 }
 0x4b4   :  { %1751 = vmatprep.subr.bf16.mxu0 %v5762_v52  ;;  %1792 = vmatprep.subr.bf16.mxu1 %v5763_v1 }
 0x4b7   :  { %1752 = vmatpush1.bf16.msra.mxu0 %v5764_v54  ;;  %1793 = vmatpush1.bf16.msra.mxu1 %v5765_v51 }
 0x4b8   :  { %1753 = vmatprep.subr.bf16.mxu0 %v5766_v0  ;;  %1794 = vmatprep.subr.bf16.mxu1 %v5767_v58  ;;  %v5777_v0 = vld [vmem:[#allocation30_spill] sm:$0xff]  ;;  %v5778_v58 = vld [vmem:[#allocation31_spill] sm:$0xff] }
 0x4bb   :  { %1754 = vmatpush1.bf16.msra.mxu0 %v5768_v49  ;;  %1795 = vmatpush1.bf16.msra.mxu1 %v5769_v31  ;;  %v5779_v49 = vld [vmem:[#allocation32_spill] sm:$0xff]  ;;  %v5780_v31 = vld [vmem:[#allocation33_spill] sm:$0xff] }
 0x4bc   :  { %1755 = vmatprep.subr.bf16.mxu0 %v5770_v32  ;;  %1796 = vmatprep.subr.bf16.mxu1 %v5771_v3  ;;  %v5781_v32 = vld [vmem:[#allocation34_spill] sm:$0xff]  ;;  %v5782_v3 = vld [vmem:[#allocation35_spill] sm:$0xff] }
 0x4bf   :  { %1756 = vmatpush1.bf16.msra.mxu0 %v5772_v33  ;;  %1797 = vmatpush1.bf16.msra.mxu1 %v5773_v35  ;;  %v5783_v33 = vld [vmem:[#allocation36_spill] sm:$0xff]  ;;  %v5784_v35 = vld [vmem:[#allocation37_spill] sm:$0xff] }
 0x4c0   :  { %1757 = vmatprep.subr.bf16.mxu0 %v5774_v36  ;;  %1798 = vmatprep.subr.bf16.mxu1 %v5775_v37  ;;  %v5785_v36 = vld [vmem:[#allocation38_spill] sm:$0xff]  ;;  %v5786_v37 = vld [vmem:[#allocation39_spill] sm:$0xff] }
 0x4c3   :  { %1758 = vmatpush1.bf16.msra.mxu0 %v5776_v38  ;;  %1799 = vmatpush1.bf16.msra.mxu1 %v5777_v0  ;;  %v5787_v38 = vld [vmem:[#allocation40_spill] sm:$0xff]  ;;  %v5788_v0 = vld [vmem:[#allocation41_spill] sm:$0xff] }
 0x4c4   :  { %1759 = vmatprep.subr.bf16.mxu0 %v5778_v58  ;;  %1800 = vmatprep.subr.bf16.mxu1 %v5779_v49  ;;  %v5789_v58 = vld [vmem:[#allocation42_spill] sm:$0xff] }
 0x4c7   :  { %1760 = vmatpush1.bf16.msra.mxu0 %v5780_v31  ;;  %1801 = vmatpush1.bf16.msra.mxu1 %v5781_v32 }
 0x4c8   :  { %1761 = vmatprep.subr.bf16.mxu0 %v5782_v3  ;;  %1802 = vmatprep.subr.bf16.mxu1 %v5783_v33 }
 0x4cb   :  { %1762 = vmatpush1.bf16.msra.mxu0 %v5784_v35  ;;  %1803 = vmatpush1.bf16.msra.mxu1 %v5785_v36  ;;  %v4642_v36 = vld [vmem:[%s5303_s2 + $0x1a4] ss:$16 sps:$4 sm:$0xff]  }
 0x4cc   :  { %1763 = vmatprep.subr.bf16.mxu0 %v5786_v37  ;;  %1804 = vmatprep.subr.bf16.mxu1 %v5787_v38  ;;  %5790 = vst [vmem:[#allocation47_spill] sm:$0xff] %v4642_v36 }
 0x4cf   :  { %1764 = vmatpush2.bf16.msra.mxu0 %v5788_v0  ;;  %1805 = vmatpush2.bf16.msra.mxu1 %v5789_v58  ;;  %v4648_v0 = vld [vmem:[%s5303_s2 + $0x1ac] ss:$16 sps:$4 sm:$0xff]  }
 0x4d0   :  { %1765 = vmatprep.subr.bf16.mxu0 %v4504_v19  ;;  %1806 = vmatprep.subr.bf16.mxu1 %v4510_v20  ;;  %5791 = vst [vmem:[#allocation48_spill] sm:$0xff] %v4648_v0 }
 0x4d3   :  { %1766 = vmatpush2.bf16.msra.mxu0 %v4516_v17  ;;  %1807 = vmatpush2.bf16.msra.mxu1 %v4522_v18  ;;  %v4654_v17 = vld [vmem:[%s5303_s2 + $0x1a0] ss:$16 sps:$4 sm:$0xff]   ;;  %v4660_v18 = vld [vmem:[%s5303_s2 + $0x1a8] ss:$16 sps:$4 sm:$0xff]  }
 0x4d4   :  { %1767 = vmatprep.subr.bf16.mxu0 %v4642_v36  ;;  %1808 = vmatprep.subr.bf16.mxu1 %v4648_v0  ;;  %5792 = vst [vmem:[#allocation49_spill] sm:$0xff] %v4654_v17  ;;  %5793 = vst [vmem:[#allocation50_spill] sm:$0xff] %v4660_v18  ;;  %v4666_v36 = vld [vmem:[%s5303_s2 + $0x184] ss:$16 sps:$4 sm:$0xff]   ;;  %v4672_v0 = vld [vmem:[%s5303_s2 + $0x18c] ss:$16 sps:$4 sm:$0xff]  }
 0x4d5   :  { %5794 = vst [vmem:[#allocation51_spill] sm:$0xff] %v4666_v36  ;;  %5795 = vst [vmem:[#allocation52_spill] sm:$0xff] %v4672_v0 }
 0x4d7   :  { %1768 = vmatpush2.bf16.msra.mxu0 %v4654_v17  ;;  %1809 = vmatpush2.bf16.msra.mxu1 %v4660_v18  ;;  %v4678_v17 = vld [vmem:[%s5303_s2 + $0x180] ss:$16 sps:$4 sm:$0xff]   ;;  %v4684_v18 = vld [vmem:[%s5303_s2 + $0x188] ss:$16 sps:$4 sm:$0xff]  }
 0x4d8   :  { %1769 = vmatprep.subr.bf16.mxu0 %v4666_v36  ;;  %1810 = vmatprep.subr.bf16.mxu1 %v4672_v0  ;;  %5796 = vst [vmem:[#allocation53_spill] sm:$0xff] %v4678_v17  ;;  %5797 = vst [vmem:[#allocation54_spill] sm:$0xff] %v4684_v18  ;;  %v4690_v36 = vld [vmem:[%s5303_s2 + $0x164] ss:$16 sps:$4 sm:$0xff]   ;;  %v4696_v0 = vld [vmem:[%s5303_s2 + $0x16c] ss:$16 sps:$4 sm:$0xff]  }
 0x4d9   :  { %5798 = vst [vmem:[#allocation55_spill] sm:$0xff] %v4690_v36  ;;  %5799 = vst [vmem:[#allocation56_spill] sm:$0xff] %v4696_v0 }
 0x4db   :  { %1770 = vmatpush2.bf16.msra.mxu0 %v4678_v17  ;;  %1811 = vmatpush2.bf16.msra.mxu1 %v4684_v18  ;;  %v4702_v17 = vld [vmem:[%s5303_s2 + $0x160] ss:$16 sps:$4 sm:$0xff]   ;;  %v4708_v18 = vld [vmem:[%s5303_s2 + $0x168] ss:$16 sps:$4 sm:$0xff]  }
 0x4dc   :  { %1771 = vmatprep.subr.bf16.mxu0 %v4690_v36  ;;  %1812 = vmatprep.subr.bf16.mxu1 %v4696_v0  ;;  %5800 = vst [vmem:[#allocation3_spill] sm:$0xff] %v4702_v17  ;;  %5801 = vst [vmem:[#allocation6_spill] sm:$0xff] %v4708_v18  ;;  %v4714_v36 = vld [vmem:[%s5303_s2 + $0x144] ss:$16 sps:$4 sm:$0xff]   ;;  %v4720_v0 = vld [vmem:[%s5303_s2 + $0x14c] ss:$16 sps:$4 sm:$0xff]  }
 0x4dd   :  { %5802 = vst [vmem:[#allocation7_spill] sm:$0xff] %v4714_v36  ;;  %5803 = vst [vmem:[#allocation8_spill] sm:$0xff] %v4720_v0 }
 0x4df   :  { %1772 = vmatpush2.bf16.msra.mxu0 %v4702_v17  ;;  %1813 = vmatpush2.bf16.msra.mxu1 %v4708_v18  ;;  %v4726_v17 = vld [vmem:[%s5303_s2 + $0x140] ss:$16 sps:$4 sm:$0xff]   ;;  %v4732_v18 = vld [vmem:[%s5303_s2 + $0x148] ss:$16 sps:$4 sm:$0xff]  }
 0x4e0   :  { %1773 = vmatprep.subr.bf16.mxu0 %v4714_v36  ;;  %1814 = vmatprep.subr.bf16.mxu1 %v4720_v0  ;;  %5804 = vst [vmem:[#allocation9_spill] sm:$0xff] %v4726_v17  ;;  %5805 = vst [vmem:[#allocation10_spill] sm:$0xff] %v4732_v18  ;;  %v4738_v36 = vld [vmem:[%s5303_s2 + $0x124] ss:$16 sps:$4 sm:$0xff]   ;;  %v4744_v0 = vld [vmem:[%s5303_s2 + $0x12c] ss:$16 sps:$4 sm:$0xff]  }
 0x4e1   :  { %5806 = vst [vmem:[#allocation11_spill] sm:$0xff] %v4738_v36  ;;  %5807 = vst [vmem:[#allocation12_spill] sm:$0xff] %v4744_v0 }
 0x4e3   :  { %1774 = vmatpush2.bf16.msra.mxu0 %v4726_v17  ;;  %1815 = vmatpush2.bf16.msra.mxu1 %v4732_v18  ;;  %v4750_v17 = vld [vmem:[%s5303_s2 + $0x120] ss:$16 sps:$4 sm:$0xff]   ;;  %v4756_v18 = vld [vmem:[%s5303_s2 + $0x128] ss:$16 sps:$4 sm:$0xff]  }
 0x4e4   :  { %1775 = vmatprep.subr.bf16.mxu0 %v4738_v36  ;;  %1816 = vmatprep.subr.bf16.mxu1 %v4744_v0  ;;  %5808 = vst [vmem:[#allocation13_spill] sm:$0xff] %v4750_v17  ;;  %5809 = vst [vmem:[#allocation14_spill] sm:$0xff] %v4756_v18  ;;  %v4762_v36 = vld [vmem:[%s5303_s2 + $0x104] ss:$16 sps:$4 sm:$0xff]   ;;  %v4768_v0 = vld [vmem:[%s5303_s2 + $0x10c] ss:$16 sps:$4 sm:$0xff]  }
 0x4e5   :  { %5810 = vst [vmem:[#allocation15_spill] sm:$0xff] %v4762_v36  ;;  %5811 = vst [vmem:[#allocation16_spill] sm:$0xff] %v4768_v0 }
 0x4e7   :  { %1776 = vmatpush2.bf16.msra.mxu0 %v4750_v17  ;;  %1817 = vmatpush2.bf16.msra.mxu1 %v4756_v18  ;;  %v4774_v17 = vld [vmem:[%s5303_s2 + $0x100] ss:$16 sps:$4 sm:$0xff]   ;;  %v4780_v18 = vld [vmem:[%s5303_s2 + $0x108] ss:$16 sps:$4 sm:$0xff]  }
 0x4e8   :  { %1777 = vmatprep.subr.bf16.mxu0 %v4762_v36  ;;  %1818 = vmatprep.subr.bf16.mxu1 %v4768_v0  ;;  %5812 = vst [vmem:[#allocation17_spill] sm:$0xff] %v4774_v17  ;;  %5813 = vst [vmem:[#allocation57_spill] sm:$0xff] %v4780_v18 }
 0x4eb   :  { %1778 = vmatpush2.bf16.msra.mxu0 %v4774_v17  ;;  %1819 = vmatpush2.bf16.msra.mxu1 %v4780_v18 }
 0x4ec   :  { %1874 = vmatprep.subr.bf16.mxu0 %v4072_v63  ;;  %1915 = vmatprep.subr.bf16.mxu1 %v4078_v62 }
 0x54e   :  { %v1527_v36 = vpop.f32.mrf.mxu0  ;;  %v1568_v0 = vpop.f32.mrf.mxu1 }
 0x550   :  { %v1529_v20 = vpop.f32.mrf.mxu0  ;;  %v1570_v19 = vpop.f32.mrf.mxu1 }
 0x551   :  { %v1579_v58 = vcombine.low %v1527_v36, %v1529_v20  ;;  %v1580_v38 = vcombine.low %v1568_v0, %v1570_v19 }
 0x552   :  { %v1531_v37 = vpop.f32.mrf.mxu0  ;;  %v1572_v35 = vpop.f32.mrf.mxu1 }
 0x553   :  { %v1587_v17 = vrot.slane %v1579_v58, %v3845_v53  ;;  %v1594_v33 = vrot.slane %v1580_v38, %v3845_v53 }
 0x554   :  { %v1532_v3 = vpop.f32.mrf.mxu0  ;;  %v1573_v32 = vpop.f32.mrf.mxu1 }
 0x555   :  { %v1595_v31 = vcombine.low %v1587_v17, %v1594_v33 }
 0x557   :  { %v1597_v18 = vadd.f32 %v1595_v31, %v5711_v10 }
 0x559   :  { %v2766_v63 = vmul.f32 -1.442695, %v1597_v18  ;;  %v1605_v51 = vrot.slane %v1597_v18, 6 }
 0x55b   :  { %2984 = vpow2.f32 %v2766_v63  ;;  %v2767_v63 = vld [vmem:[%s5304_s0 + $0x20] sm:$0xff] }
 0x568   :  { %v2985_v62 = vpop.eup %2984 }
 0x569   :  { %v1601_v49 = vadd.f32 1.0, %v2985_v62 }
 0x56b   :  { %2986 = vrcp.f32 %v1601_v49 }
 0x56c   :  { %2988 = vtanh.f32 %v1605_v51 }
 0x56e   :  { %v1654_v20 = vpop.f32.mrf.mxu0  ;;  %v1695_v19 = vpop.f32.mrf.mxu1 }
 0x570   :  { %v1656_v0 = vpop.f32.mrf.mxu0  ;;  %v1697_v35 = vpop.f32.mrf.mxu1 }
 0x571   :  { %v1706_v36 = vcombine.low %v1654_v20, %v1656_v0  ;;  %v1707_v58 = vcombine.low %v1695_v19, %v1697_v35 }
 0x572   :  { %v1658_v37 = vpop.f32.mrf.mxu0  ;;  %v1699_v38 = vpop.f32.mrf.mxu1 }
 0x573   :  { %v1714_v32 = vrot.slane %v1706_v36, %v3845_v53  ;;  %v1721_v17 = vrot.slane %v1707_v58, %v3845_v53 }
 0x574   :  { %v1659_v62 = vpop.f32.mrf.mxu0  ;;  %v1700_v10 = vpop.f32.mrf.mxu1 }
 0x575   :  { %v1722_v18 = vcombine.low %v1714_v32, %v1721_v17 }
 0x577   :  { %v1724_v51 = vadd.f32 %v2767_v63, %v1722_v18 }
 0x578   :  { %v2987_v49 = vpop.eup %2986 }
 0x579   :  { %v2768_v31 = vmul.f32 -1.442695, %v1724_v51  ;;  %v1609_v3 = vrot.slane %v2987_v49, 2  ;;  %v2989_v33 = vpop.eup %2988  ;;  %v1732_v58 = vrot.slane %v1724_v51, 6  ;;  %v1615_v37 = vrot.slane %v2987_v49, 4 }
 0x57a   :  { %v1612_v19 = vmul.f32 %v2989_v33, %v2987_v49 }
 0x57b   :  { %2990 = vpow2.f32 %v2768_v31  ;;  %v1611_v20 = vmul.f32 %v1609_v3, %v4560_v46 }
 0x57d   :  { %v4794_v0 = vadd.f32 %v1612_v19, %v1611_v20  ;;  %v5815_v20 = vld [vmem:[#allocation19_spill] sm:$0xff]  ;;  %v5816_v19 = vld [vmem:[#allocation20_spill] sm:$0xff] }
 0x57f   :  { %2992 = vtanh.f32 %v4794_v0 }
 0x588   :  { %v2991_v35 = vpop.eup %2990 }
 0x589   :  { %v1728_v36 = vadd.f32 1.0, %v2991_v35  ;;  %v5817_v35 = vld [vmem:[#allocation21_spill] sm:$0xff] }
 0x58b   :  { %2994 = vrcp.f32 %v1728_v36  ;;  %v5818_v36 = vld [vmem:[#allocation22_spill] sm:$0xff] }
 0x58c   :  { %v2993_v38 = vpop.eup %2992  ;;  %2996 = vtanh.f32 %v1732_v58  ;;  %v5819_v58 = vld [vmem:[#allocation23_spill] sm:$0xff] }
 0x58d   :  { %v1617_v32 = vmul.f32 %v2993_v38, %v1615_v37  ;;  %v5820_v37 = vld [vmem:[#allocation24_spill] sm:$0xff]  ;;  %v5821_v38 = vld [vmem:[#allocation25_spill] sm:$0xff] }
 0x58f   :  { %v1746_v17 = vpack.c.bf16 %v1617_v32, %v1617_v32  ;;  %v5822_v32 = vld [vmem:[#allocation26_spill] sm:$0xff] }
 0x591   :  { %1779 = vmatprep.mubr.bf16.mxu0 %v1746_v17  ;;  %1820 = vmatprep.mubr.bf16.mxu1 %v1746_v17  ;;  %v5823_v17 = vld [vmem:[#allocation27_spill] sm:$0xff] }
 0x598   :  { %v2995_v63 = vpop.eup %2994 }
 0x599   :  { %v1736_v62 = vrot.slane %v2995_v63, 2  ;;  %v2997_v10 = vpop.eup %2996  ;;  %v1742_v3 = vrot.slane %v2995_v63, 4 }
 0x59a   :  { %v1739_v46 = vmul.f32 %v2997_v10, %v2995_v63  ;;  %v5824_v63 = vld [vmem:[#allocation28_spill] sm:$0xff]  ;;  %v5826_v10 = vld [vmem:[#allocation30_spill] sm:$0xff] }
 0x59b   :  { %v1738_v18 = vmul.f32 %v1736_v62, %v4564_v34  ;;  %v5814_v34 = vld [vmem:[#allocation18_spill] sm:$0xff]  ;;  %v5825_v62 = vld [vmem:[#allocation29_spill] sm:$0xff] }
 0x59d   :  { %v4798_v31 = vadd.f32 %v1739_v46, %v1738_v18  ;;  %v5827_v46 = vld [vmem:[#allocation31_spill] sm:$0xff]  ;;  %v5828_v18 = vld [vmem:[#allocation32_spill] sm:$0xff] }
 0x59f   :  { %2998 = vtanh.f32 %v4798_v31 }
 0x5ac   :  { %v2999_v51 = vpop.eup %2998 }
 0x5ad   :  { %v1744_v33 = vmul.f32 %v2999_v51, %v1742_v3  ;;  %v5829_v3 = vld [vmem:[#allocation33_spill] sm:$0xff]  ;;  %v5830_v51 = vld [vmem:[#allocation34_spill] sm:$0xff] }
 0x5af   :  { %v1745_v49 = vpack.c.bf16 %v1744_v33, %v1744_v33  ;;  %v5831_v33 = vld [vmem:[#allocation35_spill] sm:$0xff] }
 0x5b1   :  { %1780 = vmatmul.mubr.bf16.vlgmr.msra.gmra.mxu0 %v1745_v49  ;;  %1821 = vmatmul.mubr.bf16.vlgmr.msra.gmra.mxu1 %v1745_v49 }
 0x5b2   :  { %1875 = vmatpush1.bf16.msra.mxu0 %v4104_v21  ;;  %1916 = vmatpush1.bf16.msra.mxu1 %v4110_v50 }
 0x5b3   :  { %1876 = vmatprep.subr.bf16.mxu0 %v4116_v22  ;;  %1917 = vmatprep.subr.bf16.mxu1 %v4122_v23 }
 0x5b4   :  { %1906 = vmatprep.mubr.bf16.mxu0 %v5604_v48  ;;  %1947 = vmatprep.mubr.bf16.mxu1 %v5604_v48 }
 0x5b6   :  { %1877 = vmatpush1.bf16.msra.mxu0 %v4130_v24  ;;  %1918 = vmatpush1.bf16.msra.mxu1 %v4136_v25 }
 0x5b7   :  { %1878 = vmatprep.subr.bf16.mxu0 %v4142_v26  ;;  %1919 = vmatprep.subr.bf16.mxu1 %v4148_v27 }
 0x5ba   :  { %1879 = vmatpush1.bf16.msra.mxu0 %v4154_v28  ;;  %1920 = vmatpush1.bf16.msra.mxu1 %v4160_v29 }
 0x5bb   :  { %1880 = vmatprep.subr.bf16.mxu0 %v4166_v30  ;;  %1921 = vmatprep.subr.bf16.mxu1 %v4172_v57 }
 0x5be   :  { %1881 = vmatpush1.bf16.msra.mxu0 %v4178_v2  ;;  %1922 = vmatpush1.bf16.msra.mxu1 %v4184_v59 }
 0x5bf   :  { %1882 = vmatprep.subr.bf16.mxu0 %v4190_v55  ;;  %1923 = vmatprep.subr.bf16.mxu1 %v4196_v61 }
 0x5c2   :  { %1883 = vmatpush1.bf16.msra.mxu0 %v4202_v56  ;;  %1924 = vmatpush1.bf16.msra.mxu1 %v4208_v4 }
 0x5c3   :  { %1884 = vmatprep.subr.bf16.mxu0 %v4214_v5  ;;  %1925 = vmatprep.subr.bf16.mxu1 %v4220_v6 }
 0x5c6   :  { %1885 = vmatpush1.bf16.msra.mxu0 %v4226_v7  ;;  %1926 = vmatpush1.bf16.msra.mxu1 %v4232_v8 }
 0x5c7   :  { %1886 = vmatprep.subr.bf16.mxu0 %v4238_v9  ;;  %1927 = vmatprep.subr.bf16.mxu1 %v4244_v11 }
 0x5ca   :  { %1887 = vmatpush1.bf16.msra.mxu0 %v4250_v12  ;;  %1928 = vmatpush1.bf16.msra.mxu1 %v4256_v13 }
 0x5cb   :  { %1888 = vmatprep.subr.bf16.mxu0 %v4262_v14  ;;  %1929 = vmatprep.subr.bf16.mxu1 %v4268_v45 }
 0x5ce   :  { %1889 = vmatpush1.bf16.msra.mxu0 %v4274_v15  ;;  %1930 = vmatpush1.bf16.msra.mxu1 %v5753_v16 }
 0x5cf   :  { %2001 = vmatprep.subr.bf16.mxu0 %v5754_v39  ;;  %2042 = vmatprep.subr.bf16.mxu1 %v5755_v40 }
 0x5d1   :  { %1907 = vmatmul.mubr.bf16.vlgmr.msra.gmra.mxu0 %v1745_v49  ;;  %1948 = vmatmul.mubr.bf16.vlgmr.msra.gmra.mxu1 %v1745_v49  ;;  %v5832_v49 = vld [vmem:[#allocation36_spill] sm:$0xff] }
 0x5d2   :  { %2002 = vmatpush1.bf16.msra.mxu0 %v5756_v41  ;;  %2043 = vmatpush1.bf16.msra.mxu1 %v5757_v42 }
 0x5d3   :  { %2003 = vmatprep.subr.bf16.mxu0 %v5758_v43  ;;  %2044 = vmatprep.subr.bf16.mxu1 %v5759_v44 }
 0x5d6   :  { %2004 = vmatpush1.bf16.msra.mxu0 %v5760_v60  ;;  %2045 = vmatpush1.bf16.msra.mxu1 %v5761_v47 }
 0x5d7   :  { %2005 = vmatprep.subr.bf16.mxu0 %v5762_v52  ;;  %2046 = vmatprep.subr.bf16.mxu1 %v5763_v1 }
 0x5da   :  { %2006 = vmatpush1.bf16.msra.mxu0 %v5764_v54  ;;  %2047 = vmatpush1.bf16.msra.mxu1 %v5814_v34 }
 0x5db   :  { %2007 = vmatprep.subr.bf16.mxu0 %v5815_v20  ;;  %2048 = vmatprep.subr.bf16.mxu1 %v5816_v19 }
 0x5de   :  { %2008 = vmatpush1.bf16.msra.mxu0 %v5817_v35  ;;  %2049 = vmatpush1.bf16.msra.mxu1 %v5818_v36 }
 0x5df   :  { %2009 = vmatprep.subr.bf16.mxu0 %v5819_v58  ;;  %2050 = vmatprep.subr.bf16.mxu1 %v5820_v37 }
 0x5e2   :  { %2010 = vmatpush1.bf16.msra.mxu0 %v5821_v38  ;;  %2051 = vmatpush1.bf16.msra.mxu1 %v5822_v32  ;;  %v5833_v32 = vld [vmem:[#allocation37_spill] sm:$0xff] }
 0x5e3   :  { %2011 = vmatprep.subr.bf16.mxu0 %v5823_v17  ;;  %2052 = vmatprep.subr.bf16.mxu1 %v5824_v63  ;;  %v5834_v17 = vld [vmem:[#allocation38_spill] sm:$0xff]  ;;  %v5835_v63 = vld [vmem:[#allocation39_spill] sm:$0xff] }
 0x5e6   :  { %2012 = vmatpush1.bf16.msra.mxu0 %v5825_v62  ;;  %2053 = vmatpush1.bf16.msra.mxu1 %v5826_v10  ;;  %v5836_v62 = vld [vmem:[#allocation40_spill] sm:$0xff]  ;;  %v5837_v10 = vld [vmem:[#allocation41_spill] sm:$0xff] }
 0x5e7   :  { %2013 = vmatprep.subr.bf16.mxu0 %v5827_v46  ;;  %2054 = vmatprep.subr.bf16.mxu1 %v5828_v18  ;;  %v5838_v46 = vld [vmem:[#allocation42_spill] sm:$0xff]  ;;  %v5839_v18 = vld [vmem:[#allocation43_spill] sm:$0xff] }
 0x5ea   :  { %2014 = vmatpush1.bf16.msra.mxu0 %v5829_v3  ;;  %2055 = vmatpush1.bf16.msra.mxu1 %v5830_v51  ;;  %v5840_v3 = vld [vmem:[#allocation44_spill] sm:$0xff]  ;;  %v5841_v51 = vld [vmem:[#allocation45_spill] sm:$0xff] }
 0x5eb   :  { %2015 = vmatprep.subr.bf16.mxu0 %v5831_v33  ;;  %2056 = vmatprep.subr.bf16.mxu1 %v5832_v49  ;;  %v5842_v33 = vld [vmem:[#allocation46_spill] sm:$0xff]  ;;  %v5843_v49 = vld [vmem:[#allocation47_spill] sm:$0xff] }
 0x5ee   :  { %2016 = vmatpush1.bf16.msra.mxu0 %v5833_v32  ;;  %2057 = vmatpush1.bf16.msra.mxu1 %v5834_v17  ;;  %v5844_v32 = vld [vmem:[#allocation48_spill] sm:$0xff]  ;;  %v5845_v17 = vld [vmem:[#allocation49_spill] sm:$0xff] }
 0x5ef   :  { %2017 = vmatprep.subr.bf16.mxu0 %v5835_v63  ;;  %2058 = vmatprep.subr.bf16.mxu1 %v5836_v62  ;;  %v5846_v63 = vld [vmem:[#allocation50_spill] sm:$0xff]  ;;  %v5847_v62 = vld [vmem:[#allocation51_spill] sm:$0xff] }
 0x5f2   :  { %2018 = vmatpush2.bf16.msra.mxu0 %v5837_v10  ;;  %2059 = vmatpush2.bf16.msra.mxu1 %v5838_v46  ;;  %v5848_v10 = vld [vmem:[#allocation52_spill] sm:$0xff]  ;;  %v5849_v46 = vld [vmem:[#allocation53_spill] sm:$0xff] }
 0x5f3   :  { %2019 = vmatprep.subr.bf16.mxu0 %v5839_v18  ;;  %2060 = vmatprep.subr.bf16.mxu1 %v5840_v3  ;;  %v5850_v18 = vld [vmem:[#allocation54_spill] sm:$0xff]  ;;  %v5851_v3 = vld [vmem:[#allocation55_spill] sm:$0xff] }
 0x5f6   :  { %2020 = vmatpush2.bf16.msra.mxu0 %v5841_v51  ;;  %2061 = vmatpush2.bf16.msra.mxu1 %v5842_v33  ;;  %v5852_v51 = vld [vmem:[#allocation56_spill] sm:$0xff]  ;;  %v5853_v33 = vld [vmem:[#allocation3_spill] sm:$0xff] }
 0x5f7   :  { %2021 = vmatprep.subr.bf16.mxu0 %v5843_v49  ;;  %2062 = vmatprep.subr.bf16.mxu1 %v5844_v32  ;;  %v5854_v49 = vld [vmem:[#allocation6_spill] sm:$0xff]  ;;  %v5855_v32 = vld [vmem:[#allocation7_spill] sm:$0xff] }
 0x5fa   :  { %2022 = vmatpush2.bf16.msra.mxu0 %v5845_v17  ;;  %2063 = vmatpush2.bf16.msra.mxu1 %v5846_v63  ;;  %v5856_v17 = vld [vmem:[#allocation8_spill] sm:$0xff]  ;;  %v5857_v63 = vld [vmem:[#allocation9_spill] sm:$0xff] }
 0x5fb   :  { %2023 = vmatprep.subr.bf16.mxu0 %v5847_v62  ;;  %2064 = vmatprep.subr.bf16.mxu1 %v5848_v10  ;;  %v5858_v62 = vld [vmem:[#allocation10_spill] sm:$0xff]  ;;  %v5859_v10 = vld [vmem:[#allocation11_spill] sm:$0xff] }
 0x5fe   :  { %2024 = vmatpush2.bf16.msra.mxu0 %v5849_v46  ;;  %2065 = vmatpush2.bf16.msra.mxu1 %v5850_v18  ;;  %v5860_v46 = vld [vmem:[#allocation12_spill] sm:$0xff]  ;;  %v5861_v18 = vld [vmem:[#allocation13_spill] sm:$0xff] }
 0x5ff   :  { %2025 = vmatprep.subr.bf16.mxu0 %v5851_v3  ;;  %2066 = vmatprep.subr.bf16.mxu1 %v5852_v51  ;;  %v5862_v3 = vld [vmem:[#allocation14_spill] sm:$0xff]  ;;  %v5863_v51 = vld [vmem:[#allocation15_spill] sm:$0xff] }
 0x602   :  { %2026 = vmatpush2.bf16.msra.mxu0 %v5853_v33  ;;  %2067 = vmatpush2.bf16.msra.mxu1 %v5854_v49  ;;  %v5864_v33 = vld [vmem:[#allocation16_spill] sm:$0xff]  ;;  %v5865_v49 = vld [vmem:[#allocation17_spill] sm:$0xff] }
 0x603   :  { %2027 = vmatprep.subr.bf16.mxu0 %v5855_v32  ;;  %2068 = vmatprep.subr.bf16.mxu1 %v5856_v17  ;;  %v5866_v32 = vld [vmem:[#allocation57_spill] sm:$0xff]  ;;  %v5867_v17 = vld [vmem:[#allocation4_spill] sm:$0xff] }
 0x606   :  { %2028 = vmatpush2.bf16.msra.mxu0 %v5857_v63  ;;  %2069 = vmatpush2.bf16.msra.mxu1 %v5858_v62  ;;  %v5868_v63 = vld [vmem:[#allocation5_spill] sm:$0xff] }
 0x607   :  { %2029 = vmatprep.subr.bf16.mxu0 %v5859_v10  ;;  %2070 = vmatprep.subr.bf16.mxu1 %v5860_v46 }
 0x60a   :  { %2030 = vmatpush2.bf16.msra.mxu0 %v5861_v18  ;;  %2071 = vmatpush2.bf16.msra.mxu1 %v5862_v3 }
 0x60b   :  { %2031 = vmatprep.subr.bf16.mxu0 %v5863_v51  ;;  %2072 = vmatprep.subr.bf16.mxu1 %v5864_v33 }
 0x60e   :  { %2032 = vmatpush2.bf16.msra.mxu0 %v5865_v49  ;;  %2073 = vmatpush2.bf16.msra.mxu1 %v5866_v32 }
 0x60f   :  { %2128 = vmatprep.subr.bf16.mxu0 %v5867_v17  ;;  %2169 = vmatprep.subr.bf16.mxu1 %v5868_v63  ;;  %v4904_v17 = vld [vmem:[%s5305_s3] sm:$0xff] }
 0x610   :  { %5869 = vst [vmem:[#allocation4_spill] sm:$0xff] %v4904_v17 }
 0x671   :  { %v1781_v62 = vpop.f32.mrf.mxu0  ;;  %v1822_v10 = vpop.f32.mrf.mxu1 }
 0x673   :  { %v1783_v38 = vpop.f32.mrf.mxu0  ;;  %v1824_v46 = vpop.f32.mrf.mxu1 }
 0x674   :  { %v1833_v37 = vcombine.low %v1781_v62, %v1783_v38  ;;  %v1834_v18 = vcombine.low %v1822_v10, %v1824_v46 }
 0x675   :  { %v1785_v58 = vpop.f32.mrf.mxu0  ;;  %v1826_v3 = vpop.f32.mrf.mxu1 }
 0x676   :  { %v1841_v51 = vrot.slane %v1833_v37, %v3845_v53  ;;  %v1848_v33 = vrot.slane %v1834_v18, %v3845_v53 }
 0x677   :  { %v1786_v36 = vpop.f32.mrf.mxu0  ;;  %v1827_v49 = vpop.f32.mrf.mxu1 }
 0x678   :  { %v1849_v35 = vcombine.low %v1841_v51, %v1848_v33 }
 0x67a   :  { %v1851_v63 = vadd.f32 %v4904_v17, %v1849_v35  ;;  %v2770_v35 = vld [vmem:[%s5304_s0 + $0x28] sm:$0xff] }
 0x67c   :  { %v2769_v32 = vmul.f32 -1.442695, %v1851_v63  ;;  %v1859_v58 = vrot.slane %v1851_v63, 6 }
 0x67e   :  { %3000 = vpow2.f32 %v2769_v32 }
 0x68b   :  { %v3001_v38 = vpop.eup %3000 }
 0x68c   :  { %v1855_v62 = vadd.f32 1.0, %v3001_v38 }
 0x68e   :  { %3002 = vrcp.f32 %v1855_v62 }
 0x68f   :  { %3004 = vtanh.f32 %v1859_v58 }
 0x691   :  { %v1908_v37 = vpop.f32.mrf.mxu0  ;;  %v1949_v10 = vpop.f32.mrf.mxu1 }
 0x693   :  { %v1910_v46 = vpop.f32.mrf.mxu0  ;;  %v1951_v36 = vpop.f32.mrf.mxu1 }
 0x694   :  { %v1960_v18 = vcombine.low %v1908_v37, %v1910_v46  ;;  %v1961_v3 = vcombine.low %v1949_v10, %v1951_v36 }
 0x695   :  { %v1912_v51 = vpop.f32.mrf.mxu0  ;;  %v1953_v33 = vpop.f32.mrf.mxu1 }
 0x696   :  { %v1968_v49 = vrot.slane %v1960_v18, %v3845_v53  ;;  %v1975_v19 = vrot.slane %v1961_v3, %v3845_v53 }
 0x697   :  { %v1913_v32 = vpop.f32.mrf.mxu0  ;;  %v1954_v63 = vpop.f32.mrf.mxu1 }
 0x698   :  { %v1976_v38 = vcombine.low %v1968_v49, %v1975_v19 }
 0x69a   :  { %v1978_v62 = vadd.f32 %v2770_v35, %v1976_v38 }
 0x69b   :  { %v3003_v58 = vpop.eup %3002 }
 0x69c   :  { %v2771_v17 = vmul.f32 -1.442695, %v1978_v62  ;;  %v1863_v20 = vrot.slane %v3003_v58, 2  ;;  %v3005_v34 = vpop.eup %3004  ;;  %v1986_v3 = vrot.slane %v1978_v62, 6  ;;  %v1869_v51 = vrot.slane %v3003_v58, 4 }
 0x69d   :  { %v1866_v10 = vmul.f32 %v3005_v34, %v3003_v58 }
 0x69e   :  { %3006 = vpow2.f32 %v2771_v17  ;;  %v1865_v37 = vmul.f32 %v1863_v20, %v4794_v0 }
 0x6a0   :  { %v4913_v46 = vadd.f32 %v1866_v10, %v1865_v37  ;;  %v5912_v37 = vld [vmem:[#allocation8_spill] sm:$0xff]  ;;  %v5913_v10 = vld [vmem:[#allocation9_spill] sm:$0xff] }
 0x6a2   :  { %3008 = vtanh.f32 %v4913_v46 }
 0x6ab   :  { %v3007_v36 = vpop.eup %3006 }
 0x6ac   :  { %v1982_v18 = vadd.f32 1.0, %v3007_v36  ;;  %v5914_v36 = vld [vmem:[#allocation10_spill] sm:$0xff] }
 0x6ae   :  { %3010 = vrcp.f32 %v1982_v18  ;;  %v5915_v18 = vld [vmem:[#allocation11_spill] sm:$0xff] }
 0x6af   :  { %v3009_v33 = vpop.eup %3008  ;;  %3012 = vtanh.f32 %v1986_v3  ;;  %v5916_v3 = vld [vmem:[#allocation12_spill] sm:$0xff] }
 0x6b0   :  { %v1871_v19 = vmul.f32 %v3009_v33, %v1869_v51  ;;  %v5917_v51 = vld [vmem:[#allocation13_spill] sm:$0xff]  ;;  %v5918_v33 = vld [vmem:[#allocation14_spill] sm:$0xff] }
 0x6b2   :  { %v2000_v49 = vpack.c.bf16 %v1871_v19, %v1871_v19  ;;  %v5919_v19 = vld [vmem:[#allocation15_spill] sm:$0xff] }
 0x6b4   :  { %2033 = vmatprep.mubr.bf16.mxu0 %v2000_v49  ;;  %2074 = vmatprep.mubr.bf16.mxu1 %v2000_v49  ;;  %v5920_v49 = vld [vmem:[#allocation16_spill] sm:$0xff] }
 0x6bb   :  { %v3011_v35 = vpop.eup %3010 }
 0x6bc   :  { %v1990_v17 = vrot.slane %v3011_v35, 2  ;;  %v3013_v32 = vpop.eup %3012  ;;  %v1996_v63 = vrot.slane %v3011_v35, 4 }
 0x6bd   :  { %v1993_v0 = vmul.f32 %v3013_v32, %v3011_v35  ;;  %v5921_v35 = vld [vmem:[#allocation17_spill] sm:$0xff] }
 0x6be   :  { %v1992_v34 = vmul.f32 %v1990_v17, %v4798_v31  ;;  %v5911_v31 = vld [vmem:[#allocation7_spill] sm:$0xff]  ;;  %v5922_v17 = vld [vmem:[#allocation57_spill] sm:$0xff] }
 0x6bf   :  { %v3153_v32 = vld [vmem:[%s5302_s1 + $0xe4] ss:$16 sps:$4 sm:$0xff]  }
 0x6c0   :  { %v4917_v20 = vadd.f32 %v1993_v0, %v1992_v34  ;;  %v3154_v0 = vld [vmem:[%s5302_s1 + $0xec] ss:$16 sps:$4 sm:$0xff]  }
 0x6c2   :  { %3014 = vtanh.f32 %v4917_v20 }
 0x6cf   :  { %v3015_v38 = vpop.eup %3014 }
 0x6d0   :  { %v1998_v62 = vmul.f32 %v3015_v38, %v1996_v63 }
 0x6d2   :  { %v1999_v58 = vpack.c.bf16 %v1998_v62, %v1998_v62 }
 0x6d4   :  { %2034 = vmatmul.mubr.bf16.vlgmr.msra.gmra.mxu0 %v1999_v58  ;;  %2075 = vmatmul.mubr.bf16.vlgmr.msra.gmra.mxu1 %v1999_v58 }
 0x6d5   :  { %2129 = vmatpush1.bf16.msra.mxu0 %v4104_v21  ;;  %2170 = vmatpush1.bf16.msra.mxu1 %v4110_v50  ;;  %v5870_v21 = vld [vmem:[#allocation18_spill] sm:$0xff]  ;;  %v5871_v50 = vld [vmem:[#allocation19_spill] sm:$0xff] }
 0x6d6   :  { %2130 = vmatprep.subr.bf16.mxu0 %v4116_v22  ;;  %2171 = vmatprep.subr.bf16.mxu1 %v4122_v23  ;;  %v5872_v22 = vld [vmem:[#allocation20_spill] sm:$0xff]  ;;  %v5873_v23 = vld [vmem:[#allocation21_spill] sm:$0xff] }
 0x6d7   :  { %2160 = vmatprep.mubr.bf16.mxu0 %v5604_v48  ;;  %2201 = vmatprep.mubr.bf16.mxu1 %v5604_v48 }
 0x6d9   :  { %2131 = vmatpush1.bf16.msra.mxu0 %v4130_v24  ;;  %2172 = vmatpush1.bf16.msra.mxu1 %v4136_v25  ;;  %v5874_v24 = vld [vmem:[#allocation22_spill] sm:$0xff]  ;;  %v5875_v25 = vld [vmem:[#allocation23_spill] sm:$0xff] }
 0x6da   :  { %2132 = vmatprep.subr.bf16.mxu0 %v4142_v26  ;;  %2173 = vmatprep.subr.bf16.mxu1 %v4148_v27  ;;  %v5876_v26 = vld [vmem:[#allocation24_spill] sm:$0xff]  ;;  %v5877_v27 = vld [vmem:[#allocation25_spill] sm:$0xff] }
 0x6dd   :  { %2133 = vmatpush1.bf16.msra.mxu0 %v4154_v28  ;;  %2174 = vmatpush1.bf16.msra.mxu1 %v4160_v29  ;;  %v5878_v28 = vld [vmem:[#allocation26_spill] sm:$0xff]  ;;  %v5879_v29 = vld [vmem:[#allocation27_spill] sm:$0xff] }
 0x6de   :  { %2134 = vmatprep.subr.bf16.mxu0 %v4166_v30  ;;  %2175 = vmatprep.subr.bf16.mxu1 %v4172_v57  ;;  %v5880_v30 = vld [vmem:[#allocation28_spill] sm:$0xff]  ;;  %v5881_v57 = vld [vmem:[#allocation29_spill] sm:$0xff] }
 0x6e1   :  { %2135 = vmatpush1.bf16.msra.mxu0 %v4178_v2  ;;  %2176 = vmatpush1.bf16.msra.mxu1 %v4184_v59  ;;  %v5882_v2 = vld [vmem:[#allocation30_spill] sm:$0xff]  ;;  %v5883_v59 = vld [vmem:[#allocation31_spill] sm:$0xff] }
 0x6e2   :  { %2136 = vmatprep.subr.bf16.mxu0 %v4190_v55  ;;  %2177 = vmatprep.subr.bf16.mxu1 %v4196_v61  ;;  %v5884_v55 = vld [vmem:[#allocation32_spill] sm:$0xff]  ;;  %v5885_v61 = vld [vmem:[#allocation33_spill] sm:$0xff] }
 0x6e5   :  { %2137 = vmatpush1.bf16.msra.mxu0 %v4202_v56  ;;  %2178 = vmatpush1.bf16.msra.mxu1 %v4208_v4  ;;  %v5886_v56 = vld [vmem:[#allocation34_spill] sm:$0xff]  ;;  %v5887_v4 = vld [vmem:[#allocation35_spill] sm:$0xff] }
 0x6e6   :  { %2138 = vmatprep.subr.bf16.mxu0 %v4214_v5  ;;  %2179 = vmatprep.subr.bf16.mxu1 %v4220_v6  ;;  %v5888_v5 = vld [vmem:[#allocation36_spill] sm:$0xff]  ;;  %v5889_v6 = vld [vmem:[#allocation37_spill] sm:$0xff] }
 0x6e9   :  { %2139 = vmatpush1.bf16.msra.mxu0 %v4226_v7  ;;  %2180 = vmatpush1.bf16.msra.mxu1 %v4232_v8  ;;  %v5890_v7 = vld [vmem:[#allocation38_spill] sm:$0xff]  ;;  %v5891_v8 = vld [vmem:[#allocation39_spill] sm:$0xff] }
 0x6ea   :  { %2140 = vmatprep.subr.bf16.mxu0 %v4238_v9  ;;  %2181 = vmatprep.subr.bf16.mxu1 %v4244_v11  ;;  %v5892_v9 = vld [vmem:[#allocation40_spill] sm:$0xff]  ;;  %v5893_v11 = vld [vmem:[#allocation41_spill] sm:$0xff] }
 0x6ed   :  { %2141 = vmatpush1.bf16.msra.mxu0 %v4250_v12  ;;  %2182 = vmatpush1.bf16.msra.mxu1 %v4256_v13  ;;  %v5894_v12 = vld [vmem:[#allocation42_spill] sm:$0xff]  ;;  %v5895_v13 = vld [vmem:[#allocation43_spill] sm:$0xff] }
 0x6ee   :  { %2142 = vmatprep.subr.bf16.mxu0 %v4262_v14  ;;  %2183 = vmatprep.subr.bf16.mxu1 %v4268_v45  ;;  %v5896_v14 = vld [vmem:[#allocation44_spill] sm:$0xff]  ;;  %v5897_v45 = vld [vmem:[#allocation45_spill] sm:$0xff] }
 0x6f1   :  { %2143 = vmatpush1.bf16.msra.mxu0 %v4274_v15  ;;  %2184 = vmatpush1.bf16.msra.mxu1 %v5753_v16  ;;  %v5898_v15 = vld [vmem:[#allocation46_spill] sm:$0xff]  ;;  %v5899_v16 = vld [vmem:[#allocation47_spill] sm:$0xff] }
 0x6f2   :  { %2255 = vmatprep.subr.bf16.mxu0 %v5754_v39  ;;  %2296 = vmatprep.subr.bf16.mxu1 %v5755_v40  ;;  %v5900_v39 = vld [vmem:[#allocation48_spill] sm:$0xff]  ;;  %v5901_v40 = vld [vmem:[#allocation49_spill] sm:$0xff] }
 0x6f4   :  { %2161 = vmatmul.mubr.bf16.vlgmr.msra.gmra.mxu0 %v1999_v58  ;;  %2202 = vmatmul.mubr.bf16.vlgmr.msra.gmra.mxu1 %v1999_v58 }
 0x6f5   :  { %2256 = vmatpush1.bf16.msra.mxu0 %v5756_v41  ;;  %2297 = vmatpush1.bf16.msra.mxu1 %v5757_v42  ;;  %v5902_v41 = vld [vmem:[#allocation50_spill] sm:$0xff]  ;;  %v5903_v42 = vld [vmem:[#allocation51_spill] sm:$0xff] }
 0x6f6   :  { %2257 = vmatprep.subr.bf16.mxu0 %v5758_v43  ;;  %2298 = vmatprep.subr.bf16.mxu1 %v5759_v44  ;;  %v5904_v43 = vld [vmem:[#allocation52_spill] sm:$0xff]  ;;  %v5905_v44 = vld [vmem:[#allocation53_spill] sm:$0xff] }
 0x6f9   :  { %2258 = vmatpush1.bf16.msra.mxu0 %v5760_v60  ;;  %2299 = vmatpush1.bf16.msra.mxu1 %v5761_v47  ;;  %v5906_v60 = vld [vmem:[#allocation54_spill] sm:$0xff]  ;;  %v5907_v47 = vld [vmem:[#allocation55_spill] sm:$0xff] }
 0x6fa   :  { %2259 = vmatprep.subr.bf16.mxu0 %v5762_v52  ;;  %2300 = vmatprep.subr.bf16.mxu1 %v5763_v1  ;;  %v5908_v52 = vld [vmem:[#allocation56_spill] sm:$0xff]  ;;  %v5909_v1 = vld [vmem:[#allocation3_spill] sm:$0xff] }
 0x6fd   :  { %2260 = vmatpush1.bf16.msra.mxu0 %v5764_v54  ;;  %2301 = vmatpush1.bf16.msra.mxu1 %v5870_v21  ;;  %v5910_v54 = vld [vmem:[#allocation6_spill] sm:$0xff] }
 0x6fe   :  { %2261 = vmatprep.subr.bf16.mxu0 %v5871_v50  ;;  %2302 = vmatprep.subr.bf16.mxu1 %v5872_v22 }
 0x701   :  { %2262 = vmatpush1.bf16.msra.mxu0 %v5873_v23  ;;  %2303 = vmatpush1.bf16.msra.mxu1 %v5874_v24 }
 0x702   :  { %2263 = vmatprep.subr.bf16.mxu0 %v5875_v25  ;;  %2304 = vmatprep.subr.bf16.mxu1 %v5876_v26 }
 0x705   :  { %2264 = vmatpush1.bf16.msra.mxu0 %v5877_v27  ;;  %2305 = vmatpush1.bf16.msra.mxu1 %v5878_v28  ;;  %v5923_v28 = vld [vmem:[#allocation4_spill] sm:$0xff] }
 0x706   :  { %2265 = vmatprep.subr.bf16.mxu0 %v5879_v29  ;;  %2306 = vmatprep.subr.bf16.mxu1 %v5880_v30 }
 0x709   :  { %2266 = vmatpush1.bf16.msra.mxu0 %v5881_v57  ;;  %2307 = vmatpush1.bf16.msra.mxu1 %v5882_v2 }
 0x70a   :  { %2267 = vmatprep.subr.bf16.mxu0 %v5883_v59  ;;  %2308 = vmatprep.subr.bf16.mxu1 %v5884_v55 }
 0x70d   :  { %2268 = vmatpush1.bf16.msra.mxu0 %v5885_v61  ;;  %2309 = vmatpush1.bf16.msra.mxu1 %v5886_v56 }
 0x70e   :  { %2269 = vmatprep.subr.bf16.mxu0 %v5887_v4  ;;  %2310 = vmatprep.subr.bf16.mxu1 %v5888_v5 }
 0x711   :  { %2270 = vmatpush1.bf16.msra.mxu0 %v5889_v6  ;;  %2311 = vmatpush1.bf16.msra.mxu1 %v5890_v7 }
 0x712   :  { %2271 = vmatprep.subr.bf16.mxu0 %v5891_v8  ;;  %2312 = vmatprep.subr.bf16.mxu1 %v5892_v9 }
 0x715   :  { %2272 = vmatpush2.bf16.msra.mxu0 %v5893_v11  ;;  %2313 = vmatpush2.bf16.msra.mxu1 %v5894_v12  ;;  %v2773_v12 = vld [vmem:[%s5304_s0 + $0x30] sm:$0xff] }
 0x716   :  { %2273 = vmatprep.subr.bf16.mxu0 %v5895_v13  ;;  %2314 = vmatprep.subr.bf16.mxu1 %v5896_v14 }
 0x719   :  { %2274 = vmatpush2.bf16.msra.mxu0 %v5897_v45  ;;  %2315 = vmatpush2.bf16.msra.mxu1 %v5898_v15 }
 0x71a   :  { %2275 = vmatprep.subr.bf16.mxu0 %v5899_v16  ;;  %2316 = vmatprep.subr.bf16.mxu1 %v5900_v39 }
 0x71d   :  { %2276 = vmatpush2.bf16.msra.mxu0 %v5901_v40  ;;  %2317 = vmatpush2.bf16.msra.mxu1 %v5902_v41 }
 0x71e   :  { %2277 = vmatprep.subr.bf16.mxu0 %v5903_v42  ;;  %2318 = vmatprep.subr.bf16.mxu1 %v5904_v43 }
 0x721   :  { %2278 = vmatpush2.bf16.msra.mxu0 %v5905_v44  ;;  %2319 = vmatpush2.bf16.msra.mxu1 %v5906_v60 }
 0x722   :  { %2279 = vmatprep.subr.bf16.mxu0 %v5907_v47  ;;  %2320 = vmatprep.subr.bf16.mxu1 %v5908_v52 }
 0x725   :  { %2280 = vmatpush2.bf16.msra.mxu0 %v5909_v1  ;;  %2321 = vmatpush2.bf16.msra.mxu1 %v5910_v54 }
 0x726   :  { %2281 = vmatprep.subr.bf16.mxu0 %v5911_v31  ;;  %2322 = vmatprep.subr.bf16.mxu1 %v5912_v37 }
 0x729   :  { %2282 = vmatpush2.bf16.msra.mxu0 %v5913_v10  ;;  %2323 = vmatpush2.bf16.msra.mxu1 %v5914_v36 }
 0x72a   :  { %2283 = vmatprep.subr.bf16.mxu0 %v5915_v18  ;;  %2324 = vmatprep.subr.bf16.mxu1 %v5916_v3 }
 0x72d   :  { %2284 = vmatpush2.bf16.msra.mxu0 %v5917_v51  ;;  %2325 = vmatpush2.bf16.msra.mxu1 %v5918_v33 }
 0x72e   :  { %2285 = vmatprep.subr.bf16.mxu0 %v5919_v19  ;;  %2326 = vmatprep.subr.bf16.mxu1 %v5920_v49 }
 0x731   :  { %2286 = vmatpush2.bf16.msra.mxu0 %v5921_v35  ;;  %2327 = vmatpush2.bf16.msra.mxu1 %v5922_v17 }
 0x732   :  { %2382 = vmatprep.subr.bf16.mxu0 %v3153_v32  ;;  %2423 = vmatprep.subr.bf16.mxu1 %v3154_v0 }
 0x794   :  { %v2035_v34 = vpop.f32.mrf.mxu0  ;;  %v2076_v63 = vpop.f32.mrf.mxu1 }
 0x796   :  { %v2037_v38 = vpop.f32.mrf.mxu0  ;;  %v2078_v62 = vpop.f32.mrf.mxu1 }
 0x797   :  { %v2087_v58 = vcombine.low %v2035_v34, %v2037_v38  ;;  %v2088_v21 = vcombine.low %v2076_v63, %v2078_v62 }
 0x798   :  { %v2039_v50 = vpop.f32.mrf.mxu0  ;;  %v2080_v22 = vpop.f32.mrf.mxu1 }
 0x799   :  { %v2095_v23 = vrot.slane %v2087_v58, %v3845_v53  ;;  %v2102_v24 = vrot.slane %v2088_v21, %v3845_v53 }
 0x79a   :  { %v2040_v25 = vpop.f32.mrf.mxu0  ;;  %v2081_v26 = vpop.f32.mrf.mxu1 }
 0x79b   :  { %v2103_v27 = vcombine.low %v2095_v23, %v2102_v24 }
 0x79d   :  { %v2105_v29 = vadd.f32 %v5923_v28, %v2103_v27 }
 0x79f   :  { %v2772_v30 = vmul.f32 -1.442695, %v2105_v29  ;;  %v2113_v59 = vrot.slane %v2105_v29, 6 }
 0x7a1   :  { %3016 = vpow2.f32 %v2772_v30 }
 0x7ae   :  { %v3017_v57 = vpop.eup %3016 }
 0x7af   :  { %v2109_v2 = vadd.f32 1.0, %v3017_v57 }
 0x7b1   :  { %3018 = vrcp.f32 %v2109_v2 }
 0x7b2   :  { %3020 = vtanh.f32 %v2113_v59 }
 0x7b4   :  { %v2162_v55 = vpop.f32.mrf.mxu0  ;;  %v2203_v61 = vpop.f32.mrf.mxu1 }
 0x7b6   :  { %v2164_v56 = vpop.f32.mrf.mxu0  ;;  %v2205_v4 = vpop.f32.mrf.mxu1 }
 0x7b7   :  { %v2214_v5 = vcombine.low %v2162_v55, %v2164_v56  ;;  %v2215_v6 = vcombine.low %v2203_v61, %v2205_v4  ;;  %v3155_v4 = vld [vmem:[%s5302_s1 + $0xe0] ss:$16 sps:$4 sm:$0xff]  }
 0x7b8   :  { %v2166_v7 = vpop.f32.mrf.mxu0  ;;  %v2207_v8 = vpop.f32.mrf.mxu1 }
 0x7b9   :  { %v2222_v9 = vrot.slane %v2214_v5, %v3845_v53  ;;  %v2229_v11 = vrot.slane %v2215_v6, %v3845_v53  ;;  %v3157_v5 = vld [vmem:[%s5302_s1 + $0xc4] ss:$16 sps:$4 sm:$0xff]   ;;  %v3158_v6 = vld [vmem:[%s5302_s1 + $0xcc] ss:$16 sps:$4 sm:$0xff]   ;;  %v3159_v7 = vld [vmem:[%s5302_s1 + $0xc0] ss:$16 sps:$4 sm:$0xff]  }
 0x7ba   :  { %v2167_v13 = vpop.f32.mrf.mxu0  ;;  %v2208_v14 = vpop.f32.mrf.mxu1  ;;  %v3160_v8 = vld [vmem:[%s5302_s1 + $0xc8] ss:$16 sps:$4 sm:$0xff]  }
 0x7bb   :  { %v2230_v45 = vcombine.low %v2222_v9, %v2229_v11  ;;  %v3161_v9 = vld [vmem:[%s5302_s1 + $0xa4] ss:$16 sps:$4 sm:$0xff]   ;;  %v3162_v11 = vld [vmem:[%s5302_s1 + $0xac] ss:$16 sps:$4 sm:$0xff]  }
 0x7bc   :  { %v3165_v13 = vld [vmem:[%s5302_s1 + $0x84] ss:$16 sps:$4 sm:$0xff]   ;;  %v3166_v14 = vld [vmem:[%s5302_s1 + $0x8c] ss:$16 sps:$4 sm:$0xff]  }
 0x7bd   :  { %v2232_v15 = vadd.f32 %v2773_v12, %v2230_v45  ;;  %v3164_v12 = vld [vmem:[%s5302_s1 + $0xa8] ss:$16 sps:$4 sm:$0xff]   ;;  %v3167_v45 = vld [vmem:[%s5302_s1 + $0x80] ss:$16 sps:$4 sm:$0xff]  }
 0x7be   :  { %v3019_v32 = vpop.eup %3018 }
 0x7bf   :  { %v2774_v0 = vmul.f32 -1.442695, %v2232_v15  ;;  %v2117_v34 = vrot.slane %v3019_v32, 2  ;;  %v3021_v63 = vpop.eup %3020  ;;  %v2240_v22 = vrot.slane %v2232_v15, 6  ;;  %v2123_v23 = vrot.slane %v3019_v32, 4 }
 0x7c0   :  { %v2120_v62 = vmul.f32 %v3021_v63, %v3019_v32  ;;  %v3168_v15 = vld [vmem:[%s5302_s1 + $0x88] ss:$16 sps:$4 sm:$0xff]   ;;  %v3169_v32 = vld [vmem:[%s5302_s1 + $0x64] ss:$16 sps:$4 sm:$0xff]  }
 0x7c1   :  { %3022 = vpow2.f32 %v2774_v0  ;;  %v2119_v38 = vmul.f32 %v2117_v34, %v4913_v46  ;;  %v3170_v0 = vld [vmem:[%s5302_s1 + $0x6c] ss:$16 sps:$4 sm:$0xff]   ;;  %v3171_v34 = vld [vmem:[%s5302_s1 + $0x60] ss:$16 sps:$4 sm:$0xff]   ;;  %v3172_v63 = vld [vmem:[%s5302_s1 + $0x68] ss:$16 sps:$4 sm:$0xff]  }
 0x7c3   :  { %v5031_v58 = vadd.f32 %v2120_v62, %v2119_v38  ;;  %v3173_v38 = vld [vmem:[%s5302_s1 + $0x44] ss:$16 sps:$4 sm:$0xff]   ;;  %v3174_v62 = vld [vmem:[%s5302_s1 + $0x4c] ss:$16 sps:$4 sm:$0xff]  }
 0x7c5   :  { %3024 = vtanh.f32 %v5031_v58 }
 0x7ce   :  { %v3023_v21 = vpop.eup %3022 }
 0x7cf   :  { %v2236_v50 = vadd.f32 1.0, %v3023_v21  ;;  %v3175_v21 = vld [vmem:[%s5302_s1 + $0x40] ss:$16 sps:$4 sm:$0xff]  }
 0x7d1   :  { %3026 = vrcp.f32 %v2236_v50  ;;  %v3176_v50 = vld [vmem:[%s5302_s1 + $0x48] ss:$16 sps:$4 sm:$0xff]  }
 0x7d2   :  { %v3025_v24 = vpop.eup %3024  ;;  %3028 = vtanh.f32 %v2240_v22  ;;  %v3177_v22 = vld [vmem:[%s5302_s1 + $0x24] ss:$16 sps:$4 sm:$0xff]  }
 0x7d3   :  { %v2125_v25 = vmul.f32 %v3025_v24, %v2123_v23  ;;  %v3178_v23 = vld [vmem:[%s5302_s1 + $0x2c] ss:$16 sps:$4 sm:$0xff]   ;;  %v3179_v24 = vld [vmem:[%s5302_s1 + $0x20] ss:$16 sps:$4 sm:$0xff]  }
 0x7d5   :  { %v2254_v26 = vpack.c.bf16 %v2125_v25, %v2125_v25  ;;  %v3180_v25 = vld [vmem:[%s5302_s1 + $0x28] ss:$16 sps:$4 sm:$0xff]  }
 0x7d7   :  { %2287 = vmatprep.mubr.bf16.mxu0 %v2254_v26  ;;  %2328 = vmatprep.mubr.bf16.mxu1 %v2254_v26  ;;  %v3181_v26 = vld [vmem:[%s5302_s1 + $0x4] ss:$16 sps:$4 sm:$0xff]  }
 0x7de   :  { %v3027_v27 = vpop.eup %3026 }
 0x7df   :  { %v2244_v29 = vrot.slane %v3027_v27, 2  ;;  %v3029_v30 = vpop.eup %3028  ;;  %v2250_v59 = vrot.slane %v3027_v27, 4 }
 0x7e0   :  { %v2247_v46 = vmul.f32 %v3029_v30, %v3027_v27  ;;  %v3182_v27 = vld [vmem:[%s5302_s1 + $0xc] ss:$16 sps:$4 sm:$0xff]   ;;  %v3184_v30 = vld [vmem:[%s5302_s1 + $0x8] ss:$16 sps:$4 sm:$0xff]  }
 0x7e1   :  { %v2246_v57 = vmul.f32 %v2244_v29, %v4917_v20  ;;  %v3156_v20 = vld [vmem:[%s5302_s1 + $0xe8] ss:$16 sps:$4 sm:$0xff]   ;;  %v3183_v29 = vld [vmem:[%s5302_s1] ss:$16 sps:$4 sm:$0xff]  }
 0x7e3   :  { %v5035_v2 = vadd.f32 %v2247_v46, %v2246_v57  ;;  %v3185_v46 = vld [vmem:[%s5303_s2 + $0xe4] ss:$16 sps:$4 sm:$0xff]   ;;  %v3186_v57 = vld [vmem:[%s5303_s2 + $0xec] ss:$16 sps:$4 sm:$0xff]  }
 0x7e5   :  { %3030 = vtanh.f32 %v5035_v2 }
 0x7f2   :  { %v3031_v55 = vpop.eup %3030 }
 0x7f3   :  { %v2252_v61 = vmul.f32 %v3031_v55, %v2250_v59  ;;  %v3187_v59 = vld [vmem:[%s5303_s2 + $0xe0] ss:$16 sps:$4 sm:$0xff]   ;;  %v3188_v55 = vld [vmem:[%s5303_s2 + $0xe8] ss:$16 sps:$4 sm:$0xff]  }
 0x7f5   :  { %v5038_v56 = vpack.c.bf16 %v2252_v61, %v2252_v61  ;;  %v3189_v61 = vld [vmem:[%s5303_s2 + $0xc4] ss:$16 sps:$4 sm:$0xff]  }
 0x7f7   :  { %2288 = vmatmul.mubr.bf16.vlgmr.msra.gmra.mxu0 %v5038_v56  ;;  %2329 = vmatmul.mubr.bf16.vlgmr.msra.gmra.mxu1 %v5038_v56 }
 0x7f8   :  { %2383 = vmatpush1.bf16.msra.mxu0 %v3155_v4  ;;  %2424 = vmatpush1.bf16.msra.mxu1 %v3156_v20  ;;  %v3190_v4 = vld [vmem:[%s5303_s2 + $0xcc] ss:$16 sps:$4 sm:$0xff]   ;;  %v3192_v20 = vld [vmem:[%s5303_s2 + $0xc8] ss:$16 sps:$4 sm:$0xff]  }
 0x7f9   :  { %2384 = vmatprep.subr.bf16.mxu0 %v3157_v5  ;;  %2425 = vmatprep.subr.bf16.mxu1 %v3158_v6  ;;  %v3193_v5 = vld [vmem:[%s5303_s2 + $0xa4] ss:$16 sps:$4 sm:$0xff]   ;;  %v3194_v6 = vld [vmem:[%s5303_s2 + $0xac] ss:$16 sps:$4 sm:$0xff]  }
 0x7fa   :  { %2414 = vmatprep.mubr.bf16.mxu0 %v5604_v48  ;;  %2455 = vmatprep.mubr.bf16.mxu1 %v5604_v48  ;;  %v3163_v48 = vld [vmem:[%s5302_s1 + $0xa0] ss:$16 sps:$4 sm:$0xff]  }
 0x7fc   :  { %2385 = vmatpush1.bf16.msra.mxu0 %v3159_v7  ;;  %2426 = vmatpush1.bf16.msra.mxu1 %v3160_v8  ;;  %v3195_v7 = vld [vmem:[%s5303_s2 + $0xa0] ss:$16 sps:$4 sm:$0xff]   ;;  %v3196_v8 = vld [vmem:[%s5303_s2 + $0xa8] ss:$16 sps:$4 sm:$0xff]  }
 0x7fd   :  { %2386 = vmatprep.subr.bf16.mxu0 %v3161_v9  ;;  %2427 = vmatprep.subr.bf16.mxu1 %v3162_v11  ;;  %v3197_v9 = vld [vmem:[%s5303_s2 + $0x84] ss:$16 sps:$4 sm:$0xff]   ;;  %v3198_v11 = vld [vmem:[%s5303_s2 + $0x8c] ss:$16 sps:$4 sm:$0xff]  }
 0x800   :  { %2387 = vmatpush1.bf16.msra.mxu0 %v3163_v48  ;;  %2428 = vmatpush1.bf16.msra.mxu1 %v3164_v12  ;;  %v3199_v48 = vld [vmem:[%s5303_s2 + $0x80] ss:$16 sps:$4 sm:$0xff]   ;;  %v3200_v12 = vld [vmem:[%s5303_s2 + $0x88] ss:$16 sps:$4 sm:$0xff]  }
 0x801   :  { %2388 = vmatprep.subr.bf16.mxu0 %v3165_v13  ;;  %2429 = vmatprep.subr.bf16.mxu1 %v3166_v14  ;;  %v3201_v13 = vld [vmem:[%s5303_s2 + $0x64] ss:$16 sps:$4 sm:$0xff]   ;;  %v3202_v14 = vld [vmem:[%s5303_s2 + $0x6c] ss:$16 sps:$4 sm:$0xff]  }
 0x804   :  { %2389 = vmatpush1.bf16.msra.mxu0 %v3167_v45  ;;  %2430 = vmatpush1.bf16.msra.mxu1 %v3168_v15  ;;  %v3203_v45 = vld [vmem:[%s5303_s2 + $0x60] ss:$16 sps:$4 sm:$0xff]   ;;  %v3204_v15 = vld [vmem:[%s5303_s2 + $0x68] ss:$16 sps:$4 sm:$0xff]  }
 0x805   :  { %2390 = vmatprep.subr.bf16.mxu0 %v3169_v32  ;;  %2431 = vmatprep.subr.bf16.mxu1 %v3170_v0  ;;  %v3205_v32 = vld [vmem:[%s5303_s2 + $0x44] ss:$16 sps:$4 sm:$0xff]   ;;  %v3206_v0 = vld [vmem:[%s5303_s2 + $0x4c] ss:$16 sps:$4 sm:$0xff]  }
 0x808   :  { %2391 = vmatpush1.bf16.msra.mxu0 %v3171_v34  ;;  %2432 = vmatpush1.bf16.msra.mxu1 %v3172_v63  ;;  %v3207_v34 = vld [vmem:[%s5303_s2 + $0x40] ss:$16 sps:$4 sm:$0xff]   ;;  %v3208_v63 = vld [vmem:[%s5303_s2 + $0x48] ss:$16 sps:$4 sm:$0xff]  }
 0x809   :  { %2392 = vmatprep.subr.bf16.mxu0 %v3173_v38  ;;  %2433 = vmatprep.subr.bf16.mxu1 %v3174_v62  ;;  %v3209_v38 = vld [vmem:[%s5303_s2 + $0x24] ss:$16 sps:$4 sm:$0xff]   ;;  %v3210_v62 = vld [vmem:[%s5303_s2 + $0x2c] ss:$16 sps:$4 sm:$0xff]  }
 0x80c   :  { %2393 = vmatpush1.bf16.msra.mxu0 %v3175_v21  ;;  %2434 = vmatpush1.bf16.msra.mxu1 %v3176_v50  ;;  %v3211_v21 = vld [vmem:[%s5303_s2 + $0x20] ss:$16 sps:$4 sm:$0xff]   ;;  %v3212_v50 = vld [vmem:[%s5303_s2 + $0x28] ss:$16 sps:$4 sm:$0xff]  }
 0x80d   :  { %2394 = vmatprep.subr.bf16.mxu0 %v3177_v22  ;;  %2435 = vmatprep.subr.bf16.mxu1 %v3178_v23  ;;  %v3213_v22 = vld [vmem:[%s5303_s2 + $0x4] ss:$16 sps:$4 sm:$0xff]   ;;  %v3214_v23 = vld [vmem:[%s5303_s2 + $0xc] ss:$16 sps:$4 sm:$0xff]  }
 0x810   :  { %2395 = vmatpush1.bf16.msra.mxu0 %v3179_v24  ;;  %2436 = vmatpush1.bf16.msra.mxu1 %v3180_v25  ;;  %v3215_v24 = vld [vmem:[%s5303_s2] ss:$16 sps:$4 sm:$0xff]   ;;  %v3216_v25 = vld [vmem:[%s5303_s2 + $0x8] ss:$16 sps:$4 sm:$0xff]  }
 0x811   :  { %2396 = vmatprep.subr.bf16.mxu0 %v3181_v26  ;;  %2437 = vmatprep.subr.bf16.mxu1 %v3182_v27  ;;  %v3217_v26 = vld [vmem:[%s5303_s2 + $0x1e4] ss:$16 sps:$4 sm:$0xff]   ;;  %v3218_v27 = vld [vmem:[%s5303_s2 + $0x1ec] ss:$16 sps:$4 sm:$0xff]  }
 0x814   :  { %2397 = vmatpush1.bf16.msra.mxu0 %v3183_v29  ;;  %2438 = vmatpush1.bf16.msra.mxu1 %v3184_v30  ;;  %v3219_v29 = vld [vmem:[%s5303_s2 + $0x1e0] ss:$16 sps:$4 sm:$0xff]   ;;  %v3220_v30 = vld [vmem:[%s5303_s2 + $0x1e8] ss:$16 sps:$4 sm:$0xff]  }
 0x815   :  { %2509 = vmatprep.subr.bf16.mxu0 %v3185_v46  ;;  %2550 = vmatprep.subr.bf16.mxu1 %v3186_v57  ;;  %v3221_v46 = vld [vmem:[%s5303_s2 + $0x1c4] ss:$16 sps:$4 sm:$0xff]   ;;  %v3222_v57 = vld [vmem:[%s5303_s2 + $0x1cc] ss:$16 sps:$4 sm:$0xff]  }
 0x817   :  { %2415 = vmatmul.mubr.bf16.vlgmr.msra.gmra.mxu0 %v5038_v56  ;;  %2456 = vmatmul.mubr.bf16.vlgmr.msra.gmra.mxu1 %v5038_v56  ;;  %v3191_v56 = vld [vmem:[%s5303_s2 + $0xc0] ss:$16 sps:$4 sm:$0xff]  }
 0x818   :  { %2510 = vmatpush1.bf16.msra.mxu0 %v3187_v59  ;;  %2551 = vmatpush1.bf16.msra.mxu1 %v3188_v55  ;;  %v3223_v59 = vld [vmem:[%s5303_s2 + $0x1c0] ss:$16 sps:$4 sm:$0xff]   ;;  %v3224_v55 = vld [vmem:[%s5303_s2 + $0x1c8] ss:$16 sps:$4 sm:$0xff]  }
 0x819   :  { %2511 = vmatprep.subr.bf16.mxu0 %v3189_v61  ;;  %2552 = vmatprep.subr.bf16.mxu1 %v3190_v4 }
 0x81c   :  { %2512 = vmatpush1.bf16.msra.mxu0 %v3191_v56  ;;  %2553 = vmatpush1.bf16.msra.mxu1 %v3192_v20 }
 0x81d   :  { %2513 = vmatprep.subr.bf16.mxu0 %v3193_v5  ;;  %2554 = vmatprep.subr.bf16.mxu1 %v3194_v6  ;;  %v2776_v5 = vld [vmem:[%s5304_s0 + $0x38] sm:$0xff] }
 0x820   :  { %2514 = vmatpush1.bf16.msra.mxu0 %v3195_v7  ;;  %2555 = vmatpush1.bf16.msra.mxu1 %v3196_v8 }
 0x821   :  { %2515 = vmatprep.subr.bf16.mxu0 %v3197_v9  ;;  %2556 = vmatprep.subr.bf16.mxu1 %v3198_v11 }
 0x824   :  { %2516 = vmatpush1.bf16.msra.mxu0 %v3199_v48  ;;  %2557 = vmatpush1.bf16.msra.mxu1 %v3200_v12 }
 0x825   :  { %2517 = vmatprep.subr.bf16.mxu0 %v3201_v13  ;;  %2558 = vmatprep.subr.bf16.mxu1 %v3202_v14 }
 0x828   :  { %2518 = vmatpush1.bf16.msra.mxu0 %v3203_v45  ;;  %2559 = vmatpush1.bf16.msra.mxu1 %v3204_v15 }
 0x829   :  { %2519 = vmatprep.subr.bf16.mxu0 %v3205_v32  ;;  %2560 = vmatprep.subr.bf16.mxu1 %v3206_v0 }
 0x82c   :  { %2520 = vmatpush1.bf16.msra.mxu0 %v3207_v34  ;;  %2561 = vmatpush1.bf16.msra.mxu1 %v3208_v63 }
 0x82d   :  { %2521 = vmatprep.subr.bf16.mxu0 %v3209_v38  ;;  %2562 = vmatprep.subr.bf16.mxu1 %v3210_v62 }
 0x830   :  { %2522 = vmatpush1.bf16.msra.mxu0 %v3211_v21  ;;  %2563 = vmatpush1.bf16.msra.mxu1 %v3212_v50 }
 0x831   :  { %2523 = vmatprep.subr.bf16.mxu0 %v3213_v22  ;;  %2564 = vmatprep.subr.bf16.mxu1 %v3214_v23 }
 0x834   :  { %2524 = vmatpush1.bf16.msra.mxu0 %v3215_v24  ;;  %2565 = vmatpush1.bf16.msra.mxu1 %v3216_v25 }
 0x835   :  { %2525 = vmatprep.subr.bf16.mxu0 %v3217_v26  ;;  %2566 = vmatprep.subr.bf16.mxu1 %v3218_v27 }
 0x838   :  { %2526 = vmatpush2.bf16.msra.mxu0 %v3219_v29  ;;  %2567 = vmatpush2.bf16.msra.mxu1 %v3220_v30 }
 0x839   :  { %2527 = vmatprep.subr.bf16.mxu0 %v3221_v46  ;;  %2568 = vmatprep.subr.bf16.mxu1 %v3222_v57  ;;  %v11_v46 = vstv %s5306_s5 }
 0x83a   :  { %12 = vst [vmem:[#allocation2] sm:$0x1] %v11_v46 }
 0x83c   :  { %2528 = vmatpush2.bf16.msra.mxu0 %v3223_v59  ;;  %2569 = vmatpush2.bf16.msra.mxu1 %v3224_v55 }
 0x83d   :  { %2529 = vmatprep.subr.bf16.mxu0 %v5899_v16  ;;  %2570 = vmatprep.subr.bf16.mxu1 %v5900_v39 }
 0x840   :  { %2530 = vmatpush2.bf16.msra.mxu0 %v5901_v40  ;;  %2571 = vmatpush2.bf16.msra.mxu1 %v5902_v41 }
 0x841   :  { %2531 = vmatprep.subr.bf16.mxu0 %v5903_v42  ;;  %2572 = vmatprep.subr.bf16.mxu1 %v5904_v43 }
 0x844   :  { %2532 = vmatpush2.bf16.msra.mxu0 %v5905_v44  ;;  %2573 = vmatpush2.bf16.msra.mxu1 %v5906_v60 }
 0x845   :  { %2533 = vmatprep.subr.bf16.mxu0 %v5907_v47  ;;  %2574 = vmatprep.subr.bf16.mxu1 %v5908_v52 }
 0x848   :  { %2534 = vmatpush2.bf16.msra.mxu0 %v5909_v1  ;;  %2575 = vmatpush2.bf16.msra.mxu1 %v5910_v54 }
 0x849   :  { %2535 = vmatprep.subr.bf16.mxu0 %v5911_v31  ;;  %2576 = vmatprep.subr.bf16.mxu1 %v5912_v37 }
 0x84c   :  { %2536 = vmatpush2.bf16.msra.mxu0 %v5913_v10  ;;  %2577 = vmatpush2.bf16.msra.mxu1 %v5914_v36 }
 0x84d   :  { %2537 = vmatprep.subr.bf16.mxu0 %v5915_v18  ;;  %2578 = vmatprep.subr.bf16.mxu1 %v5916_v3 }
 0x850   :  { %2538 = vmatpush2.bf16.msra.mxu0 %v5917_v51  ;;  %2579 = vmatpush2.bf16.msra.mxu1 %v5918_v33 }
 0x851   :  { %2539 = vmatprep.subr.bf16.mxu0 %v5919_v19  ;;  %2580 = vmatprep.subr.bf16.mxu1 %v5920_v49 }
 0x854   :  { %2540 = vmatpush2.bf16.msra.mxu0 %v5921_v35  ;;  %2581 = vmatpush2.bf16.msra.mxu1 %v5922_v17 }
 0x8b7   :  { %v2289_v16 = vpop.f32.mrf.mxu0  ;;  %v2330_v39 = vpop.f32.mrf.mxu1 }
 0x8b9   :  { %v2291_v40 = vpop.f32.mrf.mxu0  ;;  %v2332_v41 = vpop.f32.mrf.mxu1 }
 0x8ba   :  { %v2341_v42 = vcombine.low %v2289_v16, %v2291_v40  ;;  %v2342_v43 = vcombine.low %v2330_v39, %v2332_v41 }
 0x8bb   :  { %v2293_v44 = vpop.f32.mrf.mxu0  ;;  %v2334_v60 = vpop.f32.mrf.mxu1 }
 0x8bc   :  { %v2349_v47 = vrot.slane %v2341_v42, %v3845_v53  ;;  %v2356_v52 = vrot.slane %v2342_v43, %v3845_v53 }
 0x8bd   :  { %v2294_v1 = vpop.f32.mrf.mxu0  ;;  %v2335_v54 = vpop.f32.mrf.mxu1 }
 0x8be   :  { %v2357_v31 = vcombine.low %v2349_v47, %v2356_v52 }
 0x8c0   :  { %v2359_v37 = vadd.f32 %v5923_v28, %v2357_v31 }
 0x8c2   :  { %v2775_v10 = vmul.f32 -1.442695, %v2359_v37  ;;  %v2367_v3 = vrot.slane %v2359_v37, 6 }
 0x8c4   :  { %3032 = vpow2.f32 %v2775_v10 }
 0x8d1   :  { %v3033_v36 = vpop.eup %3032 }
 0x8d2   :  { %v2363_v18 = vadd.f32 1.0, %v3033_v36 }
 0x8d4   :  { %3034 = vrcp.f32 %v2363_v18 }
 0x8d5   :  { %3036 = vtanh.f32 %v2367_v3 }
 0x8d7   :  { %v2416_v51 = vpop.f32.mrf.mxu0  ;;  %v2457_v33 = vpop.f32.mrf.mxu1 }
 0x8d9   :  { %v2418_v19 = vpop.f32.mrf.mxu0  ;;  %v2459_v49 = vpop.f32.mrf.mxu1 }
 0x8da   :  { %v2468_v35 = vcombine.low %v2416_v51, %v2418_v19  ;;  %v2469_v17 = vcombine.low %v2457_v33, %v2459_v49 }
 0x8db   :  { %v2420_v61 = vpop.f32.mrf.mxu0  ;;  %v2461_v4 = vpop.f32.mrf.mxu1 }
 0x8dc   :  { %v2476_v56 = vrot.slane %v2468_v35, %v3845_v53  ;;  %v2483_v20 = vrot.slane %v2469_v17, %v3845_v53  ;;  %v2780_v61 = vld [vmem:[#allocation2] ss:$0 sm:$0xff] }
 0x8dd   :  { %v2421_v6 = vpop.f32.mrf.mxu0  ;;  %v2462_v7 = vpop.f32.mrf.mxu1 }
 0x8de   :  { %v2484_v8 = vcombine.low %v2476_v56, %v2483_v20 }
 0x8e0   :  { %v2486_v9 = vadd.f32 %v2776_v5, %v2484_v8 }
 0x8e1   :  { %v3035_v11 = vpop.eup %3034 }
 0x8e2   :  { %v2777_v48 = vmul.f32 -1.442695, %v2486_v9  ;;  %v2371_v12 = vrot.slane %v3035_v11, 2  ;;  %v3037_v13 = vpop.eup %3036  ;;  %v2494_v34 = vrot.slane %v2486_v9, 6  ;;  %v2377_v63 = vrot.slane %v3035_v11, 4 }
 0x8e3   :  { %v2374_v45 = vmul.f32 %v3037_v13, %v3035_v11 }
 0x8e4   :  { %3038 = vpow2.f32 %v2777_v48  ;;  %v2373_v14 = vmul.f32 %v2371_v12, %v5031_v58 }
 0x8e6   :  { %v2375_v15 = vadd.f32 %v2374_v45, %v2373_v14 }
 0x8e8   :  { %3040 = vtanh.f32 %v2375_v15 }
 0x8f1   :  { %v3039_v32 = vpop.eup %3038 }
 0x8f2   :  { %v2490_v0 = vadd.f32 1.0, %v3039_v32 }
 0x8f4   :  { %3042 = vrcp.f32 %v2490_v0 }
 0x8f5   :  { %v3041_v38 = vpop.eup %3040  ;;  %3044 = vtanh.f32 %v2494_v34 }
 0x8f6   :  { %v2379_v62 = vmul.f32 %v3041_v38, %v2377_v63 }
 0x8f8   :  { %v2508_v21 = vpack.c.bf16 %v2379_v62, %v2379_v62 }
 0x8fa   :  { %2541 = vmatprep.mubr.bf16.mxu0 %v2508_v21  ;;  %2582 = vmatprep.mubr.bf16.mxu1 %v2508_v21 }
 0x901   :  { %v3043_v50 = vpop.eup %3042 }
 0x902   :  { %v2498_v22 = vrot.slane %v3043_v50, 2  ;;  %v3045_v23 = vpop.eup %3044  ;;  %v2504_v26 = vrot.slane %v3043_v50, 4 }
 0x903   :  { %v2501_v24 = vmul.f32 %v3045_v23, %v3043_v50 }
 0x904   :  { %v2500_v58 = vmul.f32 %v2498_v22, %v5035_v2 }
 0x906   :  { %v2502_v25 = vadd.f32 %v2501_v24, %v2500_v58 }
 0x908   :  { %3046 = vtanh.f32 %v2502_v25 }
 0x915   :  { %v3047_v27 = vpop.eup %3046 }
 0x916   :  { %v2506_v29 = vmul.f32 %v3047_v27, %v2504_v26 }
 0x918   :  { %v2507_v30 = vpack.c.bf16 %v2506_v29, %v2506_v29 }
 0x91a   :  { %2542 = vmatmul.mubr.bf16.vlgmr.msra.gmra.mxu0 %v2507_v30  ;;  %2583 = vmatmul.mubr.bf16.vlgmr.msra.gmra.mxu1 %v2507_v30 }
 0x9da   :  { %v2543_v57 = vpop.f32.mrf.mxu0  ;;  %v2584_v59 = vpop.f32.mrf.mxu1 }
 0x9dc   :  { %v2545_v55 = vpop.f32.mrf.mxu0  ;;  %v2586_v16 = vpop.f32.mrf.mxu1 }
 0x9dd   :  { %v2595_v39 = vcombine.low %v2543_v57, %v2545_v55  ;;  %v2596_v40 = vcombine.low %v2584_v59, %v2586_v16 }
 0x9de   :  { %v2547_v2 = vpop.f32.mrf.mxu0  ;;  %v2588_v41 = vpop.f32.mrf.mxu1 }
 0x9df   :  { %v2603_v42 = vrot.slane %v2595_v39, %v3845_v53  ;;  %v2610_v43 = vrot.slane %v2596_v40, %v3845_v53 }
 0x9e0   :  { %v2548_v44 = vpop.f32.mrf.mxu0  ;;  %v2589_v60 = vpop.f32.mrf.mxu1 }
 0x9e1   :  { %v2611_v47 = vcombine.low %v2603_v42, %v2610_v43 }
 0x9e3   :  { %v2613_v52 = vadd.f32 %v5923_v28, %v2611_v47  ;;  %v2779_v28 = vld [vmem:[%s5307_s4] ss:$0 sm:$0xff] }
 0x9e5   :  { %v2778_v1 = vmul.f32 -1.442695, %v2613_v52  ;;  %v2621_v37 = vrot.slane %v2613_v52, 6 }
 0x9e7   :  { %3048 = vpow2.f32 %v2778_v1 }
 0x9f4   :  { %v3049_v54 = vpop.eup %3048 }
 0x9f5   :  { %v2617_v31 = vadd.f32 1.0, %v3049_v54 }
 0x9f7   :  { %3050 = vrcp.f32 %v2617_v31 }
 0x9f8   :  { %3052 = vtanh.f32 %v2621_v37 }
 0xa04   :  { %v3051_v10 = vpop.eup %3050 }
 0xa05   :  { %v2625_v36 = vrot.slane %v3051_v10, 2  ;;  %v3053_v18 = vpop.eup %3052  ;;  %v2631_v53 = vrot.slane %v3051_v10, 4 }
 0xa06   :  { %v2628_v51 = vmul.f32 %v3053_v18, %v3051_v10 }
 0xa07   :  { %v2627_v3 = vmul.f32 %v2625_v36, %v2375_v15 }
 0xa09   :  { %v2629_v33 = vadd.f32 %v2628_v51, %v2627_v3 }
 0xa0b   :  { %3054 = vtanh.f32 %v2629_v33 }
 0xa18   :  { %v3055_v19 = vpop.eup %3054 }
 0xa19   :  { %v2633_v49 = vmul.f32 %v3055_v19, %v2631_v53 }
 0xa1b   :  { %v2641_v35 = vmul.f32 %v2779_v28, %v2633_v49 }
 0xa1d   :  { %v2643_v17 = vsel %vm2642_vm0, %v2641_v35, 0.0 }
 0xa1e   :  { %2644 = vadd.xlane.f32.xlu0 %v2643_v17 }
 0xaa7   :  { %v2645_v4 = vpop.xlane.xlu0 %2644 }
 0xaa8   :  { %v2653_v56 = vadd.f32 %v2780_v61, %v2645_v4 }
 0xaaa   :  { %2655 = vst.msk [vmem:[%s5308_s6] sm:$0x3] %vm2654_vm1, %v2653_v56 }

</bundles_post_ra>
